<compile_context>
chip_gen: v5e
topology: v5e:2x2
jax: 0.10.0
libtpu: 0.0.40
codegen_flags: <defaults>
</compile_context>

<pallas_src>
import jax
import jax.numpy as jnp
from jax import lax
from jax.experimental import pallas as pl
from jax.experimental.pallas import tpu as pltpu


def _round_up(x, m):
    return ((x + m - 1) // m) * m


def _make_kernel(ci, gp, tp):
    """Flash-style non-local attention on native (channels, S) tiles."""

    def kernel(xo_ref, xt_ref,            # (1,C,TQ) other-branch / (1,C,TKV) this-branch
               wp_ref, bp_ref,            # phi (padded):            (Tp, C), (Tp, 1)
               wkv_ref, bkv_ref,          # [g|ones|theta] fused:    (Gp+Tp, C), (Gp+Tp, 1)
               wz_ref, bz_ref,            # W_z (BN folded, padded): (C, Gp), (C, 1)
               out_ref,                   # (1, C, TQ)
               q_sc, m_sc, acc_sc):       # VMEM scratch
        ki = pl.program_id(2)

        @pl.when(ki == 0)
        def _init():
            # phi projection of x_other ("query"); computed once per (batch, q-tile)
            # and kept resident in VMEM across the kv loop.
            q_sc[...] = (jnp.dot(wp_ref[...], xo_ref[0],
                                 preferred_element_type=jnp.float32) + bp_ref[...])
            m_sc[...] = jnp.full(m_sc.shape, -jnp.inf, m_sc.dtype)
            acc_sc[...] = jnp.zeros(acc_sc.shape, acc_sc.dtype)

        # Fused [g ; ones ; theta] projection of x_this's kv tile (one MXU matmul).
        kvp = (jnp.dot(wkv_ref[...], xt_ref[0],
                       preferred_element_type=jnp.float32) + bkv_ref[...])   # (Gp+Tp, TKV)
        g_ext = kvp[:gp]            # (Gp, TKV): rows [0,ci)=g, row ci=1.0, rest 0
        theta = kvp[gp:gp + tp]     # (Tp, TKV): rows [0,ci)=theta, rest 0

        # s[j, i] = <theta(x_this)_j, phi(x_other)_i>; contract the (small, padded)
        # channel axis of both operands — no big-tile transpose is ever needed.
        s = lax.dot_general(theta, q_sc[...], (((0,), (0,)), ((), ())),
                            preferred_element_type=jnp.float32)              # (TKV, TQ)

        # Online softmax over the kv axis (axis 0); per-q stats are (1, TQ) rows.
        m_new = jnp.maximum(m_sc[...], jnp.max(s, axis=0, keepdims=True))
        alpha = jnp.exp(m_sc[...] - m_new)
        p = jnp.exp(s - m_new)                                                # (TKV, TQ)

        # Standard (M,K)x(K,N) matmul: rows [0,ci) accumulate g@p; row ci
        # accumulates the softmax denominator via the ones row (MXU, not XLU).
        pv = lax.dot_general(g_ext, p, (((1,), (0,)), ((), ())),
                             preferred_element_type=jnp.float32)              # (Gp, TQ)
        acc_sc[...] = alpha * acc_sc[...] + pv
        m_sc[...] = m_new

        @pl.when(ki == pl.num_programs(2) - 1)
        def _finalize():
            acc = acc_sc[...]
            # W_z with BN affine folded; padded wz columns (incl. the denominator
            # column ci) are zero, so the full (Gp) contraction is exact.
            z = lax.dot_general(wz_ref[...], acc, (((1,), (0,)), ((), ())),
                                preferred_element_type=jnp.float32)           # (C, TQ)
            inv_l = pl.reciprocal(acc[ci:ci + 1], approx=False)               # (1, TQ)
            out_ref[0] = (z * inv_l + bz_ref[...]).astype(out_ref.dtype)      # lane-dense

    return kernel


def _vmem_capacity_bytes():
    try:
        info = pltpu.get_tpu_info()
        cap = getattr(info, "vmem_capacity_bytes", None)
        if cap:
            return int(cap)
    except Exception:
        pass
    return 64 << 20   # conservative fallback (v7x per-core VMEM)


def _vmem_estimate(C, Tp, Gp, tq, tkv, act_itemsize):
    """Rough VMEM bytes: double-buffered activation/output blocks, resident
    weights, online-softmax scratch, and in-kernel temporaries (kvp, s, p, pv, z)."""
    R = Gp + Tp
    dbuf = 2
    blocks = dbuf * (act_itemsize * C * (tq + tkv) + 4 * C * tq)
    weights = dbuf * (act_itemsize * (R + Tp) * C + 4 * (R + Tp) + 4 * C * (Gp + 1))
    scratch = 4 * (Tp * tq + Gp * tq + 8 * tq)
    temps = 4 * (R * tkv + 2 * tkv * tq + Gp * tq + 2 * C * tq)
    return blocks + weights + scratch + temps


def _tile_candidates(S):
    cands = {S}
    for c in (2048, 1024, 512, 256, 128):
        if S % c == 0:
            cands.add(c)
    valid = [t for t in cands if S % t == 0 and (t % 128 == 0 or t == S)]
    return sorted(valid, reverse=True)


def nonlocal_cross_nores(x_this, x_other, params, *, block_q=None, block_kv=None,
                         use_bf16=False):
    """x_this, x_other: (N, C, T, H, W) float32 (PyTorch NCTHW convention)."""
    N, C, T, H, W = x_this.shape
    S = T * H * W
    Ci = params["wp"].shape[0]
    Tp = _round_up(Ci, 8)        # theta / phi rows, padded to a sublane tile
    Gp = _round_up(Ci + 1, 8)    # g rows + ones (denominator) row, padded
    R = Gp + Tp

    act_dtype = jnp.bfloat16 if use_bf16 else jnp.float32
    itemsize = 2 if use_bf16 else 4

    # Free contiguous reshape to native (N, C, S) layout — no HBM transposes.
    xt = x_this.reshape(N, C, S).astype(act_dtype)
    xo = x_other.reshape(N, C, S).astype(act_dtype)

    # ---- fold / pad the 1x1-conv weights once in the wrapper ----------------
    wkv = jnp.zeros((R, C), jnp.float32)
    wkv = wkv.at[:Ci].set(params["wg"]).at[Gp:Gp + Ci].set(params["wt"])
    bkv = jnp.zeros((R, 1), jnp.float32)
    bkv = bkv.at[:Ci].set(params["bg"]).at[Ci].set(1.0).at[Gp:Gp + Ci].set(params["bt"])
    wp = jnp.zeros((Tp, C), jnp.float32).at[:Ci].set(params["wp"])
    bp = jnp.zeros((Tp, 1), jnp.float32).at[:Ci].set(params["bp"])
    # Eval-mode BatchNorm affine folded into W_z (zero numeric change); padded
    # contraction columns are zero so the denominator / pad rows drop out.
    wz = jnp.zeros((C, Gp), jnp.float32).at[:, :Ci].set(
        params["wz"] * params["bn_scale"])
    bz = params["bz"] * params["bn_scale"] + params["bn_shift"]               # (C, 1)

    if use_bf16:
        # Pre-cast MXU operands once (halves streamed-activation DMA, no per-step
        # in-kernel casts); biases / W_z / accumulation / output stay f32.
        wkv = wkv.astype(jnp.bfloat16)
        wp = wp.astype(jnp.bfloat16)

    # ---- generation-aware tile selection -------------------------------------
    budget = int(_vmem_capacity_bytes() * 3 // 4)
    cands = _tile_candidates(S)
    tile = cands[-1]
    for c in cands:                      # largest S-tile whose working set fits
        if _vmem_estimate(C, Tp, Gp, c, c, itemsize) + (8 << 20) <= budget:
            tile = c
            break
    tq = block_q if block_q is not None else tile
    tkv = block_kv if block_kv is not None else tile
    for t, name in ((tq, "block_q"), (tkv, "block_kv")):
        assert S % t == 0 and (t % 128 == 0 or t == S), \
            f"{name}={t} must divide S={S} and be a multiple of 128 (or == S)"
    # Megacore (v7x has 2 TensorCores): keep >= 2 parallel grid iterations.
    if block_q is None and N * (S // tq) < 2:
        for c in cands:
            if c < tq and N * (S // c) >= 2:
                tq = c
                break

    nq, nkv = S // tq, S // tkv
    grid = (N, nq, nkv)
    kernel = _make_kernel(Ci, Gp, Tp)

    xo_spec = pl.BlockSpec((1, C, tq), lambda b, qi, ki: (b, 0, qi))
    xt_spec = pl.BlockSpec((1, C, tkv), lambda b, qi, ki: (b, 0, ki))
    out_spec = pl.BlockSpec((1, C, tq), lambda b, qi, ki: (b, 0, qi))

    def w_spec(a):
        # Constant index_map: weight blocks stay resident in VMEM across the grid.
        return pl.BlockSpec(a.shape, lambda b, qi, ki: (0, 0))

    est = _vmem_estimate(C, Tp, Gp, tq, tkv, itemsize)
    vmem_limit = int(min(max(est + (8 << 20), 32 << 20), max(budget, 32 << 20)))

    cost = pl.CostEstimate(
        # x_this is re-read and re-projected once per q-tile (nq times).
        flops=int(N * (nq * 2 * R * C * S + 2 * Tp * C * S
                       + 2 * S * S * Tp + 2 * S * S * Gp + 2 * C * Gp * S)),
        transcendentals=int(N * S * S + N * S * nkv),
        bytes_accessed=int(itemsize * N * C * S * (1 + nq) + 4 * N * C * S
                           + itemsize * (wkv.size + wp.size)
                           + 4 * (bkv.size + bp.size + wz.size + bz.size)),
    )

    out = pl.pallas_call(
        kernel,
        out_shape=jax.ShapeDtypeStruct((N, C, S), jnp.float32),
        grid=grid,
        in_specs=[xo_spec, xt_spec,
                  w_spec(wp), w_spec(bp),
                  w_spec(wkv), w_spec(bkv),
                  w_spec(wz), w_spec(bz)],
        out_specs=out_spec,
        scratch_shapes=[
            pltpu.VMEM((Tp, tq), jnp.float32),   # phi / query panel
            pltpu.VMEM((1, tq), jnp.float32),    # running max m
            pltpu.VMEM((Gp, tq), jnp.float32),   # accumulator (+ denominator row)
        ],
        compiler_params=pltpu.CompilerParams(
            dimension_semantics=("parallel", "parallel", "arbitrary"),
            vmem_limit_bytes=vmem_limit),
        cost_estimate=cost,
    )(xo, xt, wp, bp, wkv, bkv, wz, bz)

    return out.reshape(N, C, T, H, W)


def reference(x_this, x_other, params):
    """Pure-JAX reference matching the PyTorch forward (mode='embedded')."""
    N, C, T, H, W = x_this.shape
    S = T * H * W
    xt = x_this.reshape(N, C, S)
    xo = x_other.reshape(N, C, S)
    g = jnp.einsum("dc,ncs->nds", params["wg"], xt) + params["bg"]
    th = jnp.einsum("dc,ncs->nds", params["wt"], xt) + params["bt"]
    ph = jnp.einsum("dc,ncs->nds", params["wp"], xo) + params["bp"]
    f = jnp.einsum("ndi,ndj->nij", ph, th)      # f = phi_x @ theta_x (torch orientation)
    p = jax.nn.softmax(f, axis=-1)
    y = jnp.einsum("nij,ndj->ndi", p, g)        # (N, Ci, S)
    z = jnp.einsum("cd,ndi->nci", params["wz"], y) + params["bz"]
    z = z * params["bn_scale"] + params["bn_shift"]
    return z.reshape(N, C, T, H, W)


def init_params(key, in_channels, inter_channels):
    """Deterministic init. 1x1 conv weights stored as (cout, cin) so the kernel
    computes W @ x directly on (C, S)-layout tiles; biases are (cout, 1)."""
    ks = jax.random.split(key, 10)
    C, Ci = in_channels, inter_channels

    def conv_w(k, cout, cin):
        bound = 1.0 / (cin ** 0.5)
        return jax.random.uniform(k, (cout, cin), jnp.float32, -bound, bound)

    def conv_b(k, cout, cin):
        bound = 1.0 / (cin ** 0.5)
        return jax.random.uniform(k, (cout, 1), jnp.float32, -bound, bound)

    gamma = jax.random.uniform(ks[8], (C, 1), jnp.float32, 0.5, 1.5)
    beta = jax.random.uniform(ks[9], (C, 1), jnp.float32, -0.5, 0.5)
    eps = 1e-5
    # eval-mode BN with running_mean=0, running_var=1
    bn_scale = gamma / jnp.sqrt(1.0 + eps)
    bn_shift = beta

    return {
        "wg": conv_w(ks[0], Ci, C), "bg": conv_b(ks[1], Ci, C),
        "wt": conv_w(ks[2], Ci, C), "bt": conv_b(ks[3], Ci, C),
        "wp": conv_w(ks[4], Ci, C), "bp": conv_b(ks[5], Ci, C),
        "wz": conv_w(ks[6], C, Ci), "bz": conv_b(ks[7], C, Ci),
        "bn_scale": bn_scale, "bn_shift": bn_shift,
    }


if __name__ == "__main__":
    # (N, C, T, H, W) for dimension=3; S = T*H*W = 512
    N, C, T, H, W = 2, 16, 2, 16, 16
    Ci = C // 2                              # inter_channels default = in_channels // 2

    key = jax.random.PRNGKey(0)
    k_this, k_other, k_params = jax.random.split(key, 3)
    x_this = jax.random.normal(k_this, (N, C, T, H, W), jnp.float32)
    x_other = jax.random.normal(k_other, (N, C, T, H, W), jnp.float32)
    params = init_params(k_params, C, Ci)

    ref = reference(x_this, x_other, params)

    # f32 path — tight check against the reference
    out = jax.block_until_ready(nonlocal_cross_nores(x_this, x_other, params))
    assert out.shape == (N, C, T, H, W), out.shape
    max_err = float(jnp.max(jnp.abs(out - ref)))
    assert jnp.allclose(out, ref, atol=1e-4, rtol=1e-4), f"f32 max_err={max_err}"

    # bf16 streamed-operand path (f32 accumulation) — loose check
    out_bf16 = jax.block_until_ready(
        nonlocal_cross_nores(x_this, x_other, params, use_bf16=True))
    max_err_bf16 = float(jnp.max(jnp.abs(out_bf16 - ref)))
    assert jnp.allclose(out_bf16, ref, atol=5e-2, rtol=5e-2), \
        f"bf16 max_err={max_err_bf16}"

    print("KERNEL_OK")
</pallas_src>

<mosaic_0001>
module attributes {stable_mosaic.version = 11 : i64} {
  func.func @kernel(%arg0: i32, %arg1: i32, %arg2: i32, %arg3: memref<1x16x512xf32, #tpu.memory_space<vmem>>, %arg4: memref<1x16x512xf32, #tpu.memory_space<vmem>>, %arg5: memref<8x16xf32, #tpu.memory_space<vmem>>, %arg6: memref<8x1xf32, #tpu.memory_space<vmem>>, %arg7: memref<24x16xf32, #tpu.memory_space<vmem>>, %arg8: memref<24x1xf32, #tpu.memory_space<vmem>>, %arg9: memref<16x16xf32, #tpu.memory_space<vmem>>, %arg10: memref<16x1xf32, #tpu.memory_space<vmem>>, %arg11: memref<1x16x512xf32, #tpu.memory_space<vmem>>, %arg12: memref<8x512xf32, #tpu.memory_space<vmem>>, %arg13: memref<1x512xf32, #tpu.memory_space<vmem>>, %arg14: memref<16x512xf32, #tpu.memory_space<vmem>>) attributes {dimension_semantics = [#tpu.dimension_semantics<parallel>, #tpu.dimension_semantics<parallel>, #tpu.dimension_semantics<arbitrary>], iteration_bounds = array<i64: 2, 1, 1>, scalar_prefetch = 0 : i64, scratch_operands = 3 : i64, tpu.core_type = #tpu.core_type<tc>, window_params = [{transform_indices = @transform_0, window_bounds = array<i64: 1, 16, 512>}, {transform_indices = @transform_1, window_bounds = array<i64: 1, 16, 512>}, {pipeline_mode = #tpu.pipeline_mode<synchronous>, transform_indices = @transform_2, window_bounds = array<i64: 8, 16>}, {pipeline_mode = #tpu.pipeline_mode<synchronous>, transform_indices = @transform_3, window_bounds = array<i64: 8, 1>}, {pipeline_mode = #tpu.pipeline_mode<synchronous>, transform_indices = @transform_4, window_bounds = array<i64: 24, 16>}, {pipeline_mode = #tpu.pipeline_mode<synchronous>, transform_indices = @transform_5, window_bounds = array<i64: 24, 1>}, {pipeline_mode = #tpu.pipeline_mode<synchronous>, transform_indices = @transform_6, window_bounds = array<i64: 16, 16>}, {pipeline_mode = #tpu.pipeline_mode<synchronous>, transform_indices = @transform_7, window_bounds = array<i64: 16, 1>}, {transform_indices = @transform_8, window_bounds = array<i64: 1, 16, 512>}]} {
    %c0_i32 = arith.constant 0 : i32
    %0 = arith.cmpi eq, %arg2, %c0_i32 : i32
    %1 = arith.extui %0 : i1 to i32
    %c0_i32_0 = arith.constant 0 : i32
    %2 = arith.cmpi ne, %1, %c0_i32_0 : i32
    scf.if %2 {
      %c0_24 = arith.constant 0 : index
      %c0_25 = arith.constant 0 : index
      %34 = vector.load %arg5[%c0_24, %c0_25] : memref<8x16xf32, #tpu.memory_space<vmem>>, vector<8x16xf32>
      %c0_26 = arith.constant 0 : index
      %c0_27 = arith.constant 0 : index
      %c0_28 = arith.constant 0 : index
      %35 = vector.load %arg3[%c0_26, %c0_27, %c0_28] : memref<1x16x512xf32, #tpu.memory_space<vmem>>, vector<1x16x512xf32>
      %36 = vector.shape_cast %35 : vector<1x16x512xf32> to vector<16x512xf32>
      %cst_29 = arith.constant dense<0.000000e+00> : vector<8x512xf32>
      %37 = tpu.matmul %34, %36, %cst_29 {dimension_numbers = #tpu.dot_dimension_numbers<[1], [0], [0], [1], [0, 0, 1, 1], [], []>} : vector<8x16xf32>, vector<16x512xf32>, vector<8x512xf32> -> vector<8x512xf32>
      %c0_30 = arith.constant 0 : index
      %c0_31 = arith.constant 0 : index
      %38 = vector.load %arg6[%c0_30, %c0_31] : memref<8x1xf32, #tpu.memory_space<vmem>>, vector<8x1xf32>
      %39 = vector.broadcast %38 : vector<8x1xf32> to vector<8x512xf32>
      %40 = arith.addf %37, %39 : vector<8x512xf32>
      %c0_32 = arith.constant 0 : index
      %c0_33 = arith.constant 0 : index
      %41 = vector.load %arg12[%c0_32, %c0_33] : memref<8x512xf32, #tpu.memory_space<vmem>>, vector<8x512xf32>
      tpu.vector_store %arg12[%c0_32, %c0_33], %40 {strides = array<i32>} : memref<8x512xf32, #tpu.memory_space<vmem>>, vector<8x512xf32>,
      %cst_34 = arith.constant 0xFF800000 : f32
      %42 = vector.broadcast %cst_34 : f32 to vector<1x512xf32>
      %c0_35 = arith.constant 0 : index
      %c0_36 = arith.constant 0 : index
      %43 = vector.load %arg13[%c0_35, %c0_36] : memref<1x512xf32, #tpu.memory_space<vmem>>, vector<1x512xf32>
      tpu.vector_store %arg13[%c0_35, %c0_36], %42 {strides = array<i32>} : memref<1x512xf32, #tpu.memory_space<vmem>>, vector<1x512xf32>,
      %cst_37 = arith.constant 0.000000e+00 : f32
      %44 = vector.broadcast %cst_37 : f32 to vector<16x512xf32>
      %c0_38 = arith.constant 0 : index
      %c0_39 = arith.constant 0 : index
      %45 = vector.load %arg14[%c0_38, %c0_39] : memref<16x512xf32, #tpu.memory_space<vmem>>, vector<16x512xf32>
      tpu.vector_store %arg14[%c0_38, %c0_39], %44 {strides = array<i32>} : memref<16x512xf32, #tpu.memory_space<vmem>>, vector<16x512xf32>,
    } else {
    }
    %c0 = arith.constant 0 : index
    %c0_1 = arith.constant 0 : index
    %3 = vector.load %arg7[%c0, %c0_1] : memref<24x16xf32, #tpu.memory_space<vmem>>, vector<24x16xf32>
    %c0_2 = arith.constant 0 : index
    %c0_3 = arith.constant 0 : index
    %c0_4 = arith.constant 0 : index
    %4 = vector.load %arg4[%c0_2, %c0_3, %c0_4] : memref<1x16x512xf32, #tpu.memory_space<vmem>>, vector<1x16x512xf32>
    %5 = vector.shape_cast %4 : vector<1x16x512xf32> to vector<16x512xf32>
    %cst = arith.constant dense<0.000000e+00> : vector<24x512xf32>
    %6 = tpu.matmul %3, %5, %cst {dimension_numbers = #tpu.dot_dimension_numbers<[1], [0], [0], [1], [0, 0, 1, 1], [], []>} : vector<24x16xf32>, vector<16x512xf32>, vector<24x512xf32> -> vector<24x512xf32>
    %c0_5 = arith.constant 0 : index
    %c0_6 = arith.constant 0 : index
    %7 = vector.load %arg8[%c0_5, %c0_6] : memref<24x1xf32, #tpu.memory_space<vmem>>, vector<24x1xf32>
    %8 = vector.broadcast %7 : vector<24x1xf32> to vector<24x512xf32>
    %9 = arith.addf %6, %8 : vector<24x512xf32>
    %10 = vector.extract_strided_slice %9 {offsets = [0, 0], sizes = [16, 512], strides = [1, 1]} : vector<24x512xf32> to vector<16x512xf32>
    %11 = vector.extract_strided_slice %9 {offsets = [16, 0], sizes = [8, 512], strides = [1, 1]} : vector<24x512xf32> to vector<8x512xf32>
    %c0_7 = arith.constant 0 : index
    %c0_8 = arith.constant 0 : index
    %12 = vector.load %arg12[%c0_7, %c0_8] : memref<8x512xf32, #tpu.memory_space<vmem>>, vector<8x512xf32>
    %cst_9 = arith.constant dense<0.000000e+00> : vector<512x512xf32>
    %13 = tpu.matmul %11, %12, %cst_9 {dimension_numbers = #tpu.dot_dimension_numbers<[0], [0], [1], [1], [0, 1, 1, 1], [], []>} : vector<8x512xf32>, vector<8x512xf32>, vector<512x512xf32> -> vector<512x512xf32>
    %c0_10 = arith.constant 0 : index
    %c0_11 = arith.constant 0 : index
    %14 = vector.load %arg13[%c0_10, %c0_11] : memref<1x512xf32, #tpu.memory_space<vmem>>, vector<1x512xf32>
    %cst_12 = arith.constant dense<0xFF800000> : vector<512xf32>
    %15 = vector.multi_reduction <maximumf>, %13, %cst_12 [0] : vector<512x512xf32> to vector<512xf32>
    %16 = vector.shape_cast %15 : vector<512xf32> to vector<1x512xf32>
    %17 = arith.maximumf %14, %16 : vector<1x512xf32>
    %c0_13 = arith.constant 0 : index
    %c0_14 = arith.constant 0 : index
    %18 = vector.load %arg13[%c0_13, %c0_14] : memref<1x512xf32, #tpu.memory_space<vmem>>, vector<1x512xf32>
    %19 = arith.subf %18, %17 : vector<1x512xf32>
    %20 = math.exp %19 : vector<1x512xf32>
    %21 = vector.broadcast %17 : vector<1x512xf32> to vector<512x512xf32>
    %22 = arith.subf %13, %21 : vector<512x512xf32>
    %23 = math.exp %22 : vector<512x512xf32>
    %cst_15 = arith.constant dense<0.000000e+00> : vector<16x512xf32>
    %24 = tpu.matmul %10, %23, %cst_15 {dimension_numbers = #tpu.dot_dimension_numbers<[1], [0], [0], [1], [0, 0, 1, 1], [], []>} : vector<16x512xf32>, vector<512x512xf32>, vector<16x512xf32> -> vector<16x512xf32>
    %c0_16 = arith.constant 0 : index
    %c0_17 = arith.constant 0 : index
    %25 = vector.load %arg14[%c0_16, %c0_17] : memref<16x512xf32, #tpu.memory_space<vmem>>, vector<16x512xf32>
    %26 = vector.broadcast %20 : vector<1x512xf32> to vector<16x512xf32>
    %27 = arith.mulf %26, %25 : vector<16x512xf32>
    %28 = arith.addf %27, %24 : vector<16x512xf32>
    %c0_18 = arith.constant 0 : index
    %c0_19 = arith.constant 0 : index
    %29 = vector.load %arg14[%c0_18, %c0_19] : memref<16x512xf32, #tpu.memory_space<vmem>>, vector<16x512xf32>
    tpu.vector_store %arg14[%c0_18, %c0_19], %28 {strides = array<i32>} : memref<16x512xf32, #tpu.memory_space<vmem>>, vector<16x512xf32>,
    %c0_20 = arith.constant 0 : index
    %c0_21 = arith.constant 0 : index
    %30 = vector.load %arg13[%c0_20, %c0_21] : memref<1x512xf32, #tpu.memory_space<vmem>>, vector<1x512xf32>
    tpu.vector_store %arg13[%c0_20, %c0_21], %17 {strides = array<i32>} : memref<1x512xf32, #tpu.memory_space<vmem>>, vector<1x512xf32>,
    %c0_i32_22 = arith.constant 0 : i32
    %31 = arith.cmpi eq, %arg2, %c0_i32_22 : i32
    %32 = arith.extui %31 : i1 to i32
    %c0_i32_23 = arith.constant 0 : i32
    %33 = arith.cmpi ne, %32, %c0_i32_23 : i32
    scf.if %33 {
      %c0_24 = arith.constant 0 : index
      %c0_25 = arith.constant 0 : index
      %34 = vector.load %arg14[%c0_24, %c0_25] : memref<16x512xf32, #tpu.memory_space<vmem>>, vector<16x512xf32>
      %c0_26 = arith.constant 0 : index
      %c0_27 = arith.constant 0 : index
      %35 = vector.load %arg9[%c0_26, %c0_27] : memref<16x16xf32, #tpu.memory_space<vmem>>, vector<16x16xf32>
      %cst_28 = arith.constant dense<0.000000e+00> : vector<16x512xf32>
      %36 = tpu.matmul %35, %34, %cst_28 {dimension_numbers = #tpu.dot_dimension_numbers<[1], [0], [0], [1], [0, 0, 1, 1], [], []>} : vector<16x16xf32>, vector<16x512xf32>, vector<16x512xf32> -> vector<16x512xf32>
      %37 = vector.extract_strided_slice %34 {offsets = [8, 0], sizes = [1, 512], strides = [1, 1]} : vector<16x512xf32> to vector<1x512xf32>
      %38 = tpu.reciprocal %37 : vector<1x512xf32> -> vector<1x512xf32>
      %39 = vector.broadcast %38 : vector<1x512xf32> to vector<16x512xf32>
      %40 = arith.mulf %36, %39 : vector<16x512xf32>
      %c0_29 = arith.constant 0 : index
      %c0_30 = arith.constant 0 : index
      %41 = vector.load %arg10[%c0_29, %c0_30] : memref<16x1xf32, #tpu.memory_space<vmem>>, vector<16x1xf32>
      %42 = vector.broadcast %41 : vector<16x1xf32> to vector<16x512xf32>
      %43 = arith.addf %40, %42 : vector<16x512xf32>
      %c0_31 = arith.constant 0 : index
      %c0_32 = arith.constant 0 : index
      %c0_33 = arith.constant 0 : index
      %44 = vector.load %arg11[%c0_31, %c0_32, %c0_33] : memref<1x16x512xf32, #tpu.memory_space<vmem>>, vector<1x16x512xf32>
      %45 = vector.shape_cast %44 : vector<1x16x512xf32> to vector<16x512xf32>
      %46 = vector.shape_cast %43 : vector<16x512xf32> to vector<1x16x512xf32>
      tpu.vector_store %arg11[%c0_31, %c0_32, %c0_33], %46 {strides = array<i32>} : memref<1x16x512xf32, #tpu.memory_space<vmem>>, vector<1x16x512xf32>,
    } else {
    }
    return
  }
  func.func @transform_0(%arg0: i32, %arg1: i32, %arg2: i32) -> (i32, i32, i32) {
    %c0_i32 = arith.constant 0 : i32
    %c0_i32_0 = arith.constant 0 : i32
    return %arg0, %c0_i32, %arg1 : i32, i32, i32
  }
  func.func @transform_1(%arg0: i32, %arg1: i32, %arg2: i32) -> (i32, i32, i32) {
    %c0_i32 = arith.constant 0 : i32
    %c0_i32_0 = arith.constant 0 : i32
    return %arg0, %c0_i32, %arg2 : i32, i32, i32
  }
  func.func @transform_2(%arg0: i32, %arg1: i32, %arg2: i32) -> (i32, i32) {
    %c0_i32 = arith.constant 0 : i32
    %c0_i32_0 = arith.constant 0 : i32
    %c0_i32_1 = arith.constant 0 : i32
    return %c0_i32, %c0_i32_0 : i32, i32
  }
  func.func @transform_3(%arg0: i32, %arg1: i32, %arg2: i32) -> (i32, i32) {
    %c0_i32 = arith.constant 0 : i32
    %c0_i32_0 = arith.constant 0 : i32
    %c0_i32_1 = arith.constant 0 : i32
    return %c0_i32, %c0_i32_0 : i32, i32
  }
  func.func @transform_4(%arg0: i32, %arg1: i32, %arg2: i32) -> (i32, i32) {
    %c0_i32 = arith.constant 0 : i32
    %c0_i32_0 = arith.constant 0 : i32
    %c0_i32_1 = arith.constant 0 : i32
    return %c0_i32, %c0_i32_0 : i32, i32
  }
  func.func @transform_5(%arg0: i32, %arg1: i32, %arg2: i32) -> (i32, i32) {
    %c0_i32 = arith.constant 0 : i32
    %c0_i32_0 = arith.constant 0 : i32
    %c0_i32_1 = arith.constant 0 : i32
    return %c0_i32, %c0_i32_0 : i32, i32
  }
  func.func @transform_6(%arg0: i32, %arg1: i32, %arg2: i32) -> (i32, i32) {
    %c0_i32 = arith.constant 0 : i32
    %c0_i32_0 = arith.constant 0 : i32
    %c0_i32_1 = arith.constant 0 : i32
    return %c0_i32, %c0_i32_0 : i32, i32
  }
  func.func @transform_7(%arg0: i32, %arg1: i32, %arg2: i32) -> (i32, i32) {
    %c0_i32 = arith.constant 0 : i32
    %c0_i32_0 = arith.constant 0 : i32
    %c0_i32_1 = arith.constant 0 : i32
    return %c0_i32, %c0_i32_0 : i32, i32
  }
  func.func @transform_8(%arg0: i32, %arg1: i32, %arg2: i32) -> (i32, i32, i32) {
    %c0_i32 = arith.constant 0 : i32
    %c0_i32_0 = arith.constant 0 : i32
    return %arg0, %c0_i32, %arg1 : i32, i32, i32
  }
}

</mosaic_0001>

<bundles_post_ra>
// kernel: tpu_custom_call.1
= control target key start
LH: loop header
LB: loop body
LE: loop exit
PB: predicated region body
PF: predicated region fallthrough
CT: control target
= control target key end

     0   :  { %s6689_s0 = inlined_call_operand.hbm [shape: f32[2,16,512], index: 0, kind: input, shape index: {}]   ;;  %s6690_s1 = inlined_call_operand.hbm [shape: f32[2,16,512], index: 1, kind: input, shape index: {}]   ;;  %s6691_s2 = inlined_call_operand.vmem [shape: f32[8,16], index: 2, kind: input, shape index: {}]   ;;  %s6692_s3 = inlined_call_operand.vmem [shape: f32[8,1], index: 3, kind: input, shape index: {}]   ;;  %s6693_s4 = inlined_call_operand.vmem [shape: f32[24,16], index: 4, kind: input, shape index: {}]   ;;  %s6694_s5 = inlined_call_operand.vmem [shape: f32[24,1], index: 5, kind: input, shape index: {}]   ;;  %s6695_s6 = inlined_call_operand.vmem [shape: f32[16,16], index: 6, kind: input, shape index: {}]   ;;  %s6696_s7 = inlined_call_operand.vmem [shape: f32[16,1], index: 7, kind: input, shape index: {}]   ;;  %s6697_s8 = inlined_call_operand.hbm [shape: f32[2,16,512], index: 8, kind: output, shape index: {}]  }
   0x1   :  { %6935 = sst [smem:[#allocation254_spill]] %s6689_s0 }
   0x2   :  { %13 = vsyncpa [#allocation6], 0 }
   0x3   :  { %15 = vsyncpa [#allocation6 + $0x1], 0 }
   0x4   :  { %16 = vsyncpa [#allocation9], 0 }
   0x5   :  { %18 = vsyncpa [#allocation9 + $0x1], 0 }
   0x6   :  { %19 = vsyncpa [#allocation7], 0 }
   0x7   :  { %21 = vsyncpa [#allocation7 + $0x1], 0  ;;  %s4749_s27 = smov 0   ;;  %s4751_s28 = smov 0  }
   0x8   :  { %s4753_s29 = smov 0   ;;  %s4755_s30 = smov 0  }
   0x9   :  { %s4757_s9 = smov 0   ;;  %s4759_s10 = smov 0  }
   0xa LB: > { %6936 = sst [smem:[#allocation14_spill]] %s4684_s29  ;;  %s3651_s11 = sadd.s32 4294967295, %s4696_s10   ;;  %s4696_s10 = sphi %s4759_s10, %s27_s10   ;;  %s4692_s9 = sphi %s4757_s9, %s7571_s9   ;;  %s4688_s30 = sphi %s4755_s30, %s7570_s30   ;;  %s4684_s29 = sphi %s4753_s29, %s7569_s29   ;;  %s4680_s28 = sphi %s4751_s28, %s7573_s28   ;;  %s4676_s27 = sphi %s4749_s27, %s7572_s27  }
   0xb   : > { %6937 = sst [smem:[#allocation15_spill]] %s4692_s9  ;;  %s3652_s12 = sadd.s32 4294967294, %s4696_s10  }
   0xc   : > { %s46_s13 = sadd.s32 1, %s4692_s9  ;;  %s55_s14 = sadd.s32 1, %s4684_s29 }
   0xd   : > { %p48_p0 = scmp.ge.s32.totalorder %s46_s13, 2  ;;  %p62_p1 = scmp.ne.s32.totalorder %s4684_s29, %s4680_s28 }
   0xe   : > { %p63_p2 = scmp.eq.s32.totalorder %s4696_s10, 0  ;;  %p68_p3 = scmp.ne.s32.totalorder %s4680_s28, %s4676_s27 }
   0xf   : > { %s7575_s13 = smov (%p48_p0, %s46_s13), 0  ;;  %p69_p5 = scmp.eq.s32.totalorder %s3651_s11, 0 }
  0x10   : > { %6938 = sst [smem:[#allocation16_spill]] %s7575_s13  ;;  %p4790_p4 = por %p63_p2, %p62_p1 }
  0x11   : > { %s50_s16 = ssub.s32 %s4692_s9, %s7575_s13  ;;  %p248_p6 = scmp.eq.s32.totalorder %s3651_s11, 1 }
  0x12   : > { %p53_p7 = scmp.eq.s32.totalorder %s50_s16, 0  ;;  %p4796_p8 = por %p69_p5, %p68_p3 }
  0x13   : > { %p4800_p9 = por %p248_p6, %p62_p1  ;;  %p254_p10 = scmp.eq.s32.totalorder %s3652_s12, 1 }
  0x14   : > { %s4805_s19 = scalar_select %p53_p7, %s4684_s29, %s55_s14  }
  0x15   : > { %p4807_p11 = por %p254_p10, %p68_p3  ;;  %p3654_p12 = scmp.ge.s32.totalorder %s4696_s10, 2 }
  0x16   : > { %6942 = sst [smem:[#allocation17_spill]] %s4805_s19  ;;  %p3970_p13 = scmp.lt.s32.totalorder %s4696_s10, 2 }
  0x17   : > { %s6943_s20 = scalar_select %p4807_p11, 1, 0 }
  0x18   : > { %s4814_s21 = sand.u32 1, %s4684_s29   ;;  %s3950_s23 = sshll.u32 %s4692_s9, 6 }
  0x19   : > { %6944 = sst [smem:[#allocation18_spill]] %s6943_s20  ;;  %s3655_s22 = sshll.u32 %s4814_s21, 6 }
  0x1a   : > { %s6945_s0 = sld [smem:[#allocation254_spill]]  ;;  %s296_s11 = scalar_lea.vmem [#allocation5], %s3655_s22 }
  0x1b   : > { %s306_s12 = sshll.u32 %s296_s11, 4  ;;  %p4823_p0 = pnand %p3970_p13, %p4790_p4  ;;  %s307_s12 = int_to_ptr.vmem [resolvable:$true] %s306_s12 }
  0x1c   : > { %p3661_p1 = scmp.ge.s32.totalorder %s4696_s10, 1  ;;  %s293_s13 = scalar_lea.sflag [#allocation6], %s4814_s21 }
  0x1d   : > { %s4698_s9 = smov 512   ;;  %s4699_s19 = smov 32  }
  0x1e   : > { %p338_p2 = scmp.lt.s32.totalorder %s4696_s10, 3  ;;  %s320_s15 = scalar_lea.vmem [#allocation8], %s3655_s22 }
  0x1f   : > { %s317_s29 = scalar_lea.sflag [#allocation9], %s4814_s21 }
  0x20   : > { %s303_s26 = scalar_lea.hbm %s6945_s0, %s3950_s23  ;;  %p339_p3 = pnand %p3661_p1, %p338_p2 }
  0x21   : > { %s304_s14 = sshll.u32 %s303_s26, 4  ;;  %s327_s26 = scalar_lea.hbm %s6690_s1, %s3950_s23  ;;  %s305_s14 = int_to_ptr.hbm [resolvable:$true] %s304_s14 }
  0x22   : > { %3962 = dma.hbm_to_vmem [thread:$0]  (!%p4823_p0), %s305_s14, 1024, %s307_s12, %s293_s13, %s4698_s9, %s4698_s9, %s4699_s19  }
  0x23   : > { %s328_s11 = sshll.u32 %s327_s26, 4  ;;  %s330_s0 = sshll.u32 %s320_s15, 4  ;;  %s329_s11 = int_to_ptr.hbm [resolvable:$true] %s328_s11  ;;  %s331_s0 = int_to_ptr.vmem [resolvable:$true] %s330_s0 }
  0x24   : > { %3965 = dma.hbm_to_vmem [thread:$0]  (!%p4823_p0), %s329_s11, 1024, %s331_s0, %s317_s29, %s4698_s9, %s4698_s9, %s4699_s19  }
  0x25   : > { %342 = sbr.rel (%p339_p3) target bundleno = 1652 (0x674), region = 52 }
  0x2a   : > { %s4839_s20 = sand.u32 1, %s4680_s28  }
  0x2b   : > { %s4842_s13 = sshll.u32 %s4839_s20, 6  ;;  %s345_s23 = scalar_lea.sflag [#allocation6], %s4839_s20 }
  0x2c   : > { %s348_s12 = scalar_lea.vmem [#allocation5], %s4842_s13 }
  0x2d   : > { %4663 = dma.done.wait (%p4796_p8), %s345_s23, 1024  }
  0x2e   : > { %4665 = vsyncadd (%p4796_p8), %s345_s23, 4294966272  ;;  %s355_s0 = scalar_lea.sflag [#allocation9], %s4839_s20  ;;  %s4852_s29 = scalar_lea.vmem [#allocation8], %s4842_s13 }
  0x2f   : > { %4667 = dma.done.wait (%p4796_p8), %s355_s0, 1024  }
  0x30   : > { %4669 = vsyncadd (%p4796_p8), %s355_s0, 4294966272  ;;  %v4700_v0 = vmov 0   ;;  %v533_v1 = vld [vmem:[%s6694_s5 + $0x10] sm:$0xff]  ;;  %v409_v2 = vld [vmem:[%s348_s12 + $0x20] sm:$0xff]  ;;  %vm419_vm0 = vcmask 130048   ;;  %vm795_vm1 = vcmask 64512  }
  0x31   : > { %4027 = vset.pattern.permute.xlu0 %v4700_v0  ;;  %v410_v3 = vld [vmem:[%s348_s12 + $0x28] sm:$0xff]  ;;  %437 = vmatpush.msra.mxu0 %v409_v2  ;;  %v411_v4 = vld [vmem:[%s348_s12 + $0x30] sm:$0xff]  ;;  %v412_v5 = vld [vmem:[%s348_s12 + $0x38] sm:$0xff]  ;;  %vm2108_vm3 = vcmask 1040384   ;;  %vm2110_vm4 = vcmask 1042434   ;;  %vm2112_vm5 = vcmask 1041408  }
  0x32   : > { %546 = vperm.xlu0 %4027, %v533_v1   ;;  %v405_v6 = vld [vmem:[%s348_s12] sm:$0xff]  ;;  %457 = vmatpush.msra.mxu1 %v410_v3  ;;  %v406_v7 = vld [vmem:[%s348_s12 + $0x8] sm:$0xff]  ;;  %v407_v8 = vld [vmem:[%s348_s12 + $0x10] sm:$0xff]  ;;  %s6617_s25 = scalar_lea.vmem [#allocation10], %s4842_s13  ;;  %s3952_s13 = sshll.u32 %s4688_s30, 6 }
  0x33   : > { %477 = vmatpush.msra.mxu2 %v411_v4  ;;  %v408_v9 = vld [vmem:[%s348_s12 + $0x18] sm:$0xff]  ;;  %497 = vmatpush.msra.mxu3 %v412_v5  ;;  %v527_v11 = vld [vmem:[%s4852_s29 + $0x20] sm:$0xff]  ;;  %v528_v12 = vld [vmem:[%s4852_s29 + $0x28] sm:$0xff]  ;;  %s3531_s15 = scalar_lea.hbm %s6697_s8, %s3952_s13  ;;  %s3532_s23 = sshll.u32 %s6617_s25, 4  ;;  %s3533_s23 = int_to_ptr.vmem [resolvable:$true] %s3532_s23 }
  0x34   : > { %438 = vmatpush.msra.mxu0 %v405_v6  ;;  %v404_v10 = vld [vmem:[%s6691_s2] sm:$0xff]  ;;  %458 = vmatpush.msra.mxu1 %v406_v7  ;;  %v529_v13 = vld [vmem:[%s4852_s29 + $0x30] sm:$0xff]  ;;  %v524_v17 = vld [vmem:[%s4852_s29 + $0x8] sm:$0xff]  ;;  %s3534_s12 = sshll.u32 %s3531_s15, 4  ;;  %s3518_s0 = scalar_lea.sflag [#allocation7], %s4839_s20  ;;  %s3535_s12 = int_to_ptr.hbm [resolvable:$true] %s3534_s12 }
  0x35   : > { %478 = vmatpush.msra.mxu2 %v407_v8  ;;  %498 = vmatpush.msra.mxu3 %v408_v9  ;;  %v413_v14 = vld [vmem:[%s6692_s3] sm:$0xff]  ;;  %v525_v18 = vld [vmem:[%s4852_s29 + $0x10] sm:$0xff]  ;;  %v521_v22 = vld [vmem:[%s6693_s4 + $0x8] sm:$0xff]  ;;  %s4630_s17 = scalar_lea.hbm %s6697_s8, 128 }
  0x36   : > { %3665 = vmatmul.msk.f32.vlgmr.msra.gmra.mxu0 %vm419_vm0, %v404_v10  ;;  %3666 = vmatmul.msk.f32.vlgmr.msra.gmra.mxu1 %vm419_vm0, %v404_v10  ;;  %v530_v15 = vld [vmem:[%s4852_s29 + $0x38] sm:$0xff]  ;;  %v523_v16 = vld [vmem:[%s4852_s29] sm:$0xff]  ;;  %v522_v24 = vld [vmem:[%s6693_s4 + $0x10] sm:$0xff] }
  0x37   : > { %3667 = vmatmul.msk.f32.vlgmr.msra.gmra.mxu2 %vm419_vm0, %v404_v10  ;;  %3668 = vmatmul.msk.f32.vlgmr.msra.gmra.mxu3 %vm419_vm0, %v404_v10  ;;  %v526_v19 = vld [vmem:[%s4852_s29 + $0x18] sm:$0xff]  ;;  %v532_v23 = vld [vmem:[%s6694_s5 + $0x8] sm:$0xff]  ;;  %s4624_s29 = sshra.s32 %s3535_s12, 4  ;;  %s4625_s29 = int_to_ptr.hbm [resolvable:$true] %s4624_s29 }
  0x38   : > { %573 = vmatpush.msrb.mxu0 %v527_v11  ;;  %599 = vmatpush.msrb.mxu1 %v528_v12  ;;  %v520_v20 = vld [vmem:[%s6693_s4] sm:$0xff]  ;;  %v3490_v26 = vld [vmem:[%s6696_s7 + $0x8] sm:$0xff]  ;;  %s4626_s30 = scalar_lea.hbm %s4625_s29, 64  ;;  %p4631_p7 = scmp.lt.s32.totalorder %s4625_s29, %s6697_s8 }
  0x39   : > { %625 = vmatpush.msrb.mxu2 %v529_v13  ;;  %651 = vmatpush.msrb.mxu3 %v530_v15  ;;  %v531_v21 = vld [vmem:[%s6694_s5] sm:$0xff]  ;;  %p4627_p4 = scmp.ne.s32.totalorder %s4625_s29, %s4626_s30  ;;  %p4632_p8 = scmp.lt.s32.totalorder %s4630_s17, %s4626_s30 }
  0x3a   : > { %416 = vperm.xlu0 %4027, %v413_v14   ;;  %574 = vmatpush.msrb.mxu0 %v523_v16  ;;  %v3489_v25 = vld [vmem:[%s6696_s7] sm:$0xff] }
  0x3b   : > { %600 = vmatpush.msrb.mxu1 %v524_v17  ;;  %626 = vmatpush.msrb.mxu2 %v525_v18  ;;  %p4628_p5 = pnand %p4627_p4, %p4800_p9  ;;  %p4633_p10 = por %p4632_p8, %p4631_p7 }
  0x3c   : > { %652 = vmatpush.msrb.mxu3 %v526_v19 }
  0x3d   : > { %p4629_p6 = pneg %p4628_p5 }
  0x3e   : > { %3669 = vmatmul.msk.f32.vlgmr.msrb.gmra.mxu0 %vm419_vm0, %v520_v20  ;;  %3672 = vmatmul.msk.f32.vlgmr.msrb.gmra.mxu1 %vm419_vm0, %v520_v20 }
  0x3f   : > { %3675 = vmatmul.msk.f32.vlgmr.msrb.gmra.mxu2 %vm419_vm0, %v520_v20  ;;  %3678 = vmatmul.msk.f32.vlgmr.msrb.gmra.mxu3 %vm419_vm0, %v520_v20  ;;  %p4634_p13 = pnand %p4633_p10, %p4629_p6 }
  0x42   : > { %536 = vperm.xlu0 %4027, %v531_v21  }
  0x46   : > { %3670 = vmatmul.msk.f32.gmra.mxu0 %vm419_vm0, %v521_v22  ;;  %3673 = vmatmul.msk.f32.gmra.mxu1 %vm419_vm0, %v521_v22 }
  0x47   : > { %3676 = vmatmul.msk.f32.gmra.mxu2 %vm419_vm0, %v521_v22  ;;  %3679 = vmatmul.msk.f32.gmra.mxu3 %vm419_vm0, %v521_v22 }
  0x4a   : > { %541 = vperm.xlu0 %4027, %v532_v23  }
  0x4e   : > { %3671 = vmatmul.msk.f32.gmra.mxu0 %vm419_vm0, %v522_v24  ;;  %3674 = vmatmul.msk.f32.gmra.mxu1 %vm419_vm0, %v522_v24 }
  0x4f   : > { %3677 = vmatmul.msk.f32.gmra.mxu2 %vm419_vm0, %v522_v24  ;;  %3680 = vmatmul.msk.f32.gmra.mxu3 %vm419_vm0, %v522_v24 }
  0x52   : > { %3493 = vperm.xlu0 %4027, %v3489_v25  }
  0x5a   : > { %3498 = vperm.xlu0 %4027, %v3490_v26  }
  0xa4   : > { %v547_v27 = vpop.permute.xlu0 %546 }
  0xac   : > { %v417_v28 = vpop.permute.xlu0 %416 }
  0xb3   : > { %v440_v29 = vpop.f32.mrf.mxu0  ;;  %v460_v31 = vpop.f32.mrf.mxu1 }
  0xb4   : > { %v441_v30 = vadd.f32 %v440_v29, %v417_v28  ;;  %v461_v32 = vadd.f32 %v460_v31, %v417_v28 }
  0xb6   : > { %1003 = vmatpush.msra.mxu0 %v441_v30  ;;  %1212 = vmatpush.msra.mxu1 %v461_v32 }
  0xba   : > { %v480_v33 = vpop.f32.mrf.mxu2  ;;  %v500_v35 = vpop.f32.mrf.mxu3 }
  0xbb   : > { %v481_v34 = vadd.f32 %v480_v33, %v417_v28  ;;  %v4912_v36 = vpop.f32.mrf.mxu0  ;;  %v501_v37 = vadd.f32 %v500_v35, %v417_v28  ;;  %v4920_v45 = vpop.f32.mrf.mxu1 }
  0xbc   : > { %6947 = vst [vmem:[#allocation19_spill] sm:$0xff] %v4912_v36 }
  0xbd   : > { %1421 = vmatpush.msra.mxu2 %v481_v34  ;;  %1630 = vmatpush.msra.mxu3 %v501_v37  ;;  %6951 = vst [vmem:[#allocation23_spill] sm:$0xff] %v4920_v45 }
  0xc2   : > { %v4914_v38 = vpop.f32.mrf.mxu2  ;;  %v4922_v46 = vpop.f32.mrf.mxu3 }
  0xc3   : > { %6948 = vst [vmem:[#allocation20_spill] sm:$0xff] %v4914_v38  ;;  %v4916_v39 = vpop.f32.mrf.mxu0  ;;  %v4924_v47 = vpop.f32.mrf.mxu1 }
  0xc4   : > { %6949 = vst [vmem:[#allocation21_spill] sm:$0xff] %v4916_v39 }
  0xc5   : > { %6952 = vst [vmem:[#allocation24_spill] sm:$0xff] %v4922_v46 }
  0xc6   : > { %6953 = vst [vmem:[#allocation25_spill] sm:$0xff] %v4924_v47 }
  0xca   : > { %v4918_v40 = vpop.f32.mrf.mxu2  ;;  %v4926_v48 = vpop.f32.mrf.mxu3 }
  0xcb   : > { %6950 = vst [vmem:[#allocation22_spill] sm:$0xff] %v4918_v40  ;;  %v582_v41 = vpop.f32.mrf.mxu0  ;;  %v608_v49 = vpop.f32.mrf.mxu1 }
  0xcc   : > { %v583_v42 = vadd.f32 %v582_v41, %v547_v27  ;;  %6954 = vst [vmem:[#allocation26_spill] sm:$0xff] %v4926_v48  ;;  %v609_v50 = vadd.f32 %v608_v49, %v547_v27 }
  0xce   : > { %667 = vxpose.xlu1.b32.start.end [1/1] (short) %v583_v42, 128 }
  0xd2   : > { %v634_v43 = vpop.f32.mrf.mxu2  ;;  %v660_v51 = vpop.f32.mrf.mxu3 }
  0xd3   : > { %v635_v44 = vadd.f32 %v634_v43, %v547_v27  ;;  %v661_v52 = vadd.f32 %v660_v51, %v547_v27 }
  0xd5   : > { %731 = vxpose.xlu2.b32.start.end [1/1] (short) %v635_v44, 128 }
 0x14e   : > { %699 = vxpose.xlu1.b32.start.end [1/1] (short) %v609_v50, 128 }
 0x155   : > { %763 = vxpose.xlu2.b32.start.end [1/1] (short) %v661_v52, 128 }
 0x172   : > { %v683_v53 = vpop.trf.xlu1 }
 0x173   : > { %3681 = vmatmul.msk.f32.vlgmr.msra.gmra.mxu0 %vm795_vm1, %v683_v53  ;;  %3745 = vmatmul.msk.f32.vlgmr.msra.gmra.mxu1 %vm795_vm1, %v683_v53 }
 0x174   : > { %3809 = vmatmul.msk.f32.vlgmr.msra.gmra.mxu2 %vm795_vm1, %v683_v53  ;;  %3873 = vmatmul.msk.f32.vlgmr.msra.gmra.mxu3 %vm795_vm1, %v683_v53 }
 0x17a   : > { %v684_v54 = vpop.trf.xlu1 }
 0x17b   : > { %3682 = vmatmul.msk.f32.gmra.mxu0 %vm795_vm1, %v684_v54  ;;  %3746 = vmatmul.msk.f32.gmra.mxu1 %vm795_vm1, %v684_v54 }
 0x17c   : > { %3810 = vmatmul.msk.f32.gmra.mxu2 %vm795_vm1, %v684_v54  ;;  %3874 = vmatmul.msk.f32.gmra.mxu3 %vm795_vm1, %v684_v54 }
 0x182   : > { %v685_v55 = vpop.trf.xlu1 }
 0x183   : > { %3683 = vmatmul.msk.f32.gmra.mxu0 %vm795_vm1, %v685_v55  ;;  %3747 = vmatmul.msk.f32.gmra.mxu1 %vm795_vm1, %v685_v55 }
 0x184   : > { %3811 = vmatmul.msk.f32.gmra.mxu2 %vm795_vm1, %v685_v55  ;;  %3875 = vmatmul.msk.f32.gmra.mxu3 %vm795_vm1, %v685_v55 }
 0x18a   : > { %v686_v56 = vpop.trf.xlu1 }
 0x18b   : > { %3684 = vmatmul.msk.f32.gmra.mxu0 %vm795_vm1, %v686_v56  ;;  %3748 = vmatmul.msk.f32.gmra.mxu1 %vm795_vm1, %v686_v56 }
 0x18c   : > { %3812 = vmatmul.msk.f32.gmra.mxu2 %vm795_vm1, %v686_v56  ;;  %3876 = vmatmul.msk.f32.gmra.mxu3 %vm795_vm1, %v686_v56 }
 0x192   : > { %v687_v57 = vpop.trf.xlu1 }
 0x193   : > { %3685 = vmatmul.msk.f32.gmra.mxu0 %vm795_vm1, %v687_v57  ;;  %3749 = vmatmul.msk.f32.gmra.mxu1 %vm795_vm1, %v687_v57 }
 0x194   : > { %3813 = vmatmul.msk.f32.gmra.mxu2 %vm795_vm1, %v687_v57  ;;  %3877 = vmatmul.msk.f32.gmra.mxu3 %vm795_vm1, %v687_v57 }
 0x19a   : > { %v688_v58 = vpop.trf.xlu1 }
 0x19b   : > { %3686 = vmatmul.msk.f32.gmra.mxu0 %vm795_vm1, %v688_v58  ;;  %3750 = vmatmul.msk.f32.gmra.mxu1 %vm795_vm1, %v688_v58 }
 0x19c   : > { %3814 = vmatmul.msk.f32.gmra.mxu2 %vm795_vm1, %v688_v58  ;;  %3878 = vmatmul.msk.f32.gmra.mxu3 %vm795_vm1, %v688_v58 }
 0x1a2   : > { %v689_v59 = vpop.trf.xlu1 }
 0x1a3   : > { %3687 = vmatmul.msk.f32.gmra.mxu0 %vm795_vm1, %v689_v59  ;;  %3751 = vmatmul.msk.f32.gmra.mxu1 %vm795_vm1, %v689_v59 }
 0x1a4   : > { %3815 = vmatmul.msk.f32.gmra.mxu2 %vm795_vm1, %v689_v59  ;;  %3879 = vmatmul.msk.f32.gmra.mxu3 %vm795_vm1, %v689_v59 }
 0x1aa   : > { %v690_v60 = vpop.trf.xlu1 }
 0x1ab   : > { %3688 = vmatmul.msk.f32.gmra.mxu0 %vm795_vm1, %v690_v60  ;;  %3752 = vmatmul.msk.f32.gmra.mxu1 %vm795_vm1, %v690_v60 }
 0x1ac   : > { %3816 = vmatmul.msk.f32.gmra.mxu2 %vm795_vm1, %v690_v60  ;;  %3880 = vmatmul.msk.f32.gmra.mxu3 %vm795_vm1, %v690_v60 }
 0x1b2   : > { %v691_v61 = vpop.trf.xlu1 }
 0x1b3   : > { %3689 = vmatmul.msk.f32.gmra.mxu0 %vm795_vm1, %v691_v61  ;;  %3753 = vmatmul.msk.f32.gmra.mxu1 %vm795_vm1, %v691_v61 }
 0x1b4   : > { %3817 = vmatmul.msk.f32.gmra.mxu2 %vm795_vm1, %v691_v61  ;;  %3881 = vmatmul.msk.f32.gmra.mxu3 %vm795_vm1, %v691_v61 }
 0x1ba   : > { %v692_v62 = vpop.trf.xlu1 }
 0x1bb   : > { %3690 = vmatmul.msk.f32.gmra.mxu0 %vm795_vm1, %v692_v62  ;;  %3754 = vmatmul.msk.f32.gmra.mxu1 %vm795_vm1, %v692_v62 }
 0x1bc   : > { %3818 = vmatmul.msk.f32.gmra.mxu2 %vm795_vm1, %v692_v62  ;;  %3882 = vmatmul.msk.f32.gmra.mxu3 %vm795_vm1, %v692_v62 }
 0x1c2   : > { %v693_v63 = vpop.trf.xlu1 }
 0x1c3   : > { %3691 = vmatmul.msk.f32.gmra.mxu0 %vm795_vm1, %v693_v63  ;;  %3755 = vmatmul.msk.f32.gmra.mxu1 %vm795_vm1, %v693_v63 }
 0x1c4   : > { %3819 = vmatmul.msk.f32.gmra.mxu2 %vm795_vm1, %v693_v63  ;;  %3883 = vmatmul.msk.f32.gmra.mxu3 %vm795_vm1, %v693_v63 }
 0x1ca   : > { %v694_v0 = vpop.trf.xlu1 }
 0x1cb   : > { %3692 = vmatmul.msk.f32.gmra.mxu0 %vm795_vm1, %v694_v0  ;;  %3756 = vmatmul.msk.f32.gmra.mxu1 %vm795_vm1, %v694_v0 }
 0x1cc   : > { %3820 = vmatmul.msk.f32.gmra.mxu2 %vm795_vm1, %v694_v0  ;;  %3884 = vmatmul.msk.f32.gmra.mxu3 %vm795_vm1, %v694_v0 }
 0x1d2   : > { %v695_v1 = vpop.trf.xlu1 }
 0x1d3   : > { %3693 = vmatmul.msk.f32.gmra.mxu0 %vm795_vm1, %v695_v1  ;;  %3757 = vmatmul.msk.f32.gmra.mxu1 %vm795_vm1, %v695_v1 }
 0x1d4   : > { %3821 = vmatmul.msk.f32.gmra.mxu2 %vm795_vm1, %v695_v1  ;;  %3885 = vmatmul.msk.f32.gmra.mxu3 %vm795_vm1, %v695_v1 }
 0x1da   : > { %v696_v2 = vpop.trf.xlu1 }
 0x1db   : > { %3694 = vmatmul.msk.f32.gmra.mxu0 %vm795_vm1, %v696_v2  ;;  %3758 = vmatmul.msk.f32.gmra.mxu1 %vm795_vm1, %v696_v2 }
 0x1dc   : > { %3822 = vmatmul.msk.f32.gmra.mxu2 %vm795_vm1, %v696_v2  ;;  %3886 = vmatmul.msk.f32.gmra.mxu3 %vm795_vm1, %v696_v2 }
 0x1e2   : > { %v697_v3 = vpop.trf.xlu1 }
 0x1e3   : > { %3695 = vmatmul.msk.f32.gmra.mxu0 %vm795_vm1, %v697_v3  ;;  %3759 = vmatmul.msk.f32.gmra.mxu1 %vm795_vm1, %v697_v3 }
 0x1e4   : > { %3823 = vmatmul.msk.f32.gmra.mxu2 %vm795_vm1, %v697_v3  ;;  %3887 = vmatmul.msk.f32.gmra.mxu3 %vm795_vm1, %v697_v3 }
 0x1ea   : > { %v698_v4 = vpop.trf.xlu1 }
 0x1eb   : > { %3696 = vmatmul.msk.f32.gmra.mxu0 %vm795_vm1, %v698_v4  ;;  %3760 = vmatmul.msk.f32.gmra.mxu1 %vm795_vm1, %v698_v4 }
 0x1ec   : > { %3824 = vmatmul.msk.f32.gmra.mxu2 %vm795_vm1, %v698_v4  ;;  %3888 = vmatmul.msk.f32.gmra.mxu3 %vm795_vm1, %v698_v4 }
 0x1f0   : > { %v4992_v5 = vpop.f32.mrf.mxu0  ;;  %v4994_v6 = vpop.f32.mrf.mxu1 }
 0x1f1   : > { %6955 = vst [vmem:[#allocation27_spill] sm:$0xff] %v4992_v5 }
 0x1f2   : > { %6956 = vst [vmem:[#allocation28_spill] sm:$0xff] %v4994_v6  ;;  %v715_v7 = vpop.trf.xlu1 }
 0x1f3   : > { %3697 = vmatmul.msk.f32.gmra.mxu0 %vm795_vm1, %v715_v7  ;;  %3761 = vmatmul.msk.f32.gmra.mxu1 %vm795_vm1, %v715_v7 }
 0x1f4   : > { %3825 = vmatmul.msk.f32.gmra.mxu2 %vm795_vm1, %v715_v7  ;;  %3889 = vmatmul.msk.f32.gmra.mxu3 %vm795_vm1, %v715_v7 }
 0x1f7   : > { %v5000_v8 = vpop.f32.mrf.mxu2  ;;  %v5002_v9 = vpop.f32.mrf.mxu3 }
 0x1f8   : > { %6957 = vst [vmem:[#allocation29_spill] sm:$0xff] %v5000_v8  ;;  %v5004_v10 = vpop.f32.mrf.mxu0  ;;  %v5006_v11 = vpop.f32.mrf.mxu1 }
 0x1f9   : > { %6958 = vst [vmem:[#allocation30_spill] sm:$0xff] %v5002_v9 }
 0x1fa   : > { %6959 = vst [vmem:[#allocation31_spill] sm:$0xff] %v5004_v10  ;;  %v716_v12 = vpop.trf.xlu1 }
 0x1fb   : > { %6960 = vst [vmem:[#allocation32_spill] sm:$0xff] %v5006_v11  ;;  %3698 = vmatmul.msk.f32.gmra.mxu0 %vm795_vm1, %v716_v12  ;;  %3762 = vmatmul.msk.f32.gmra.mxu1 %vm795_vm1, %v716_v12 }
 0x1fc   : > { %3826 = vmatmul.msk.f32.gmra.mxu2 %vm795_vm1, %v716_v12  ;;  %3890 = vmatmul.msk.f32.gmra.mxu3 %vm795_vm1, %v716_v12 }
 0x1ff   : > { %v5012_v13 = vpop.f32.mrf.mxu2  ;;  %v5014_v14 = vpop.f32.mrf.mxu3 }
 0x200   : > { %6961 = vst [vmem:[#allocation33_spill] sm:$0xff] %v5012_v13  ;;  %v5016_v15 = vpop.f32.mrf.mxu0  ;;  %v5018_v16 = vpop.f32.mrf.mxu1 }
 0x201   : > { %6962 = vst [vmem:[#allocation34_spill] sm:$0xff] %v5014_v14 }
 0x202   : > { %6963 = vst [vmem:[#allocation35_spill] sm:$0xff] %v5016_v15  ;;  %v717_v17 = vpop.trf.xlu1 }
 0x203   : > { %6964 = vst [vmem:[#allocation36_spill] sm:$0xff] %v5018_v16  ;;  %3699 = vmatmul.msk.f32.gmra.mxu0 %vm795_vm1, %v717_v17  ;;  %3763 = vmatmul.msk.f32.gmra.mxu1 %vm795_vm1, %v717_v17 }
 0x204   : > { %3827 = vmatmul.msk.f32.gmra.mxu2 %vm795_vm1, %v717_v17  ;;  %3891 = vmatmul.msk.f32.gmra.mxu3 %vm795_vm1, %v717_v17 }
 0x207   : > { %v5024_v18 = vpop.f32.mrf.mxu2  ;;  %v5026_v19 = vpop.f32.mrf.mxu3 }
 0x208   : > { %6965 = vst [vmem:[#allocation37_spill] sm:$0xff] %v5024_v18  ;;  %v5028_v20 = vpop.f32.mrf.mxu0  ;;  %v5030_v21 = vpop.f32.mrf.mxu1 }
 0x209   : > { %6966 = vst [vmem:[#allocation38_spill] sm:$0xff] %v5026_v19 }
 0x20a   : > { %6967 = vst [vmem:[#allocation39_spill] sm:$0xff] %v5028_v20  ;;  %v718_v22 = vpop.trf.xlu1 }
 0x20b   : > { %6968 = vst [vmem:[#allocation40_spill] sm:$0xff] %v5030_v21  ;;  %3700 = vmatmul.msk.f32.gmra.mxu0 %vm795_vm1, %v718_v22  ;;  %3764 = vmatmul.msk.f32.gmra.mxu1 %vm795_vm1, %v718_v22 }
 0x20c   : > { %3828 = vmatmul.msk.f32.gmra.mxu2 %vm795_vm1, %v718_v22  ;;  %3892 = vmatmul.msk.f32.gmra.mxu3 %vm795_vm1, %v718_v22 }
 0x20f   : > { %v5036_v23 = vpop.f32.mrf.mxu2  ;;  %v5038_v24 = vpop.f32.mrf.mxu3 }
 0x210   : > { %6969 = vst [vmem:[#allocation41_spill] sm:$0xff] %v5036_v23  ;;  %v5040_v25 = vpop.f32.mrf.mxu0  ;;  %v5042_v26 = vpop.f32.mrf.mxu1 }
 0x211   : > { %6970 = vst [vmem:[#allocation42_spill] sm:$0xff] %v5038_v24 }
 0x212   : > { %6971 = vst [vmem:[#allocation43_spill] sm:$0xff] %v5040_v25  ;;  %v719_v27 = vpop.trf.xlu1 }
 0x213   : > { %6972 = vst [vmem:[#allocation44_spill] sm:$0xff] %v5042_v26  ;;  %3701 = vmatmul.msk.f32.gmra.mxu0 %vm795_vm1, %v719_v27  ;;  %3765 = vmatmul.msk.f32.gmra.mxu1 %vm795_vm1, %v719_v27 }
 0x214   : > { %3829 = vmatmul.msk.f32.gmra.mxu2 %vm795_vm1, %v719_v27  ;;  %3893 = vmatmul.msk.f32.gmra.mxu3 %vm795_vm1, %v719_v27 }
 0x217   : > { %v5048_v28 = vpop.f32.mrf.mxu2  ;;  %v5050_v29 = vpop.f32.mrf.mxu3 }
 0x218   : > { %6973 = vst [vmem:[#allocation45_spill] sm:$0xff] %v5048_v28  ;;  %v5052_v30 = vpop.f32.mrf.mxu0  ;;  %v5054_v31 = vpop.f32.mrf.mxu1 }
 0x219   : > { %6974 = vst [vmem:[#allocation46_spill] sm:$0xff] %v5050_v29 }
 0x21a   : > { %6975 = vst [vmem:[#allocation47_spill] sm:$0xff] %v5052_v30  ;;  %v720_v32 = vpop.trf.xlu1 }
 0x21b   : > { %6976 = vst [vmem:[#allocation48_spill] sm:$0xff] %v5054_v31  ;;  %3702 = vmatmul.msk.f32.gmra.mxu0 %vm795_vm1, %v720_v32  ;;  %3766 = vmatmul.msk.f32.gmra.mxu1 %vm795_vm1, %v720_v32 }
 0x21c   : > { %3830 = vmatmul.msk.f32.gmra.mxu2 %vm795_vm1, %v720_v32  ;;  %3894 = vmatmul.msk.f32.gmra.mxu3 %vm795_vm1, %v720_v32 }
 0x21f   : > { %v5060_v33 = vpop.f32.mrf.mxu2  ;;  %v5062_v34 = vpop.f32.mrf.mxu3 }
 0x220   : > { %6977 = vst [vmem:[#allocation49_spill] sm:$0xff] %v5060_v33  ;;  %v5064_v35 = vpop.f32.mrf.mxu0  ;;  %v5066_v37 = vpop.f32.mrf.mxu1 }
 0x221   : > { %6978 = vst [vmem:[#allocation50_spill] sm:$0xff] %v5062_v34 }
 0x222   : > { %6979 = vst [vmem:[#allocation51_spill] sm:$0xff] %v5064_v35  ;;  %v721_v41 = vpop.trf.xlu1 }
 0x223   : > { %6980 = vst [vmem:[#allocation52_spill] sm:$0xff] %v5066_v37  ;;  %3703 = vmatmul.msk.f32.gmra.mxu0 %vm795_vm1, %v721_v41  ;;  %3767 = vmatmul.msk.f32.gmra.mxu1 %vm795_vm1, %v721_v41 }
 0x224   : > { %3831 = vmatmul.msk.f32.gmra.mxu2 %vm795_vm1, %v721_v41  ;;  %3895 = vmatmul.msk.f32.gmra.mxu3 %vm795_vm1, %v721_v41  ;;  %v747_v41 = vpop.trf.xlu2 }
 0x227   : > { %v5072_v42 = vpop.f32.mrf.mxu2  ;;  %v5074_v43 = vpop.f32.mrf.mxu3 }
 0x228   : > { %6981 = vst [vmem:[#allocation53_spill] sm:$0xff] %v5072_v42  ;;  %v5076_v44 = vpop.f32.mrf.mxu0  ;;  %v5078_v49 = vpop.f32.mrf.mxu1 }
 0x229   : > { %6982 = vst [vmem:[#allocation54_spill] sm:$0xff] %v5074_v43 }
 0x22a   : > { %6983 = vst [vmem:[#allocation55_spill] sm:$0xff] %v5076_v44  ;;  %v722_v50 = vpop.trf.xlu1 }
 0x22b   : > { %6984 = vst [vmem:[#allocation56_spill] sm:$0xff] %v5078_v49  ;;  %3704 = vmatmul.msk.f32.gmra.mxu0 %vm795_vm1, %v722_v50  ;;  %3768 = vmatmul.msk.f32.gmra.mxu1 %vm795_vm1, %v722_v50 }
 0x22c   : > { %3832 = vmatmul.msk.f32.gmra.mxu2 %vm795_vm1, %v722_v50  ;;  %3896 = vmatmul.msk.f32.gmra.mxu3 %vm795_vm1, %v722_v50  ;;  %v748_v48 = vpop.trf.xlu2 }
 0x22f   : > { %v5084_v51 = vpop.f32.mrf.mxu2  ;;  %v5086_v52 = vpop.f32.mrf.mxu3 }
 0x230   : > { %6985 = vst [vmem:[#allocation57_spill] sm:$0xff] %v5084_v51  ;;  %v5088_v53 = vpop.f32.mrf.mxu0  ;;  %v5090_v54 = vpop.f32.mrf.mxu1 }
 0x231   : > { %6986 = vst [vmem:[#allocation58_spill] sm:$0xff] %v5086_v52 }
 0x232   : > { %6987 = vst [vmem:[#allocation59_spill] sm:$0xff] %v5088_v53  ;;  %v723_v55 = vpop.trf.xlu1 }
 0x233   : > { %6988 = vst [vmem:[#allocation60_spill] sm:$0xff] %v5090_v54  ;;  %3705 = vmatmul.msk.f32.gmra.mxu0 %vm795_vm1, %v723_v55  ;;  %3769 = vmatmul.msk.f32.gmra.mxu1 %vm795_vm1, %v723_v55 }
 0x234   : > { %3833 = vmatmul.msk.f32.gmra.mxu2 %vm795_vm1, %v723_v55  ;;  %3897 = vmatmul.msk.f32.gmra.mxu3 %vm795_vm1, %v723_v55  ;;  %v749_v45 = vpop.trf.xlu2 }
 0x237   : > { %v5096_v56 = vpop.f32.mrf.mxu2  ;;  %v5098_v57 = vpop.f32.mrf.mxu3 }
 0x238   : > { %6989 = vst [vmem:[#allocation61_spill] sm:$0xff] %v5096_v56  ;;  %v5100_v58 = vpop.f32.mrf.mxu0  ;;  %v5102_v59 = vpop.f32.mrf.mxu1 }
 0x239   : > { %6990 = vst [vmem:[#allocation62_spill] sm:$0xff] %v5098_v57 }
 0x23a   : > { %6991 = vst [vmem:[#allocation63_spill] sm:$0xff] %v5100_v58  ;;  %v724_v60 = vpop.trf.xlu1 }
 0x23b   : > { %6992 = vst [vmem:[#allocation64_spill] sm:$0xff] %v5102_v59  ;;  %3706 = vmatmul.msk.f32.gmra.mxu0 %vm795_vm1, %v724_v60  ;;  %3770 = vmatmul.msk.f32.gmra.mxu1 %vm795_vm1, %v724_v60 }
 0x23c   : > { %3834 = vmatmul.msk.f32.gmra.mxu2 %vm795_vm1, %v724_v60  ;;  %3898 = vmatmul.msk.f32.gmra.mxu3 %vm795_vm1, %v724_v60 }
 0x23f   : > { %v5108_v61 = vpop.f32.mrf.mxu2  ;;  %v5110_v62 = vpop.f32.mrf.mxu3 }
 0x240   : > { %6993 = vst [vmem:[#allocation65_spill] sm:$0xff] %v5108_v61  ;;  %v5112_v63 = vpop.f32.mrf.mxu0  ;;  %v5114_v0 = vpop.f32.mrf.mxu1 }
 0x241   : > { %6994 = vst [vmem:[#allocation66_spill] sm:$0xff] %v5110_v62 }
 0x242   : > { %6995 = vst [vmem:[#allocation67_spill] sm:$0xff] %v5112_v63  ;;  %v725_v1 = vpop.trf.xlu1 }
 0x243   : > { %6996 = vst [vmem:[#allocation68_spill] sm:$0xff] %v5114_v0  ;;  %3707 = vmatmul.msk.f32.gmra.mxu0 %vm795_vm1, %v725_v1  ;;  %3771 = vmatmul.msk.f32.gmra.mxu1 %vm795_vm1, %v725_v1 }
 0x244   : > { %3835 = vmatmul.msk.f32.gmra.mxu2 %vm795_vm1, %v725_v1  ;;  %3899 = vmatmul.msk.f32.gmra.mxu3 %vm795_vm1, %v725_v1 }
 0x247   : > { %v5120_v2 = vpop.f32.mrf.mxu2  ;;  %v5122_v3 = vpop.f32.mrf.mxu3 }
 0x248   : > { %6997 = vst [vmem:[#allocation69_spill] sm:$0xff] %v5120_v2  ;;  %v5124_v4 = vpop.f32.mrf.mxu0  ;;  %v5126_v7 = vpop.f32.mrf.mxu1 }
 0x249   : > { %6998 = vst [vmem:[#allocation70_spill] sm:$0xff] %v5122_v3 }
 0x24a   : > { %6999 = vst [vmem:[#allocation71_spill] sm:$0xff] %v5124_v4  ;;  %v726_v12 = vpop.trf.xlu1 }
 0x24b   : > { %7000 = vst [vmem:[#allocation72_spill] sm:$0xff] %v5126_v7  ;;  %3708 = vmatmul.msk.f32.gmra.mxu0 %vm795_vm1, %v726_v12  ;;  %3772 = vmatmul.msk.f32.gmra.mxu1 %vm795_vm1, %v726_v12 }
 0x24c   : > { %3836 = vmatmul.msk.f32.gmra.mxu2 %vm795_vm1, %v726_v12  ;;  %3900 = vmatmul.msk.f32.gmra.mxu3 %vm795_vm1, %v726_v12 }
 0x24f   : > { %v5132_v17 = vpop.f32.mrf.mxu2  ;;  %v5134_v22 = vpop.f32.mrf.mxu3 }
 0x250   : > { %7001 = vst [vmem:[#allocation73_spill] sm:$0xff] %v5132_v17  ;;  %v5136_v27 = vpop.f32.mrf.mxu0  ;;  %v5138_v32 = vpop.f32.mrf.mxu1 }
 0x251   : > { %7002 = vst [vmem:[#allocation74_spill] sm:$0xff] %v5134_v22 }
 0x252   : > { %7003 = vst [vmem:[#allocation75_spill] sm:$0xff] %v5136_v27  ;;  %v727_v50 = vpop.trf.xlu1 }
 0x253   : > { %7004 = vst [vmem:[#allocation76_spill] sm:$0xff] %v5138_v32  ;;  %3709 = vmatmul.msk.f32.gmra.mxu0 %vm795_vm1, %v727_v50  ;;  %3773 = vmatmul.msk.f32.gmra.mxu1 %vm795_vm1, %v727_v50 }
 0x254   : > { %3837 = vmatmul.msk.f32.gmra.mxu2 %vm795_vm1, %v727_v50  ;;  %3901 = vmatmul.msk.f32.gmra.mxu3 %vm795_vm1, %v727_v50 }
 0x257   : > { %v5144_v55 = vpop.f32.mrf.mxu2  ;;  %v5146_v60 = vpop.f32.mrf.mxu3 }
 0x258   : > { %7005 = vst [vmem:[#allocation77_spill] sm:$0xff] %v5144_v55  ;;  %v5148_v1 = vpop.f32.mrf.mxu0  ;;  %v5150_v12 = vpop.f32.mrf.mxu1 }
 0x259   : > { %7006 = vst [vmem:[#allocation78_spill] sm:$0xff] %v5146_v60  ;;  %v750_v60 = vpop.trf.xlu2 }
 0x25a   : > { %7007 = vst [vmem:[#allocation79_spill] sm:$0xff] %v5148_v1  ;;  %v728_v46 = vpop.trf.xlu1 }
 0x25b   : > { %7008 = vst [vmem:[#allocation80_spill] sm:$0xff] %v5150_v12  ;;  %3710 = vmatmul.msk.f32.gmra.mxu0 %vm795_vm1, %v728_v46  ;;  %3774 = vmatmul.msk.f32.gmra.mxu1 %vm795_vm1, %v728_v46 }
 0x25c   : > { %3838 = vmatmul.msk.f32.gmra.mxu2 %vm795_vm1, %v728_v46  ;;  %3902 = vmatmul.msk.f32.gmra.mxu3 %vm795_vm1, %v728_v46 }
 0x25f   : > { %v5156_v40 = vpop.f32.mrf.mxu2  ;;  %v5158_v50 = vpop.f32.mrf.mxu3 }
 0x260   : > { %7009 = vst [vmem:[#allocation81_spill] sm:$0xff] %v5156_v40  ;;  %v5160_v38 = vpop.f32.mrf.mxu0  ;;  %v5162_v47 = vpop.f32.mrf.mxu1 }
 0x261   : > { %7010 = vst [vmem:[#allocation82_spill] sm:$0xff] %v5158_v50 }
 0x262   : > { %7011 = vst [vmem:[#allocation83_spill] sm:$0xff] %v5160_v38  ;;  %v729_v39 = vpop.trf.xlu1 }
 0x263   : > { %7012 = vst [vmem:[#allocation84_spill] sm:$0xff] %v5162_v47  ;;  %3711 = vmatmul.msk.f32.gmra.mxu0 %vm795_vm1, %v729_v39  ;;  %3775 = vmatmul.msk.f32.gmra.mxu1 %vm795_vm1, %v729_v39 }
 0x264   : > { %3839 = vmatmul.msk.f32.gmra.mxu2 %vm795_vm1, %v729_v39  ;;  %3903 = vmatmul.msk.f32.gmra.mxu3 %vm795_vm1, %v729_v39 }
 0x267   : > { %v5168_v36 = vpop.f32.mrf.mxu2  ;;  %v5170_v46 = vpop.f32.mrf.mxu3 }
 0x268   : > { %7013 = vst [vmem:[#allocation85_spill] sm:$0xff] %v5168_v36  ;;  %v5172_v40 = vpop.f32.mrf.mxu0  ;;  %v5174_v50 = vpop.f32.mrf.mxu1 }
 0x269   : > { %7014 = vst [vmem:[#allocation86_spill] sm:$0xff] %v5170_v46 }
 0x26a   : > { %7015 = vst [vmem:[#allocation87_spill] sm:$0xff] %v5172_v40  ;;  %v730_v55 = vpop.trf.xlu1  ;;  %v751_v40 = vpop.trf.xlu2 }
 0x26b   : > { %7016 = vst [vmem:[#allocation88_spill] sm:$0xff] %v5174_v50  ;;  %3712 = vmatmul.msk.f32.gmra.mxu0 %vm795_vm1, %v730_v55  ;;  %3776 = vmatmul.msk.f32.gmra.mxu1 %vm795_vm1, %v730_v55 }
 0x26c   : > { %3840 = vmatmul.msk.f32.gmra.mxu2 %vm795_vm1, %v730_v55  ;;  %3904 = vmatmul.msk.f32.gmra.mxu3 %vm795_vm1, %v730_v55 }
 0x26f   : > { %v5180_v22 = vpop.f32.mrf.mxu2  ;;  %v5182_v39 = vpop.f32.mrf.mxu3 }
 0x270   : > { %7017 = vst [vmem:[#allocation89_spill] sm:$0xff] %v5180_v22  ;;  %v5184_v36 = vpop.f32.mrf.mxu0  ;;  %v5186_v46 = vpop.f32.mrf.mxu1 }
 0x271   : > { %7018 = vst [vmem:[#allocation90_spill] sm:$0xff] %v5182_v39 }
 0x272   : > { %7019 = vst [vmem:[#allocation91_spill] sm:$0xff] %v5184_v36  ;;  %v752_v36 = vpop.trf.xlu2 }
 0x273   : > { %7020 = vst [vmem:[#allocation92_spill] sm:$0xff] %v5186_v46  ;;  %3713 = vmatmul.msk.f32.gmra.mxu0 %vm795_vm1, %v747_v41  ;;  %3777 = vmatmul.msk.f32.gmra.mxu1 %vm795_vm1, %v747_v41 }
 0x274   : > { %3841 = vmatmul.msk.f32.gmra.mxu2 %vm795_vm1, %v747_v41  ;;  %3905 = vmatmul.msk.f32.gmra.mxu3 %vm795_vm1, %v747_v41 }
 0x277   : > { %v5192_v50 = vpop.f32.mrf.mxu2  ;;  %v5194_v55 = vpop.f32.mrf.mxu3 }
 0x278   : > { %7021 = vst [vmem:[#allocation93_spill] sm:$0xff] %v5192_v50  ;;  %v5196_v22 = vpop.f32.mrf.mxu0  ;;  %v5198_v39 = vpop.f32.mrf.mxu1 }
 0x279   : > { %7022 = vst [vmem:[#allocation94_spill] sm:$0xff] %v5194_v55 }
 0x27a   : > { %7023 = vst [vmem:[#allocation95_spill] sm:$0xff] %v5196_v22  ;;  %v753_v22 = vpop.trf.xlu2 }
 0x27b   : > { %7024 = vst [vmem:[#allocation96_spill] sm:$0xff] %v5198_v39  ;;  %3714 = vmatmul.msk.f32.gmra.mxu0 %vm795_vm1, %v748_v48  ;;  %3778 = vmatmul.msk.f32.gmra.mxu1 %vm795_vm1, %v748_v48 }
 0x27c   : > { %3842 = vmatmul.msk.f32.gmra.mxu2 %vm795_vm1, %v748_v48  ;;  %3906 = vmatmul.msk.f32.gmra.mxu3 %vm795_vm1, %v748_v48 }
 0x27f   : > { %v5204_v46 = vpop.f32.mrf.mxu2  ;;  %v5206_v41 = vpop.f32.mrf.mxu3 }
 0x280   : > { %7025 = vst [vmem:[#allocation97_spill] sm:$0xff] %v5204_v46  ;;  %v5208_v50 = vpop.f32.mrf.mxu0  ;;  %v5210_v55 = vpop.f32.mrf.mxu1 }
 0x281   : > { %7026 = vst [vmem:[#allocation98_spill] sm:$0xff] %v5206_v41 }
 0x282   : > { %7027 = vst [vmem:[#allocation99_spill] sm:$0xff] %v5208_v50  ;;  %v754_v50 = vpop.trf.xlu2 }
 0x283   : > { %7028 = vst [vmem:[#allocation100_spill] sm:$0xff] %v5210_v55  ;;  %3715 = vmatmul.msk.f32.gmra.mxu0 %vm795_vm1, %v749_v45  ;;  %3779 = vmatmul.msk.f32.gmra.mxu1 %vm795_vm1, %v749_v45 }
 0x284   : > { %3843 = vmatmul.msk.f32.gmra.mxu2 %vm795_vm1, %v749_v45  ;;  %3907 = vmatmul.msk.f32.gmra.mxu3 %vm795_vm1, %v749_v45 }
 0x287   : > { %v5216_v39 = vpop.f32.mrf.mxu2  ;;  %v5218_v48 = vpop.f32.mrf.mxu3 }
 0x288   : > { %7029 = vst [vmem:[#allocation101_spill] sm:$0xff] %v5216_v39  ;;  %v5220_v46 = vpop.f32.mrf.mxu0  ;;  %v5222_v41 = vpop.f32.mrf.mxu1 }
 0x289   : > { %7030 = vst [vmem:[#allocation102_spill] sm:$0xff] %v5218_v48 }
 0x28a   : > { %7031 = vst [vmem:[#allocation103_spill] sm:$0xff] %v5220_v46  ;;  %v755_v46 = vpop.trf.xlu2 }
 0x28b   : > { %7032 = vst [vmem:[#allocation104_spill] sm:$0xff] %v5222_v41  ;;  %3716 = vmatmul.msk.f32.gmra.mxu0 %vm795_vm1, %v750_v60  ;;  %3780 = vmatmul.msk.f32.gmra.mxu1 %vm795_vm1, %v750_v60 }
 0x28c   : > { %3844 = vmatmul.msk.f32.gmra.mxu2 %vm795_vm1, %v750_v60  ;;  %3908 = vmatmul.msk.f32.gmra.mxu3 %vm795_vm1, %v750_v60 }
 0x28f   : > { %v5228_v55 = vpop.f32.mrf.mxu2  ;;  %v5230_v45 = vpop.f32.mrf.mxu3 }
 0x290   : > { %7033 = vst [vmem:[#allocation105_spill] sm:$0xff] %v5228_v55  ;;  %v5232_v39 = vpop.f32.mrf.mxu0  ;;  %v5234_v48 = vpop.f32.mrf.mxu1 }
 0x291   : > { %7034 = vst [vmem:[#allocation106_spill] sm:$0xff] %v5230_v45 }
 0x292   : > { %7035 = vst [vmem:[#allocation107_spill] sm:$0xff] %v5232_v39  ;;  %v756_v39 = vpop.trf.xlu2 }
 0x293   : > { %7036 = vst [vmem:[#allocation108_spill] sm:$0xff] %v5234_v48  ;;  %3717 = vmatmul.msk.f32.gmra.mxu0 %vm795_vm1, %v751_v40  ;;  %3781 = vmatmul.msk.f32.gmra.mxu1 %vm795_vm1, %v751_v40 }
 0x294   : > { %3845 = vmatmul.msk.f32.gmra.mxu2 %vm795_vm1, %v751_v40  ;;  %3909 = vmatmul.msk.f32.gmra.mxu3 %vm795_vm1, %v751_v40 }
 0x297   : > { %v5240_v41 = vpop.f32.mrf.mxu2  ;;  %v5242_v60 = vpop.f32.mrf.mxu3 }
 0x298   : > { %7037 = vst [vmem:[#allocation109_spill] sm:$0xff] %v5240_v41  ;;  %v5244_v55 = vpop.f32.mrf.mxu0  ;;  %v5246_v45 = vpop.f32.mrf.mxu1 }
 0x299   : > { %7038 = vst [vmem:[#allocation110_spill] sm:$0xff] %v5242_v60 }
 0x29a   : > { %7039 = vst [vmem:[#allocation111_spill] sm:$0xff] %v5244_v55  ;;  %v757_v55 = vpop.trf.xlu2 }
 0x29b   : > { %7040 = vst [vmem:[#allocation112_spill] sm:$0xff] %v5246_v45  ;;  %3718 = vmatmul.msk.f32.gmra.mxu0 %vm795_vm1, %v752_v36  ;;  %3782 = vmatmul.msk.f32.gmra.mxu1 %vm795_vm1, %v752_v36 }
 0x29c   : > { %3846 = vmatmul.msk.f32.gmra.mxu2 %vm795_vm1, %v752_v36  ;;  %3910 = vmatmul.msk.f32.gmra.mxu3 %vm795_vm1, %v752_v36 }
 0x29f   : > { %v5252_v48 = vpop.f32.mrf.mxu2  ;;  %v5254_v40 = vpop.f32.mrf.mxu3 }
 0x2a0   : > { %7041 = vst [vmem:[#allocation113_spill] sm:$0xff] %v5252_v48  ;;  %v5256_v41 = vpop.f32.mrf.mxu0  ;;  %v5258_v60 = vpop.f32.mrf.mxu1 }
 0x2a1   : > { %7042 = vst [vmem:[#allocation114_spill] sm:$0xff] %v5254_v40 }
 0x2a2   : > { %7043 = vst [vmem:[#allocation115_spill] sm:$0xff] %v5256_v41  ;;  %v758_v41 = vpop.trf.xlu2 }
 0x2a3   : > { %7044 = vst [vmem:[#allocation116_spill] sm:$0xff] %v5258_v60  ;;  %3719 = vmatmul.msk.f32.gmra.mxu0 %vm795_vm1, %v753_v22  ;;  %3783 = vmatmul.msk.f32.gmra.mxu1 %vm795_vm1, %v753_v22 }
 0x2a4   : > { %3847 = vmatmul.msk.f32.gmra.mxu2 %vm795_vm1, %v753_v22  ;;  %3911 = vmatmul.msk.f32.gmra.mxu3 %vm795_vm1, %v753_v22 }
 0x2a7   : > { %v5264_v45 = vpop.f32.mrf.mxu2  ;;  %v5266_v36 = vpop.f32.mrf.mxu3 }
 0x2a8   : > { %7045 = vst [vmem:[#allocation117_spill] sm:$0xff] %v5264_v45  ;;  %v5268_v48 = vpop.f32.mrf.mxu0  ;;  %v5270_v40 = vpop.f32.mrf.mxu1 }
 0x2a9   : > { %7046 = vst [vmem:[#allocation118_spill] sm:$0xff] %v5266_v36 }
 0x2aa   : > { %7047 = vst [vmem:[#allocation119_spill] sm:$0xff] %v5268_v48  ;;  %v759_v48 = vpop.trf.xlu2 }
 0x2ab   : > { %7048 = vst [vmem:[#allocation120_spill] sm:$0xff] %v5270_v40  ;;  %3720 = vmatmul.msk.f32.gmra.mxu0 %vm795_vm1, %v754_v50  ;;  %3784 = vmatmul.msk.f32.gmra.mxu1 %vm795_vm1, %v754_v50 }
 0x2ac   : > { %3848 = vmatmul.msk.f32.gmra.mxu2 %vm795_vm1, %v754_v50  ;;  %3912 = vmatmul.msk.f32.gmra.mxu3 %vm795_vm1, %v754_v50 }
 0x2af   : > { %v5276_v60 = vpop.f32.mrf.mxu2  ;;  %v5278_v22 = vpop.f32.mrf.mxu3 }
 0x2b0   : > { %7049 = vst [vmem:[#allocation121_spill] sm:$0xff] %v5276_v60  ;;  %v5280_v45 = vpop.f32.mrf.mxu0  ;;  %v5282_v36 = vpop.f32.mrf.mxu1 }
 0x2b1   : > { %7050 = vst [vmem:[#allocation122_spill] sm:$0xff] %v5278_v22 }
 0x2b2   : > { %7051 = vst [vmem:[#allocation123_spill] sm:$0xff] %v5280_v45  ;;  %v760_v45 = vpop.trf.xlu2 }
 0x2b3   : > { %7052 = vst [vmem:[#allocation124_spill] sm:$0xff] %v5282_v36  ;;  %3721 = vmatmul.msk.f32.gmra.mxu0 %vm795_vm1, %v755_v46  ;;  %3785 = vmatmul.msk.f32.gmra.mxu1 %vm795_vm1, %v755_v46 }
 0x2b4   : > { %3849 = vmatmul.msk.f32.gmra.mxu2 %vm795_vm1, %v755_v46  ;;  %3913 = vmatmul.msk.f32.gmra.mxu3 %vm795_vm1, %v755_v46 }
 0x2b7   : > { %v5288_v40 = vpop.f32.mrf.mxu2  ;;  %v5290_v50 = vpop.f32.mrf.mxu3 }
 0x2b8   : > { %7053 = vst [vmem:[#allocation125_spill] sm:$0xff] %v5288_v40  ;;  %v5292_v60 = vpop.f32.mrf.mxu0  ;;  %v5294_v22 = vpop.f32.mrf.mxu1 }
 0x2b9   : > { %7054 = vst [vmem:[#allocation126_spill] sm:$0xff] %v5290_v50 }
 0x2ba   : > { %7055 = vst [vmem:[#allocation127_spill] sm:$0xff] %v5292_v60  ;;  %v761_v60 = vpop.trf.xlu2 }
 0x2bb   : > { %7056 = vst [vmem:[#allocation128_spill] sm:$0xff] %v5294_v22  ;;  %3722 = vmatmul.msk.f32.gmra.mxu0 %vm795_vm1, %v756_v39  ;;  %3786 = vmatmul.msk.f32.gmra.mxu1 %vm795_vm1, %v756_v39 }
 0x2bc   : > { %3850 = vmatmul.msk.f32.gmra.mxu2 %vm795_vm1, %v756_v39  ;;  %3914 = vmatmul.msk.f32.gmra.mxu3 %vm795_vm1, %v756_v39 }
 0x2bf   : > { %v5300_v36 = vpop.f32.mrf.mxu2  ;;  %v5302_v46 = vpop.f32.mrf.mxu3 }
 0x2c0   : > { %7057 = vst [vmem:[#allocation129_spill] sm:$0xff] %v5300_v36  ;;  %v5304_v40 = vpop.f32.mrf.mxu0  ;;  %v5306_v50 = vpop.f32.mrf.mxu1 }
 0x2c1   : > { %7058 = vst [vmem:[#allocation130_spill] sm:$0xff] %v5302_v46 }
 0x2c2   : > { %7059 = vst [vmem:[#allocation131_spill] sm:$0xff] %v5304_v40  ;;  %v762_v40 = vpop.trf.xlu2 }
 0x2c3   : > { %7060 = vst [vmem:[#allocation132_spill] sm:$0xff] %v5306_v50  ;;  %3723 = vmatmul.msk.f32.gmra.mxu0 %vm795_vm1, %v757_v55  ;;  %3787 = vmatmul.msk.f32.gmra.mxu1 %vm795_vm1, %v757_v55 }
 0x2c4   : > { %3851 = vmatmul.msk.f32.gmra.mxu2 %vm795_vm1, %v757_v55  ;;  %3915 = vmatmul.msk.f32.gmra.mxu3 %vm795_vm1, %v757_v55 }
 0x2c7   : > { %v5312_v22 = vpop.f32.mrf.mxu2  ;;  %v5314_v39 = vpop.f32.mrf.mxu3 }
 0x2c8   : > { %7061 = vst [vmem:[#allocation133_spill] sm:$0xff] %v5312_v22  ;;  %v5316_v36 = vpop.f32.mrf.mxu0  ;;  %v5318_v46 = vpop.f32.mrf.mxu1 }
 0x2c9   : > { %7062 = vst [vmem:[#allocation134_spill] sm:$0xff] %v5314_v39 }
 0x2ca   : > { %7063 = vst [vmem:[#allocation135_spill] sm:$0xff] %v5316_v36  ;;  %v779_v36 = vpop.trf.xlu2 }
 0x2cb   : > { %7064 = vst [vmem:[#allocation136_spill] sm:$0xff] %v5318_v46  ;;  %3724 = vmatmul.msk.f32.gmra.mxu0 %vm795_vm1, %v758_v41  ;;  %3788 = vmatmul.msk.f32.gmra.mxu1 %vm795_vm1, %v758_v41 }
 0x2cc   : > { %3852 = vmatmul.msk.f32.gmra.mxu2 %vm795_vm1, %v758_v41  ;;  %3916 = vmatmul.msk.f32.gmra.mxu3 %vm795_vm1, %v758_v41 }
 0x2cf   : > { %v5324_v50 = vpop.f32.mrf.mxu2  ;;  %v5326_v55 = vpop.f32.mrf.mxu3 }
 0x2d0   : > { %7065 = vst [vmem:[#allocation137_spill] sm:$0xff] %v5324_v50  ;;  %v5328_v22 = vpop.f32.mrf.mxu0  ;;  %v5330_v39 = vpop.f32.mrf.mxu1 }
 0x2d1   : > { %7066 = vst [vmem:[#allocation138_spill] sm:$0xff] %v5326_v55 }
 0x2d2   : > { %7067 = vst [vmem:[#allocation139_spill] sm:$0xff] %v5328_v22  ;;  %v780_v22 = vpop.trf.xlu2 }
 0x2d3   : > { %7068 = vst [vmem:[#allocation140_spill] sm:$0xff] %v5330_v39  ;;  %3725 = vmatmul.msk.f32.gmra.mxu0 %vm795_vm1, %v759_v48  ;;  %3789 = vmatmul.msk.f32.gmra.mxu1 %vm795_vm1, %v759_v48 }
 0x2d4   : > { %3853 = vmatmul.msk.f32.gmra.mxu2 %vm795_vm1, %v759_v48  ;;  %3917 = vmatmul.msk.f32.gmra.mxu3 %vm795_vm1, %v759_v48 }
 0x2d7   : > { %v5336_v46 = vpop.f32.mrf.mxu2  ;;  %v5338_v41 = vpop.f32.mrf.mxu3 }
 0x2d8   : > { %7069 = vst [vmem:[#allocation141_spill] sm:$0xff] %v5336_v46  ;;  %v5340_v50 = vpop.f32.mrf.mxu0  ;;  %v5342_v55 = vpop.f32.mrf.mxu1 }
 0x2d9   : > { %7070 = vst [vmem:[#allocation142_spill] sm:$0xff] %v5338_v41 }
 0x2da   : > { %7071 = vst [vmem:[#allocation143_spill] sm:$0xff] %v5340_v50  ;;  %v781_v50 = vpop.trf.xlu2 }
 0x2db   : > { %7072 = vst [vmem:[#allocation144_spill] sm:$0xff] %v5342_v55  ;;  %3726 = vmatmul.msk.f32.gmra.mxu0 %vm795_vm1, %v760_v45  ;;  %3790 = vmatmul.msk.f32.gmra.mxu1 %vm795_vm1, %v760_v45 }
 0x2dc   : > { %3854 = vmatmul.msk.f32.gmra.mxu2 %vm795_vm1, %v760_v45  ;;  %3918 = vmatmul.msk.f32.gmra.mxu3 %vm795_vm1, %v760_v45 }
 0x2df   : > { %v5348_v39 = vpop.f32.mrf.mxu2  ;;  %v5350_v48 = vpop.f32.mrf.mxu3 }
 0x2e0   : > { %7073 = vst [vmem:[#allocation145_spill] sm:$0xff] %v5348_v39  ;;  %v5352_v46 = vpop.f32.mrf.mxu0  ;;  %v5354_v41 = vpop.f32.mrf.mxu1 }
 0x2e1   : > { %7074 = vst [vmem:[#allocation146_spill] sm:$0xff] %v5350_v48 }
 0x2e2   : > { %7075 = vst [vmem:[#allocation147_spill] sm:$0xff] %v5352_v46  ;;  %v782_v46 = vpop.trf.xlu2 }
 0x2e3   : > { %7076 = vst [vmem:[#allocation148_spill] sm:$0xff] %v5354_v41  ;;  %3727 = vmatmul.msk.f32.gmra.mxu0 %vm795_vm1, %v761_v60  ;;  %3791 = vmatmul.msk.f32.gmra.mxu1 %vm795_vm1, %v761_v60 }
 0x2e4   : > { %3855 = vmatmul.msk.f32.gmra.mxu2 %vm795_vm1, %v761_v60  ;;  %3919 = vmatmul.msk.f32.gmra.mxu3 %vm795_vm1, %v761_v60 }
 0x2e7   : > { %v5360_v55 = vpop.f32.mrf.mxu2  ;;  %v5362_v45 = vpop.f32.mrf.mxu3 }
 0x2e8   : > { %7077 = vst [vmem:[#allocation149_spill] sm:$0xff] %v5360_v55  ;;  %v5364_v39 = vpop.f32.mrf.mxu0  ;;  %v5366_v48 = vpop.f32.mrf.mxu1 }
 0x2e9   : > { %7078 = vst [vmem:[#allocation150_spill] sm:$0xff] %v5362_v45 }
 0x2ea   : > { %7079 = vst [vmem:[#allocation151_spill] sm:$0xff] %v5364_v39  ;;  %v783_v39 = vpop.trf.xlu2 }
 0x2eb   : > { %7080 = vst [vmem:[#allocation152_spill] sm:$0xff] %v5366_v48  ;;  %3728 = vmatmul.msk.f32.gmra.mxu0 %vm795_vm1, %v762_v40  ;;  %3792 = vmatmul.msk.f32.gmra.mxu1 %vm795_vm1, %v762_v40 }
 0x2ec   : > { %3856 = vmatmul.msk.f32.gmra.mxu2 %vm795_vm1, %v762_v40  ;;  %3920 = vmatmul.msk.f32.gmra.mxu3 %vm795_vm1, %v762_v40 }
 0x2ef   : > { %v5372_v41 = vpop.f32.mrf.mxu2  ;;  %v5374_v60 = vpop.f32.mrf.mxu3 }
 0x2f0   : > { %7081 = vst [vmem:[#allocation153_spill] sm:$0xff] %v5372_v41  ;;  %v5376_v55 = vpop.f32.mrf.mxu0  ;;  %v5378_v45 = vpop.f32.mrf.mxu1 }
 0x2f1   : > { %7082 = vst [vmem:[#allocation154_spill] sm:$0xff] %v5374_v60 }
 0x2f2   : > { %7083 = vst [vmem:[#allocation155_spill] sm:$0xff] %v5376_v55 }
 0x2f3   : > { %7084 = vst [vmem:[#allocation156_spill] sm:$0xff] %v5378_v45  ;;  %3729 = vmatmul.msk.f32.gmra.mxu0 %vm795_vm1, %v779_v36  ;;  %3793 = vmatmul.msk.f32.gmra.mxu1 %vm795_vm1, %v779_v36  ;;  %v784_v45 = vpop.trf.xlu2 }
 0x2f4   : > { %3857 = vmatmul.msk.f32.gmra.mxu2 %vm795_vm1, %v779_v36  ;;  %3921 = vmatmul.msk.f32.gmra.mxu3 %vm795_vm1, %v779_v36 }
 0x2f7   : > { %v5384_v48 = vpop.f32.mrf.mxu2  ;;  %v5386_v40 = vpop.f32.mrf.mxu3 }
 0x2f8   : > { %7085 = vst [vmem:[#allocation157_spill] sm:$0xff] %v5384_v48  ;;  %v5388_v41 = vpop.f32.mrf.mxu0  ;;  %v5390_v60 = vpop.f32.mrf.mxu1 }
 0x2f9   : > { %7086 = vst [vmem:[#allocation158_spill] sm:$0xff] %v5386_v40 }
 0x2fa   : > { %7087 = vst [vmem:[#allocation159_spill] sm:$0xff] %v5388_v41 }
 0x2fb   : > { %7088 = vst [vmem:[#allocation160_spill] sm:$0xff] %v5390_v60  ;;  %3730 = vmatmul.msk.f32.gmra.mxu0 %vm795_vm1, %v780_v22  ;;  %3794 = vmatmul.msk.f32.gmra.mxu1 %vm795_vm1, %v780_v22  ;;  %v785_v60 = vpop.trf.xlu2 }
 0x2fc   : > { %3858 = vmatmul.msk.f32.gmra.mxu2 %vm795_vm1, %v780_v22  ;;  %3922 = vmatmul.msk.f32.gmra.mxu3 %vm795_vm1, %v780_v22 }
 0x2ff   : > { %v5396_v55 = vpop.f32.mrf.mxu2  ;;  %v5398_v36 = vpop.f32.mrf.mxu3 }
 0x300   : > { %7089 = vst [vmem:[#allocation161_spill] sm:$0xff] %v5396_v55  ;;  %v5400_v48 = vpop.f32.mrf.mxu0  ;;  %v5402_v40 = vpop.f32.mrf.mxu1 }
 0x301   : > { %7090 = vst [vmem:[#allocation162_spill] sm:$0xff] %v5398_v36 }
 0x302   : > { %7091 = vst [vmem:[#allocation163_spill] sm:$0xff] %v5400_v48 }
 0x303   : > { %7092 = vst [vmem:[#allocation164_spill] sm:$0xff] %v5402_v40  ;;  %3731 = vmatmul.msk.f32.gmra.mxu0 %vm795_vm1, %v781_v50  ;;  %3795 = vmatmul.msk.f32.gmra.mxu1 %vm795_vm1, %v781_v50 }
 0x304   : > { %3859 = vmatmul.msk.f32.gmra.mxu2 %vm795_vm1, %v781_v50  ;;  %3923 = vmatmul.msk.f32.gmra.mxu3 %vm795_vm1, %v781_v50 }
 0x307   : > { %v5408_v41 = vpop.f32.mrf.mxu2  ;;  %v5410_v22 = vpop.f32.mrf.mxu3 }
 0x308   : > { %7093 = vst [vmem:[#allocation165_spill] sm:$0xff] %v5408_v41  ;;  %v5412_v55 = vpop.f32.mrf.mxu0  ;;  %v5414_v36 = vpop.f32.mrf.mxu1 }
 0x309   : > { %7094 = vst [vmem:[#allocation166_spill] sm:$0xff] %v5410_v22  ;;  %v786_v22 = vpop.trf.xlu2 }
 0x30a   : > { %7095 = vst [vmem:[#allocation167_spill] sm:$0xff] %v5412_v55 }
 0x30b   : > { %7096 = vst [vmem:[#allocation168_spill] sm:$0xff] %v5414_v36  ;;  %3732 = vmatmul.msk.f32.gmra.mxu0 %vm795_vm1, %v782_v46  ;;  %3796 = vmatmul.msk.f32.gmra.mxu1 %vm795_vm1, %v782_v46 }
 0x30c   : > { %3860 = vmatmul.msk.f32.gmra.mxu2 %vm795_vm1, %v782_v46  ;;  %3924 = vmatmul.msk.f32.gmra.mxu3 %vm795_vm1, %v782_v46 }
 0x30f   : > { %v5420_v40 = vpop.f32.mrf.mxu2  ;;  %v5422_v50 = vpop.f32.mrf.mxu3 }
 0x310   : > { %7097 = vst [vmem:[#allocation169_spill] sm:$0xff] %v5420_v40  ;;  %v5424_v48 = vpop.f32.mrf.mxu0  ;;  %v5426_v41 = vpop.f32.mrf.mxu1 }
 0x311   : > { %7098 = vst [vmem:[#allocation170_spill] sm:$0xff] %v5422_v50 }
 0x312   : > { %7099 = vst [vmem:[#allocation171_spill] sm:$0xff] %v5424_v48 }
 0x313   : > { %7100 = vst [vmem:[#allocation172_spill] sm:$0xff] %v5426_v41  ;;  %3733 = vmatmul.msk.f32.gmra.mxu0 %vm795_vm1, %v783_v39  ;;  %3797 = vmatmul.msk.f32.gmra.mxu1 %vm795_vm1, %v783_v39  ;;  %v787_v41 = vpop.trf.xlu2 }
 0x314   : > { %3861 = vmatmul.msk.f32.gmra.mxu2 %vm795_vm1, %v783_v39  ;;  %3925 = vmatmul.msk.f32.gmra.mxu3 %vm795_vm1, %v783_v39 }
 0x317   : > { %v5432_v36 = vpop.f32.mrf.mxu2  ;;  %v5434_v46 = vpop.f32.mrf.mxu3 }
 0x318   : > { %7101 = vst [vmem:[#allocation173_spill] sm:$0xff] %v5432_v36  ;;  %v5436_v40 = vpop.f32.mrf.mxu0  ;;  %v5438_v50 = vpop.f32.mrf.mxu1 }
 0x319   : > { %7102 = vst [vmem:[#allocation174_spill] sm:$0xff] %v5434_v46 }
 0x31a   : > { %7103 = vst [vmem:[#allocation175_spill] sm:$0xff] %v5436_v40 }
 0x31b   : > { %7104 = vst [vmem:[#allocation176_spill] sm:$0xff] %v5438_v50  ;;  %3734 = vmatmul.msk.f32.gmra.mxu0 %vm795_vm1, %v784_v45  ;;  %3798 = vmatmul.msk.f32.gmra.mxu1 %vm795_vm1, %v784_v45  ;;  %v788_v50 = vpop.trf.xlu2 }
 0x31c   : > { %3862 = vmatmul.msk.f32.gmra.mxu2 %vm795_vm1, %v784_v45  ;;  %3926 = vmatmul.msk.f32.gmra.mxu3 %vm795_vm1, %v784_v45 }
 0x31f   : > { %v5444_v48 = vpop.f32.mrf.mxu2  ;;  %v5446_v39 = vpop.f32.mrf.mxu3 }
 0x320   : > { %7105 = vst [vmem:[#allocation177_spill] sm:$0xff] %v5444_v48  ;;  %v5448_v36 = vpop.f32.mrf.mxu0  ;;  %v5450_v46 = vpop.f32.mrf.mxu1 }
 0x321   : > { %7106 = vst [vmem:[#allocation178_spill] sm:$0xff] %v5446_v39 }
 0x322   : > { %7107 = vst [vmem:[#allocation179_spill] sm:$0xff] %v5448_v36 }
 0x323   : > { %7108 = vst [vmem:[#allocation180_spill] sm:$0xff] %v5450_v46  ;;  %3735 = vmatmul.msk.f32.gmra.mxu0 %vm795_vm1, %v785_v60  ;;  %3799 = vmatmul.msk.f32.gmra.mxu1 %vm795_vm1, %v785_v60 }
 0x324   : > { %3863 = vmatmul.msk.f32.gmra.mxu2 %vm795_vm1, %v785_v60  ;;  %3927 = vmatmul.msk.f32.gmra.mxu3 %vm795_vm1, %v785_v60 }
 0x327   : > { %v5456_v40 = vpop.f32.mrf.mxu2  ;;  %v5458_v45 = vpop.f32.mrf.mxu3 }
 0x328   : > { %7109 = vst [vmem:[#allocation181_spill] sm:$0xff] %v5456_v40  ;;  %v5460_v48 = vpop.f32.mrf.mxu0  ;;  %v5462_v39 = vpop.f32.mrf.mxu1 }
 0x329   : > { %7110 = vst [vmem:[#allocation182_spill] sm:$0xff] %v5458_v45  ;;  %v789_v45 = vpop.trf.xlu2 }
 0x32a   : > { %7111 = vst [vmem:[#allocation183_spill] sm:$0xff] %v5460_v48 }
 0x32b   : > { %7112 = vst [vmem:[#allocation184_spill] sm:$0xff] %v5462_v39  ;;  %3736 = vmatmul.msk.f32.gmra.mxu0 %vm795_vm1, %v786_v22  ;;  %3800 = vmatmul.msk.f32.gmra.mxu1 %vm795_vm1, %v786_v22 }
 0x32c   : > { %3864 = vmatmul.msk.f32.gmra.mxu2 %vm795_vm1, %v786_v22  ;;  %3928 = vmatmul.msk.f32.gmra.mxu3 %vm795_vm1, %v786_v22 }
 0x32f   : > { %v5468_v46 = vpop.f32.mrf.mxu2  ;;  %v5470_v60 = vpop.f32.mrf.mxu3 }
 0x330   : > { %7113 = vst [vmem:[#allocation185_spill] sm:$0xff] %v5468_v46  ;;  %v5472_v36 = vpop.f32.mrf.mxu0  ;;  %v5474_v40 = vpop.f32.mrf.mxu1 }
 0x331   : > { %7114 = vst [vmem:[#allocation186_spill] sm:$0xff] %v5470_v60 }
 0x332   : > { %7115 = vst [vmem:[#allocation187_spill] sm:$0xff] %v5472_v36 }
 0x333   : > { %7116 = vst [vmem:[#allocation188_spill] sm:$0xff] %v5474_v40  ;;  %3737 = vmatmul.msk.f32.gmra.mxu0 %vm795_vm1, %v787_v41  ;;  %3801 = vmatmul.msk.f32.gmra.mxu1 %vm795_vm1, %v787_v41  ;;  %v790_v40 = vpop.trf.xlu2 }
 0x334   : > { %3865 = vmatmul.msk.f32.gmra.mxu2 %vm795_vm1, %v787_v41  ;;  %3929 = vmatmul.msk.f32.gmra.mxu3 %vm795_vm1, %v787_v41 }
 0x337   : > { %v5480_v39 = vpop.f32.mrf.mxu2  ;;  %v5482_v22 = vpop.f32.mrf.mxu3 }
 0x338   : > { %7117 = vst [vmem:[#allocation189_spill] sm:$0xff] %v5480_v39  ;;  %v5484_v46 = vpop.f32.mrf.mxu0  ;;  %v5486_v60 = vpop.f32.mrf.mxu1 }
 0x339   : > { %7118 = vst [vmem:[#allocation190_spill] sm:$0xff] %v5482_v22 }
 0x33a   : > { %7119 = vst [vmem:[#allocation191_spill] sm:$0xff] %v5484_v46 }
 0x33b   : > { %7120 = vst [vmem:[#allocation192_spill] sm:$0xff] %v5486_v60  ;;  %3738 = vmatmul.msk.f32.gmra.mxu0 %vm795_vm1, %v788_v50  ;;  %3802 = vmatmul.msk.f32.gmra.mxu1 %vm795_vm1, %v788_v50  ;;  %v791_v60 = vpop.trf.xlu2 }
 0x33c   : > { %3866 = vmatmul.msk.f32.gmra.mxu2 %vm795_vm1, %v788_v50  ;;  %3930 = vmatmul.msk.f32.gmra.mxu3 %vm795_vm1, %v788_v50 }
 0x33f   : > { %v5492_v36 = vpop.f32.mrf.mxu2  ;;  %v5494_v41 = vpop.f32.mrf.mxu3 }
 0x340   : > { %7121 = vst [vmem:[#allocation193_spill] sm:$0xff] %v5492_v36  ;;  %v5496_v39 = vpop.f32.mrf.mxu0  ;;  %v5498_v22 = vpop.f32.mrf.mxu1 }
 0x341   : > { %7122 = vst [vmem:[#allocation194_spill] sm:$0xff] %v5494_v41 }
 0x342   : > { %7123 = vst [vmem:[#allocation195_spill] sm:$0xff] %v5496_v39 }
 0x343   : > { %7124 = vst [vmem:[#allocation196_spill] sm:$0xff] %v5498_v22  ;;  %3739 = vmatmul.msk.f32.gmra.mxu0 %vm795_vm1, %v789_v45  ;;  %3803 = vmatmul.msk.f32.gmra.mxu1 %vm795_vm1, %v789_v45 }
 0x344   : > { %3867 = vmatmul.msk.f32.gmra.mxu2 %vm795_vm1, %v789_v45  ;;  %3931 = vmatmul.msk.f32.gmra.mxu3 %vm795_vm1, %v789_v45 }
 0x347   : > { %v5504_v46 = vpop.f32.mrf.mxu2  ;;  %v5506_v50 = vpop.f32.mrf.mxu3 }
 0x348   : > { %7125 = vst [vmem:[#allocation197_spill] sm:$0xff] %v5504_v46  ;;  %v5508_v36 = vpop.f32.mrf.mxu0  ;;  %v5510_v41 = vpop.f32.mrf.mxu1 }
 0x349   : > { %7126 = vst [vmem:[#allocation198_spill] sm:$0xff] %v5506_v50  ;;  %v792_v50 = vpop.trf.xlu2 }
 0x34a   : > { %7127 = vst [vmem:[#allocation199_spill] sm:$0xff] %v5508_v36 }
 0x34b   : > { %7128 = vst [vmem:[#allocation200_spill] sm:$0xff] %v5510_v41  ;;  %3740 = vmatmul.msk.f32.gmra.mxu0 %vm795_vm1, %v790_v40  ;;  %3804 = vmatmul.msk.f32.gmra.mxu1 %vm795_vm1, %v790_v40 }
 0x34c   : > { %3868 = vmatmul.msk.f32.gmra.mxu2 %vm795_vm1, %v790_v40  ;;  %3932 = vmatmul.msk.f32.gmra.mxu3 %vm795_vm1, %v790_v40 }
 0x34f   : > { %v5516_v22 = vpop.f32.mrf.mxu2  ;;  %v5518_v45 = vpop.f32.mrf.mxu3 }
 0x350   : > { %7129 = vst [vmem:[#allocation201_spill] sm:$0xff] %v5516_v22  ;;  %v5520_v39 = vpop.f32.mrf.mxu0  ;;  %v5522_v46 = vpop.f32.mrf.mxu1 }
 0x351   : > { %7130 = vst [vmem:[#allocation202_spill] sm:$0xff] %v5518_v45 }
 0x352   : > { %7131 = vst [vmem:[#allocation203_spill] sm:$0xff] %v5520_v39 }
 0x353   : > { %7132 = vst [vmem:[#allocation204_spill] sm:$0xff] %v5522_v46  ;;  %3741 = vmatmul.msk.f32.gmra.mxu0 %vm795_vm1, %v791_v60  ;;  %3805 = vmatmul.msk.f32.gmra.mxu1 %vm795_vm1, %v791_v60  ;;  %v793_v46 = vpop.trf.xlu2 }
 0x354   : > { %3869 = vmatmul.msk.f32.gmra.mxu2 %vm795_vm1, %v791_v60  ;;  %3933 = vmatmul.msk.f32.gmra.mxu3 %vm795_vm1, %v791_v60 }
 0x357   : > { %v5528_v41 = vpop.f32.mrf.mxu2  ;;  %v5530_v40 = vpop.f32.mrf.mxu3 }
 0x358   : > { %7133 = vst [vmem:[#allocation205_spill] sm:$0xff] %v5528_v41  ;;  %v5532_v22 = vpop.f32.mrf.mxu0  ;;  %v5534_v45 = vpop.f32.mrf.mxu1 }
 0x359   : > { %7134 = vst [vmem:[#allocation206_spill] sm:$0xff] %v5530_v40 }
 0x35a   : > { %7135 = vst [vmem:[#allocation207_spill] sm:$0xff] %v5532_v22 }
 0x35b   : > { %7136 = vst [vmem:[#allocation208_spill] sm:$0xff] %v5534_v45  ;;  %3742 = vmatmul.msk.f32.gmra.mxu0 %vm795_vm1, %v792_v50  ;;  %3806 = vmatmul.msk.f32.gmra.mxu1 %vm795_vm1, %v792_v50  ;;  %v794_v45 = vpop.trf.xlu2 }
 0x35c   : > { %3870 = vmatmul.msk.f32.gmra.mxu2 %vm795_vm1, %v792_v50  ;;  %3934 = vmatmul.msk.f32.gmra.mxu3 %vm795_vm1, %v792_v50 }
 0x35f   : > { %v5540_v39 = vpop.f32.mrf.mxu2  ;;  %v5542_v60 = vpop.f32.mrf.mxu3 }
 0x360   : > { %7137 = vst [vmem:[#allocation209_spill] sm:$0xff] %v5540_v39  ;;  %v5544_v41 = vpop.f32.mrf.mxu0  ;;  %v5546_v40 = vpop.f32.mrf.mxu1 }
 0x361   : > { %7138 = vst [vmem:[#allocation210_spill] sm:$0xff] %v5542_v60 }
 0x362   : > { %7139 = vst [vmem:[#allocation211_spill] sm:$0xff] %v5544_v41 }
 0x363   : > { %7140 = vst [vmem:[#allocation212_spill] sm:$0xff] %v5546_v40  ;;  %3743 = vmatmul.msk.f32.gmra.mxu0 %vm795_vm1, %v793_v46  ;;  %3807 = vmatmul.msk.f32.gmra.mxu1 %vm795_vm1, %v793_v46 }
 0x364   : > { %3871 = vmatmul.msk.f32.gmra.mxu2 %vm795_vm1, %v793_v46  ;;  %3935 = vmatmul.msk.f32.gmra.mxu3 %vm795_vm1, %v793_v46  ;;  %v1825_v46 = vmax.f32 %v4992_v5, %v5004_v10 }
 0x367   : > { %v5552_v22 = vpop.f32.mrf.mxu2  ;;  %v5554_v50 = vpop.f32.mrf.mxu3 }
 0x368   : > { %7141 = vst [vmem:[#allocation213_spill] sm:$0xff] %v5552_v22  ;;  %v5556_v39 = vpop.f32.mrf.mxu0  ;;  %v5558_v60 = vpop.f32.mrf.mxu1  ;;  %v1894_v22 = vmax.f32 %v4994_v6, %v5006_v11 }
 0x369   : > { %7142 = vst [vmem:[#allocation214_spill] sm:$0xff] %v5554_v50  ;;  %v1826_v50 = vmax.f32 %v1825_v46, %v5016_v15  ;;  %v1963_v46 = vmax.f32 %v5000_v8, %v5012_v13 }
 0x36a   : > { %7143 = vst [vmem:[#allocation215_spill] sm:$0xff] %v5556_v39  ;;  %v1895_v39 = vmax.f32 %v1894_v22, %v5018_v16  ;;  %v2032_v22 = vmax.f32 %v5002_v9, %v5014_v14 }
 0x36b   : > { %7144 = vst [vmem:[#allocation216_spill] sm:$0xff] %v5558_v60  ;;  %3744 = vmatmul.msk.f32.gmra.mxu0 %vm795_vm1, %v794_v45  ;;  %3808 = vmatmul.msk.f32.gmra.mxu1 %vm795_vm1, %v794_v45  ;;  %v1964_v10 = vmax.f32 %v1963_v46, %v5024_v18  ;;  %v7157_v18 = vld [vmem:[#allocation88_spill] sm:$0xff] }
 0x36c   : > { %3872 = vmatmul.msk.f32.gmra.mxu2 %vm795_vm1, %v794_v45  ;;  %3936 = vmatmul.msk.f32.gmra.mxu3 %vm795_vm1, %v794_v45  ;;  %v1827_v45 = vmax.f32 %v1826_v50, %v5028_v20  ;;  %v1896_v48 = vmax.f32 %v1895_v39, %v5030_v21  ;;  %v2033_v50 = vmax.f32 %v2032_v22, %v5026_v19  ;;  %v7222_v20 = vld [vmem:[#allocation144_spill] sm:$0xff] }
 0x36d   : > { %v1965_v8 = vmax.f32 %v1964_v10, %v5036_v23  ;;  %v7159_v23 = vld [vmem:[#allocation78_spill] sm:$0xff] }
 0x36e   : > { %v1828_v5 = vmax.f32 %v1827_v45, %v5040_v25  ;;  %v1897_v6 = vmax.f32 %v1896_v48, %v5042_v26  ;;  %v2034_v9 = vmax.f32 %v2033_v50, %v5038_v24 }
 0x36f   : > { %v5570_v40 = vpop.f32.mrf.mxu2  ;;  %v5572_v60 = vpop.f32.mrf.mxu3 }
 0x370   : > { %v5574_v41 = vpop.f32.mrf.mxu0  ;;  %v5576_v36 = vpop.f32.mrf.mxu1  ;;  %v1829_v11 = vmax.f32 %v1828_v5, %v5052_v30  ;;  %v1898_v16 = vmax.f32 %v1897_v6, %v5054_v31  ;;  %v7166_v31 = vld [vmem:[#allocation85_spill] sm:$0xff] }
 0x371   : > { %7145 = vst [vmem:[#allocation217_spill] sm:$0xff] %v5576_v36  ;;  %v7223_v30 = vld [vmem:[#allocation133_spill] sm:$0xff] }
 0x372   : > { %v1830_v39 = vmax.f32 %v1829_v11, %v5064_v35  ;;  %v1899_v45 = vmax.f32 %v1898_v16, %v5066_v37  ;;  %v1966_v11 = vmax.f32 %v1965_v8, %v5048_v28  ;;  %v2035_v16 = vmax.f32 %v2034_v9, %v5050_v29  ;;  %v7160_v28 = vld [vmem:[#allocation91_spill] sm:$0xff]  ;;  %v7167_v37 = vld [vmem:[#allocation86_spill] sm:$0xff] }
 0x374   : > { %v1831_v6 = vmax.f32 %v1830_v39, %v5076_v44  ;;  %v1900_v46 = vmax.f32 %v1899_v45, %v5078_v49  ;;  %v1967_v10 = vmax.f32 %v1966_v11, %v5060_v33  ;;  %v2036_v50 = vmax.f32 %v2035_v16, %v5062_v34  ;;  %v7168_v49 = vld [vmem:[#allocation99_spill] sm:$0xff]  ;;  %v7241_v44 = vld [vmem:[#allocation160_spill] sm:$0xff] }
 0x376   : > { %v1832_v22 = vmax.f32 %v1831_v6, %v5088_v53  ;;  %v1901_v19 = vmax.f32 %v1900_v46, %v5090_v54  ;;  %v1968_v39 = vmax.f32 %v1967_v10, %v5072_v42  ;;  %v2037_v45 = vmax.f32 %v2036_v50, %v5074_v43  ;;  %v7161_v42 = vld [vmem:[#allocation92_spill] sm:$0xff] }
 0x377   : > { %v5592_v21 = vpop.f32.mrf.mxu2  ;;  %v5594_v48 = vpop.f32.mrf.mxu3 }
 0x378   : > { %7146 = vst [vmem:[#allocation218_spill] sm:$0xff] %v5592_v21  ;;  %v5598_v14 = vpop.f32.mrf.mxu0  ;;  %v5600_v5 = vpop.f32.mrf.mxu1  ;;  %v1833_v24 = vmax.f32 %v1832_v22, %v5100_v58  ;;  %v1902_v13 = vmax.f32 %v1901_v19, %v5102_v59  ;;  %v1969_v46 = vmax.f32 %v1968_v39, %v5084_v51  ;;  %v2038_v11 = vmax.f32 %v2037_v45, %v5086_v52  ;;  %v7184_v59 = vld [vmem:[#allocation112_spill] sm:$0xff]  ;;  %v7242_v58 = vld [vmem:[#allocation149_spill] sm:$0xff] }
 0x379   : > { %7147 = vst [vmem:[#allocation219_spill] sm:$0xff] %v5594_v48 }
 0x37a   : > { %7148 = vst [vmem:[#allocation220_spill] sm:$0xff] %v5600_v5  ;;  %v1834_v8 = vmax.f32 %v1833_v24, %v5112_v63  ;;  %v1903_v9 = vmax.f32 %v1902_v13, %v5114_v0  ;;  %v1970_v24 = vmax.f32 %v1969_v46, %v5096_v56  ;;  %v2039_v13 = vmax.f32 %v2038_v11, %v5098_v57  ;;  %v7162_v56 = vld [vmem:[#allocation81_spill] sm:$0xff]  ;;  %v7259_v63 = vld [vmem:[#allocation176_spill] sm:$0xff] }
 0x37c   : > { %v1835_v19 = vmax.f32 %v1834_v8, %v5124_v4  ;;  %v1904_v10 = vmax.f32 %v1903_v9, %v5126_v7  ;;  %v1971_v39 = vmax.f32 %v1970_v24, %v5108_v61  ;;  %v2040_v45 = vmax.f32 %v2039_v13, %v5110_v62  ;;  %v7154_v24 = vld [vmem:[#allocation74_spill] sm:$0xff]  ;;  %v7185_v7 = vld [vmem:[#allocation101_spill] sm:$0xff] }
 0x37d   : > { %v7163_v61 = vld [vmem:[#allocation82_spill] sm:$0xff] }
 0x37e   : > { %v1836_v50 = vmax.f32 %v1835_v19, %v5136_v27  ;;  %v1905_v34 = vmax.f32 %v1904_v10, %v5138_v32  ;;  %v1972_v8 = vmax.f32 %v1971_v39, %v5120_v2  ;;  %v2041_v9 = vmax.f32 %v2040_v45, %v5122_v3  ;;  %v7158_v3 = vld [vmem:[#allocation77_spill] sm:$0xff] }
 0x37f   : > { %v5616_v29 = vpop.f32.mrf.mxu2  ;;  %v5618_v6 = vpop.f32.mrf.mxu3  ;;  %v7260_v27 = vld [vmem:[#allocation165_spill] sm:$0xff] }
 0x380   : > { %7149 = vst [vmem:[#allocation221_spill] sm:$0xff] %v5616_v29  ;;  %v5622_v16 = vpop.f32.mrf.mxu0  ;;  %v5624_v22 = vpop.f32.mrf.mxu1  ;;  %v1837_v43 = vmax.f32 %v1836_v50, %v5148_v1  ;;  %v1906_v52 = vmax.f32 %v1905_v34, %v5150_v12  ;;  %v1973_v10 = vmax.f32 %v1972_v8, %v5132_v17  ;;  %v2042_v13 = vmax.f32 %v2041_v9, %v7154_v24  ;;  %v7156_v34 = vld [vmem:[#allocation87_spill] sm:$0xff]  ;;  %v7165_v17 = vld [vmem:[#allocation96_spill] sm:$0xff] }
 0x381   : > { %7150 = vst [vmem:[#allocation222_spill] sm:$0xff] %v5618_v6  ;;  %v7164_v24 = vld [vmem:[#allocation95_spill] sm:$0xff]  ;;  %v7203_v12 = vld [vmem:[#allocation128_spill] sm:$0xff] }
 0x382   : > { %7151 = vst [vmem:[#allocation223_spill] sm:$0xff] %v5624_v22  ;;  %v1838_v46 = vmax.f32 %v1837_v43, %v5160_v38  ;;  %v1907_v11 = vmax.f32 %v1906_v52, %v5162_v47  ;;  %v1974_v43 = vmax.f32 %v1973_v10, %v7158_v3  ;;  %v2043_v52 = vmax.f32 %v2042_v13, %v7159_v23  ;;  %v7169_v3 = vld [vmem:[#allocation100_spill] sm:$0xff] }
 0x383   : > { %v7277_v38 = vld [vmem:[#allocation192_spill] sm:$0xff] }
 0x384   : > { %v1839_v39 = vmax.f32 %v1838_v46, %v7156_v34  ;;  %v1908_v45 = vmax.f32 %v1907_v11, %v7157_v18  ;;  %v1975_v8 = vmax.f32 %v1974_v43, %v7162_v56  ;;  %v2044_v9 = vmax.f32 %v2043_v52, %v7163_v61  ;;  %v7204_v18 = vld [vmem:[#allocation117_spill] sm:$0xff] }
 0x386   : > { %v1840_v33 = vmax.f32 %v1839_v39, %v7160_v28  ;;  %v1909_v51 = vmax.f32 %v1908_v45, %v7161_v42  ;;  %v1976_v46 = vmax.f32 %v1975_v8, %v7166_v31  ;;  %v2045_v11 = vmax.f32 %v2044_v9, %v7167_v37  ;;  %v7172_v45 = vld [vmem:[#allocation89_spill] sm:$0xff]  ;;  %v7173_v42 = vld [vmem:[#allocation90_spill] sm:$0xff] }
 0x387   : > { %v5640_v57 = vpop.f32.mrf.mxu2  ;;  %v5642_v19 = vpop.f32.mrf.mxu3  ;;  %v7177_v37 = vld [vmem:[#allocation93_spill] sm:$0xff]  ;;  %v7178_v28 = vld [vmem:[#allocation94_spill] sm:$0xff] }
 0x388   : > { %7152 = vst [vmem:[#allocation224_spill] sm:$0xff] %v5640_v57  ;;  %v5646_v62 = vpop.f32.mrf.mxu0  ;;  %v5648_v50 = vpop.f32.mrf.mxu1  ;;  %v1841_v2 = vmax.f32 %v1840_v33, %v7164_v24  ;;  %v1910_v26 = vmax.f32 %v1909_v51, %v7165_v17  ;;  %v1977_v43 = vmax.f32 %v1976_v46, %v7172_v45  ;;  %v2046_v52 = vmax.f32 %v2045_v11, %v7173_v42  ;;  %v7175_v51 = vld [vmem:[#allocation103_spill] sm:$0xff]  ;;  %v7176_v17 = vld [vmem:[#allocation104_spill] sm:$0xff]  ;;  %v7181_v31 = vld [vmem:[#allocation97_spill] sm:$0xff] }
 0x389   : > { %7153 = vst [vmem:[#allocation225_spill] sm:$0xff] %v5642_v19  ;;  %v7182_v45 = vld [vmem:[#allocation98_spill] sm:$0xff]  ;;  %v7183_v42 = vld [vmem:[#allocation111_spill] sm:$0xff] }
 0x38a   : > { %7155 = vst [vmem:[#allocation226_spill] sm:$0xff] %v5648_v50  ;;  %v1842_v10 = vmax.f32 %v1841_v2, %v7168_v49  ;;  %v1911_v13 = vmax.f32 %v1910_v26, %v7169_v3  ;;  %v1978_v2 = vmax.f32 %v1977_v43, %v7177_v37  ;;  %v2047_v26 = vmax.f32 %v2046_v52, %v7178_v28  ;;  %v7179_v3 = vld [vmem:[#allocation107_spill] sm:$0xff]  ;;  %v7180_v49 = vld [vmem:[#allocation108_spill] sm:$0xff] }
 0x38b   : > { %v7188_v37 = vld [vmem:[#allocation116_spill] sm:$0xff] }
 0x38c   : > { %v1843_v8 = vmax.f32 %v1842_v10, %v7175_v51  ;;  %v1912_v9 = vmax.f32 %v1911_v13, %v7176_v17  ;;  %v1979_v46 = vmax.f32 %v1978_v2, %v7181_v31  ;;  %v2048_v11 = vmax.f32 %v2047_v26, %v7182_v45  ;;  %v7186_v51 = vld [vmem:[#allocation102_spill] sm:$0xff]  ;;  %v7187_v17 = vld [vmem:[#allocation115_spill] sm:$0xff] }
 0x38d   : > { %v7192_v31 = vld [vmem:[#allocation106_spill] sm:$0xff] }
 0x38e   : > { %v1844_v24 = vmax.f32 %v1843_v8, %v7179_v3  ;;  %v1913_v56 = vmax.f32 %v1912_v9, %v7180_v49  ;;  %v1980_v10 = vmax.f32 %v1979_v46, %v7185_v7  ;;  %v2049_v13 = vmax.f32 %v2048_v11, %v7186_v51  ;;  %v7191_v9 = vld [vmem:[#allocation105_spill] sm:$0xff]  ;;  %v7195_v7 = vld [vmem:[#allocation120_spill] sm:$0xff]  ;;  %v7197_v49 = vld [vmem:[#allocation110_spill] sm:$0xff] }
 0x38f   : > { %v5664_v23 = vpop.f32.mrf.mxu2  ;;  %v5666_v39 = vpop.f32.mrf.mxu3  ;;  %v7196_v51 = vld [vmem:[#allocation109_spill] sm:$0xff]  ;;  %v7199_v3 = vld [vmem:[#allocation124_spill] sm:$0xff] }
 0x390   : > { %7170 = vst [vmem:[#allocation227_spill] sm:$0xff] %v5664_v23  ;;  %v5670_v61 = vpop.f32.mrf.mxu0  ;;  %v5672_v33 = vpop.f32.mrf.mxu1  ;;  %v1845_v54 = vmax.f32 %v1844_v24, %v7183_v42  ;;  %v1914_v0 = vmax.f32 %v1913_v56, %v7184_v59  ;;  %v1981_v2 = vmax.f32 %v1980_v10, %v7191_v9  ;;  %v2050_v26 = vmax.f32 %v2049_v13, %v7192_v31  ;;  %v7194_v56 = vld [vmem:[#allocation119_spill] sm:$0xff]  ;;  %v7201_v9 = vld [vmem:[#allocation114_spill] sm:$0xff] }
 0x391   : > { %7171 = vst [vmem:[#allocation228_spill] sm:$0xff] %v5666_v39  ;;  %v7198_v59 = vld [vmem:[#allocation123_spill] sm:$0xff] }
 0x392   : > { %7174 = vst [vmem:[#allocation229_spill] sm:$0xff] %v5672_v33  ;;  %v1846_v43 = vmax.f32 %v1845_v54, %v7187_v17  ;;  %v1915_v52 = vmax.f32 %v1914_v0, %v7188_v37  ;;  %v1982_v54 = vmax.f32 %v1981_v2, %v7196_v51  ;;  %v2051_v0 = vmax.f32 %v2050_v26, %v7197_v49  ;;  %v7200_v17 = vld [vmem:[#allocation113_spill] sm:$0xff]  ;;  %v7202_v31 = vld [vmem:[#allocation127_spill] sm:$0xff]  ;;  %v7207_v51 = vld [vmem:[#allocation132_spill] sm:$0xff] }
 0x394   : > { %v1847_v46 = vmax.f32 %v1846_v43, %v7194_v56  ;;  %v1916_v11 = vmax.f32 %v1915_v52, %v7195_v7  ;;  %v1983_v10 = vmax.f32 %v1982_v54, %v7200_v17  ;;  %v2052_v13 = vmax.f32 %v2051_v0, %v7201_v9  ;;  %v7205_v56 = vld [vmem:[#allocation118_spill] sm:$0xff]  ;;  %v7206_v7 = vld [vmem:[#allocation131_spill] sm:$0xff] }
 0x395   : > { %v7211_v17 = vld [vmem:[#allocation122_spill] sm:$0xff] }
 0x396   : > { %v1848_v37 = vmax.f32 %v1847_v46, %v7198_v59  ;;  %v1917_v42 = vmax.f32 %v1916_v11, %v7199_v3  ;;  %v1984_v43 = vmax.f32 %v1983_v10, %v7204_v18  ;;  %v2053_v52 = vmax.f32 %v2052_v13, %v7205_v56  ;;  %v7210_v11 = vld [vmem:[#allocation121_spill] sm:$0xff]  ;;  %v7214_v18 = vld [vmem:[#allocation136_spill] sm:$0xff]  ;;  %v7216_v3 = vld [vmem:[#allocation126_spill] sm:$0xff] }
 0x397   : > { %v5688_v28 = vpop.f32.mrf.mxu2  ;;  %v5690_v8 = vpop.f32.mrf.mxu3  ;;  %v7215_v56 = vld [vmem:[#allocation125_spill] sm:$0xff]  ;;  %v7218_v59 = vld [vmem:[#allocation140_spill] sm:$0xff] }
 0x398   : > { %7189 = vst [vmem:[#allocation230_spill] sm:$0xff] %v5688_v28  ;;  %v5694_v45 = vpop.f32.mrf.mxu0  ;;  %v5696_v24 = vpop.f32.mrf.mxu1  ;;  %v1849_v32 = vmax.f32 %v1848_v37, %v7202_v31  ;;  %v1918_v47 = vmax.f32 %v1917_v42, %v7203_v12  ;;  %v1985_v54 = vmax.f32 %v1984_v43, %v7210_v11  ;;  %v2054_v0 = vmax.f32 %v2053_v52, %v7211_v17  ;;  %v7213_v42 = vld [vmem:[#allocation135_spill] sm:$0xff]  ;;  %v7220_v11 = vld [vmem:[#allocation130_spill] sm:$0xff] }
 0x399   : > { %7190 = vst [vmem:[#allocation231_spill] sm:$0xff] %v5690_v8  ;;  %v7217_v12 = vld [vmem:[#allocation139_spill] sm:$0xff] }
 0x39a   : > { %7193 = vst [vmem:[#allocation232_spill] sm:$0xff] %v5696_v24  ;;  %v1850_v2 = vmax.f32 %v1849_v32, %v7206_v7  ;;  %v1919_v26 = vmax.f32 %v1918_v47, %v7207_v51  ;;  %v1986_v32 = vmax.f32 %v1985_v54, %v7215_v56  ;;  %v2055_v47 = vmax.f32 %v2054_v0, %v7216_v3  ;;  %v7219_v7 = vld [vmem:[#allocation129_spill] sm:$0xff]  ;;  %v7221_v17 = vld [vmem:[#allocation143_spill] sm:$0xff]  ;;  %v7226_v56 = vld [vmem:[#allocation148_spill] sm:$0xff] }
 0x39c   : > { %v1851_v10 = vmax.f32 %v1850_v2, %v7213_v42  ;;  %v1920_v13 = vmax.f32 %v1919_v26, %v7214_v18  ;;  %v1987_v43 = vmax.f32 %v1986_v32, %v7219_v7  ;;  %v2056_v52 = vmax.f32 %v2055_v47, %v7220_v11  ;;  %v7224_v42 = vld [vmem:[#allocation134_spill] sm:$0xff]  ;;  %v7225_v18 = vld [vmem:[#allocation147_spill] sm:$0xff] }
 0x39d   : > { %v7230_v7 = vld [vmem:[#allocation138_spill] sm:$0xff] }
 0x39e   : > { %v1852_v51 = vmax.f32 %v1851_v10, %v7217_v12  ;;  %v1921_v31 = vmax.f32 %v1920_v13, %v7218_v59  ;;  %v1988_v2 = vmax.f32 %v1987_v43, %v7223_v30  ;;  %v2057_v26 = vmax.f32 %v2056_v52, %v7224_v42  ;;  %v7229_v13 = vld [vmem:[#allocation137_spill] sm:$0xff]  ;;  %v7233_v30 = vld [vmem:[#allocation152_spill] sm:$0xff]  ;;  %v7235_v59 = vld [vmem:[#allocation142_spill] sm:$0xff] }
 0x39f   : > { %v5712_v49 = vpop.f32.mrf.mxu2  ;;  %v5714_v46 = vpop.f32.mrf.mxu3  ;;  %v7234_v42 = vld [vmem:[#allocation141_spill] sm:$0xff]  ;;  %v7237_v12 = vld [vmem:[#allocation156_spill] sm:$0xff] }
 0x3a0   : > { %7208 = vst [vmem:[#allocation233_spill] sm:$0xff] %v5712_v49  ;;  %v5718_v9 = vpop.f32.mrf.mxu0  ;;  %v5720_v37 = vpop.f32.mrf.mxu1  ;;  %v1853_v15 = vmax.f32 %v1852_v51, %v7221_v17  ;;  %v1922_v25 = vmax.f32 %v1921_v31, %v7222_v20  ;;  %v1989_v32 = vmax.f32 %v1988_v2, %v7229_v13  ;;  %v2058_v47 = vmax.f32 %v2057_v26, %v7230_v7  ;;  %v7232_v31 = vld [vmem:[#allocation151_spill] sm:$0xff]  ;;  %v7239_v13 = vld [vmem:[#allocation146_spill] sm:$0xff] }
 0x3a1   : > { %7209 = vst [vmem:[#allocation234_spill] sm:$0xff] %v5714_v46  ;;  %v7236_v20 = vld [vmem:[#allocation155_spill] sm:$0xff] }
 0x3a2   : > { %7212 = vst [vmem:[#allocation235_spill] sm:$0xff] %v5720_v37  ;;  %v1854_v54 = vmax.f32 %v1853_v15, %v7225_v18  ;;  %v1923_v0 = vmax.f32 %v1922_v25, %v7226_v56  ;;  %v1990_v15 = vmax.f32 %v1989_v32, %v7234_v42  ;;  %v2059_v25 = vmax.f32 %v2058_v47, %v7235_v59  ;;  %v7238_v18 = vld [vmem:[#allocation145_spill] sm:$0xff]  ;;  %v7240_v7 = vld [vmem:[#allocation159_spill] sm:$0xff]  ;;  %v7245_v42 = vld [vmem:[#allocation164_spill] sm:$0xff] }
 0x3a4   : > { %v1855_v43 = vmax.f32 %v1854_v54, %v7232_v31  ;;  %v1924_v52 = vmax.f32 %v1923_v0, %v7233_v30  ;;  %v1991_v2 = vmax.f32 %v1990_v15, %v7238_v18  ;;  %v2060_v26 = vmax.f32 %v2059_v25, %v7239_v13  ;;  %v7243_v31 = vld [vmem:[#allocation150_spill] sm:$0xff]  ;;  %v7244_v30 = vld [vmem:[#allocation163_spill] sm:$0xff]  ;;  %v7256_v18 = vld [vmem:[#allocation161_spill] sm:$0xff] }
 0x3a6   : > { %v1856_v56 = vmax.f32 %v1855_v43, %v7236_v20  ;;  %v1925_v17 = vmax.f32 %v1924_v52, %v7237_v12  ;;  %v1992_v54 = vmax.f32 %v1991_v2, %v7242_v58  ;;  %v2061_v0 = vmax.f32 %v2060_v26, %v7243_v31  ;;  %v7248_v52 = vld [vmem:[#allocation153_spill] sm:$0xff]  ;;  %v7249_v12 = vld [vmem:[#allocation154_spill] sm:$0xff]  ;;  %v7251_v2 = vld [vmem:[#allocation168_spill] sm:$0xff] }
 0x3a7   : > { %v5736_v3 = vpop.f32.mrf.mxu2  ;;  %v5738_v10 = vpop.f32.mrf.mxu3  ;;  %v7253_v31 = vld [vmem:[#allocation158_spill] sm:$0xff] }
 0x3a8   : > { %7227 = vst [vmem:[#allocation236_spill] sm:$0xff] %v5736_v3  ;;  %v5742_v11 = vpop.f32.mrf.mxu0  ;;  %v5744_v51 = vpop.f32.mrf.mxu1  ;;  %v1857_v35 = vmax.f32 %v1856_v56, %v7240_v7  ;;  %v1926_v53 = vmax.f32 %v1925_v17, %v7241_v44  ;;  %v1993_v15 = vmax.f32 %v1992_v54, %v7248_v52  ;;  %v2062_v25 = vmax.f32 %v2061_v0, %v7249_v12  ;;  %v7252_v44 = vld [vmem:[#allocation157_spill] sm:$0xff]  ;;  %v7255_v7 = vld [vmem:[#allocation172_spill] sm:$0xff]  ;;  %v7257_v58 = vld [vmem:[#allocation162_spill] sm:$0xff] }
 0x3a9   : > { %7228 = vst [vmem:[#allocation237_spill] sm:$0xff] %v5738_v10  ;;  %v7258_v12 = vld [vmem:[#allocation175_spill] sm:$0xff] }
 0x3aa   : > { %7231 = vst [vmem:[#allocation238_spill] sm:$0xff] %v5744_v51  ;;  %v1858_v32 = vmax.f32 %v1857_v35, %v7244_v30  ;;  %v1927_v47 = vmax.f32 %v1926_v53, %v7245_v42  ;;  %v1994_v35 = vmax.f32 %v1993_v15, %v7252_v44  ;;  %v2063_v53 = vmax.f32 %v2062_v25, %v7253_v31  ;;  %v7254_v42 = vld [vmem:[#allocation171_spill] sm:$0xff]  ;;  %v7263_v44 = vld [vmem:[#allocation180_spill] sm:$0xff] }
 0x3ac   : > { %v1859_v17 = vmax.f32 %v1858_v32, %v5412_v55  ;;  %v1928_v26 = vmax.f32 %v1927_v47, %v7251_v2  ;;  %v1995_v54 = vmax.f32 %v1994_v35, %v7256_v18  ;;  %v2064_v0 = vmax.f32 %v2063_v53, %v7257_v58  ;;  %v7261_v55 = vld [vmem:[#allocation166_spill] sm:$0xff]  ;;  %v7262_v2 = vld [vmem:[#allocation179_spill] sm:$0xff] }
 0x3ad   : > { %v7267_v18 = vld [vmem:[#allocation170_spill] sm:$0xff] }
 0x3ae   : > { %v1860_v20 = vmax.f32 %v1859_v17, %v7254_v42  ;;  %v1929_v30 = vmax.f32 %v1928_v26, %v7255_v7  ;;  %v1996_v32 = vmax.f32 %v1995_v54, %v7260_v27  ;;  %v2065_v47 = vmax.f32 %v2064_v0, %v7261_v55  ;;  %v7266_v26 = vld [vmem:[#allocation169_spill] sm:$0xff]  ;;  %v7269_v27 = vld [vmem:[#allocation184_spill] sm:$0xff]  ;;  %v7271_v7 = vld [vmem:[#allocation174_spill] sm:$0xff] }
 0x3af   : > { %v5760_v59 = vpop.f32.mrf.mxu2  ;;  %v5762_v43 = vpop.f32.mrf.mxu3  ;;  %v7270_v55 = vld [vmem:[#allocation173_spill] sm:$0xff]  ;;  %v7273_v42 = vld [vmem:[#allocation188_spill] sm:$0xff] }
 0x3b0   : > { %7246 = vst [vmem:[#allocation239_spill] sm:$0xff] %v5760_v59  ;;  %v5766_v13 = vpop.f32.mrf.mxu0  ;;  %v5768_v56 = vpop.f32.mrf.mxu1  ;;  %v1861_v52 = vmax.f32 %v1860_v20, %v7258_v12  ;;  %v1930_v4 = vmax.f32 %v1929_v30, %v7259_v63  ;;  %v1997_v35 = vmax.f32 %v1996_v32, %v7266_v26  ;;  %v2066_v53 = vmax.f32 %v2065_v47, %v7267_v18  ;;  %v7268_v30 = vld [vmem:[#allocation183_spill] sm:$0xff]  ;;  %v7275_v26 = vld [vmem:[#allocation178_spill] sm:$0xff] }
 0x3b1   : > { %7247 = vst [vmem:[#allocation240_spill] sm:$0xff] %v5762_v43  ;;  %v7272_v63 = vld [vmem:[#allocation187_spill] sm:$0xff]  ;;  %v7296_v43 = vld [vmem:[#allocation197_spill] sm:$0xff] }
 0x3b2   : > { %7250 = vst [vmem:[#allocation241_spill] sm:$0xff] %v5768_v56  ;;  %v1862_v15 = vmax.f32 %v1861_v52, %v7262_v2  ;;  %v1931_v25 = vmax.f32 %v1930_v4, %v7263_v44  ;;  %v1998_v52 = vmax.f32 %v1997_v35, %v7270_v55  ;;  %v2067_v4 = vmax.f32 %v2066_v53, %v7271_v7  ;;  %v7274_v2 = vld [vmem:[#allocation177_spill] sm:$0xff]  ;;  %v7276_v18 = vld [vmem:[#allocation191_spill] sm:$0xff]  ;;  %v7281_v55 = vld [vmem:[#allocation196_spill] sm:$0xff] }
 0x3b4   : > { %v1863_v54 = vmax.f32 %v1862_v15, %v7268_v30  ;;  %v1932_v0 = vmax.f32 %v1931_v25, %v7269_v27  ;;  %v1999_v32 = vmax.f32 %v1998_v52, %v7274_v2  ;;  %v2068_v47 = vmax.f32 %v2067_v4, %v7275_v26  ;;  %v7279_v30 = vld [vmem:[#allocation182_spill] sm:$0xff]  ;;  %v7280_v27 = vld [vmem:[#allocation195_spill] sm:$0xff] }
 0x3b5   : > { %v7285_v2 = vld [vmem:[#allocation186_spill] sm:$0xff] }
 0x3b6   : > { %v1864_v44 = vmax.f32 %v1863_v54, %v7272_v63  ;;  %v1933_v12 = vmax.f32 %v1932_v0, %v7273_v42  ;;  %v2069_v25 = vmax.f32 %v2068_v47, %v7279_v30  ;;  %v7284_v0 = vld [vmem:[#allocation185_spill] sm:$0xff]  ;;  %v7289_v42 = vld [vmem:[#allocation190_spill] sm:$0xff]  ;;  %v7291_v63 = vld [vmem:[#allocation204_spill] sm:$0xff] }
 0x3b7   : > { %v5784_v31 = vpop.f32.mrf.mxu2  ;;  %v5786_v17 = vpop.f32.mrf.mxu3  ;;  %v7288_v30 = vld [vmem:[#allocation189_spill] sm:$0xff] }
 0x3b8   : > { %7264 = vst [vmem:[#allocation242_spill] sm:$0xff] %v5784_v31  ;;  %v5790_v58 = vpop.f32.mrf.mxu0  ;;  %v5792_v20 = vpop.f32.mrf.mxu1  ;;  %v1865_v1 = vmax.f32 %v1864_v44, %v7276_v18  ;;  %v1934_v34 = vmax.f32 %v1933_v12, %v7277_v38  ;;  %v2070_v4 = vmax.f32 %v2069_v25, %v7285_v2  ;;  %v7286_v12 = vld [vmem:[#allocation199_spill] sm:$0xff] }
 0x3b9   : > { %7265 = vst [vmem:[#allocation243_spill] sm:$0xff] %v5786_v17  ;;  %v7278_v17 = vld [vmem:[#allocation181_spill] sm:$0xff]  ;;  %v7290_v38 = vld [vmem:[#allocation203_spill] sm:$0xff] }
 0x3ba   : > { %v2000_v15 = vmax.f32 %v1999_v32, %v7278_v17  ;;  %v1866_v35 = vmax.f32 %v1865_v1, %v7280_v27  ;;  %v1935_v53 = vmax.f32 %v1934_v34, %v7281_v55  ;;  %v7287_v17 = vld [vmem:[#allocation200_spill] sm:$0xff]  ;;  %v2071_v34 = vmax.f32 %v2070_v4, %v7289_v42  ;;  %v7292_v27 = vld [vmem:[#allocation193_spill] sm:$0xff]  ;;  %v7294_v2 = vld [vmem:[#allocation207_spill] sm:$0xff] }
 0x3bc   : > { %v2001_v52 = vmax.f32 %v2000_v15, %v7284_v0  ;;  %v1867_v32 = vmax.f32 %v1866_v35, %v7286_v12  ;;  %v1936_v47 = vmax.f32 %v1935_v53, %v7287_v17  ;;  %v7293_v0 = vld [vmem:[#allocation194_spill] sm:$0xff]  ;;  %v7298_v17 = vld [vmem:[#allocation211_spill] sm:$0xff] }
 0x3bd   : > { %v2072_v25 = vmax.f32 %v2071_v34, %v7293_v0  ;;  %v7297_v12 = vld [vmem:[#allocation198_spill] sm:$0xff] }
 0x3be   : > { %v2002_v1 = vmax.f32 %v2001_v52, %v7288_v30  ;;  %v1868_v55 = vmax.f32 %v1867_v32, %v7290_v38  ;;  %v1937_v18 = vmax.f32 %v1936_v47, %v7291_v63  ;;  %v7299_v30 = vld [vmem:[#allocation212_spill] sm:$0xff]  ;;  %v7302_v47 = vld [vmem:[#allocation201_spill] sm:$0xff]  ;;  %v7307_v63 = vld [vmem:[#allocation206_spill] sm:$0xff] }
 0x3bf   : > { %v5808_v7 = vpop.f32.mrf.mxu2  ;;  %v5810_v54 = vpop.f32.mrf.mxu3  ;;  %v2073_v53 = vmax.f32 %v2072_v25, %v7297_v12  ;;  %v7306_v12 = vld [vmem:[#allocation205_spill] sm:$0xff] }
 0x3c0   : > { %7282 = vst [vmem:[#allocation244_spill] sm:$0xff] %v5808_v7  ;;  %v5814_v26 = vpop.f32.mrf.mxu0  ;;  %v5816_v44 = vpop.f32.mrf.mxu1  ;;  %v2003_v15 = vmax.f32 %v2002_v1, %v7292_v27  ;;  %v7295_v7 = vld [vmem:[#allocation208_spill] sm:$0xff]  ;;  %v7303_v27 = vld [vmem:[#allocation202_spill] sm:$0xff]  ;;  %v7308_v38 = vld [vmem:[#allocation209_spill] sm:$0xff] }
 0x3c1   : > { %7283 = vst [vmem:[#allocation245_spill] sm:$0xff] %v5810_v54  ;;  %v1869_v54 = vmax.f32 %v1868_v55, %v7294_v2  ;;  %v1938_v31 = vmax.f32 %v1937_v18, %v7295_v7  ;;  %v2074_v34 = vmax.f32 %v2073_v53, %v7303_v27  ;;  %v7304_v18 = vld [vmem:[#allocation215_spill] sm:$0xff] }
 0x3c2   : > { %v2004_v35 = vmax.f32 %v2003_v15, %v7296_v43  ;;  %v7305_v43 = vld [vmem:[#allocation216_spill] sm:$0xff] }
 0x3c3   : > { %v1870_v52 = vmax.f32 %v1869_v54, %v7298_v17  ;;  %v1939_v4 = vmax.f32 %v1938_v31, %v7299_v30  ;;  %v2075_v31 = vmax.f32 %v2074_v34, %v7307_v63  ;;  %v7310_v17 = vld [vmem:[#allocation213_spill] sm:$0xff] }
 0x3c4   : > { %v2005_v1 = vmax.f32 %v2004_v35, %v7302_v47  ;;  %v7309_v47 = vld [vmem:[#allocation210_spill] sm:$0xff] }
 0x3c5   : > { %v1871_v15 = vmax.f32 %v1870_v52, %v7304_v18  ;;  %v1940_v25 = vmax.f32 %v1939_v4, %v7305_v43  ;;  %v2076_v53 = vmax.f32 %v2075_v31, %v7309_v47  ;;  %v7311_v18 = vld [vmem:[#allocation214_spill] sm:$0xff] }
 0x3c6   : > { %v2006_v54 = vmax.f32 %v2005_v1, %v7306_v12 }
 0x3c7   : > { %v5832_v42 = vpop.f32.mrf.mxu2  ;;  %v5834_v32 = vpop.f32.mrf.mxu3  ;;  %v1872_v7 = vmax.f32 %v1871_v15, %v5574_v41  ;;  %v1941_v30 = vmax.f32 %v1940_v25, %v5576_v36  ;;  %v2077_v4 = vmax.f32 %v2076_v53, %v7311_v18 }
 0x3c8   : > { %7300 = vst [vmem:[#allocation246_spill] sm:$0xff] %v5832_v42  ;;  %v5838_v0 = vpop.f32.mrf.mxu0  ;;  %v5840_v55 = vpop.f32.mrf.mxu1  ;;  %v2007_v35 = vmax.f32 %v2006_v54, %v7308_v38 }
 0x3c9   : > { %7301 = vst [vmem:[#allocation247_spill] sm:$0xff] %v5834_v32  ;;  %v1873_v27 = vmax.f32 %v1872_v7, %v5598_v14  ;;  %v1942_v2 = vmax.f32 %v1941_v30, %v5600_v5  ;;  %v2078_v54 = vmax.f32 %v2077_v4, %v5572_v60 }
 0x3ca   : > { %v2008_v52 = vmax.f32 %v2007_v35, %v7310_v17 }
 0x3cb   : > { %v1874_v1 = vmax.f32 %v1873_v27, %v5622_v16  ;;  %v1943_v34 = vmax.f32 %v1942_v2, %v5624_v22  ;;  %v2079_v2 = vmax.f32 %v2078_v54, %v5594_v48 }
 0x3cc   : > { %v2009_v25 = vmax.f32 %v2008_v52, %v5570_v40 }
 0x3cd   : > { %v1875_v30 = vmax.f32 %v1874_v1, %v5646_v62  ;;  %v1944_v35 = vmax.f32 %v1943_v34, %v5648_v50  ;;  %v2080_v4 = vmax.f32 %v2079_v2, %v5618_v6  ;;  %v7335_v6 = vld [vmem:[#allocation71_spill] sm:$0xff] }
 0x3ce   : > { %v2010_v27 = vmax.f32 %v2009_v25, %v5592_v21 }
 0x3cf   : > { %v5856_v63 = vpop.f32.mrf.mxu2  ;;  %v5858_v15 = vpop.f32.mrf.mxu3  ;;  %v1876_v53 = vmax.f32 %v1875_v30, %v5670_v61  ;;  %v1945_v36 = vmax.f32 %v1944_v35, %v5672_v33  ;;  %v2081_v34 = vmax.f32 %v2080_v4, %v5642_v19  ;;  %v4701_v19 = vmov -inf  }
 0x3d0   : > { %7312 = vst [vmem:[#allocation216_spill] sm:$0xff] %v5856_v63  ;;  %v5862_v31 = vpop.f32.mrf.mxu0  ;;  %v5864_v7 = vpop.f32.mrf.mxu1  ;;  %v2011_v52 = vmax.f32 %v2010_v27, %v5616_v29 }
 0x3d1   : > { %7313 = vst [vmem:[#allocation205_spill] sm:$0xff] %v5858_v15  ;;  %v1877_v5 = vmax.f32 %v1876_v53, %v5694_v45  ;;  %v1946_v22 = vmax.f32 %v1945_v36, %v5696_v24  ;;  %v2082_v27 = vmax.f32 %v2081_v34, %v5666_v39  ;;  %v507_v36 = vlaneseq }
 0x3d2   : > { %v2012_v1 = vmax.f32 %v2011_v52, %v5640_v57 }
 0x3d3   : > { %v1878_v25 = vmax.f32 %v1877_v5, %v5718_v9  ;;  %v1947_v54 = vmax.f32 %v1946_v22, %v5720_v37  ;;  %v2083_v22 = vmax.f32 %v2082_v27, %v5690_v8  ;;  %vm5894_vm2 = vcmp.lt.s32.totalorder %v507_v36, 512 }
 0x3d4   : > { %v2013_v35 = vmax.f32 %v2012_v1, %v5664_v23  ;;  %511 = vst.msk [vmem:[#allocation3] sm:$0xf] %vm5894_vm2, %v4701_v19  ;;  %v7323_v23 = vld [vmem:[#allocation244_spill] sm:$0xff] }
 0x3d5   : > { %v1879_v52 = vmax.f32 %v1878_v25, %v5742_v11  ;;  %v1948_v4 = vmax.f32 %v1947_v54, %v5744_v51  ;;  %v2084_v54 = vmax.f32 %v2083_v22, %v5714_v46 }
 0x3d6   : > { %v2014_v5 = vmax.f32 %v2013_v35, %v5688_v28  ;;  %v7324_v28 = vld [vmem:[#allocation245_spill] sm:$0xff] }
 0x3d7   : > { %v5880_v48 = vpop.f32.mrf.mxu2  ;;  %v5882_v30 = vpop.f32.mrf.mxu3  ;;  %v1880_v1 = vmax.f32 %v1879_v52, %v5766_v13  ;;  %v1949_v34 = vmax.f32 %v1948_v4, %v5768_v56  ;;  %v2085_v39 = vmax.f32 %v2084_v54, %v5738_v10  ;;  %v7321_v54 = vld [vmem:[#allocation242_spill] sm:$0xff]  ;;  %v7322_v10 = vld [vmem:[#allocation243_spill] sm:$0xff] }
 0x3d8   : > { %7314 = vst [vmem:[#allocation209_spill] sm:$0xff] %v5880_v48  ;;  %v5886_v2 = vpop.f32.mrf.mxu0  ;;  %v5888_v53 = vpop.f32.mrf.mxu1  ;;  %v2015_v25 = vmax.f32 %v2014_v5, %v5712_v49  ;;  %v7320_v5 = vld [vmem:[#allocation240_spill] sm:$0xff] }
 0x3d9   : > { %7315 = vst [vmem:[#allocation210_spill] sm:$0xff] %v5882_v30  ;;  %v1881_v35 = vmax.f32 %v1880_v1, %v5790_v58  ;;  %v1950_v27 = vmax.f32 %v1949_v34, %v5792_v20  ;;  %v2086_v22 = vmax.f32 %v2085_v39, %v7320_v5 }
 0x3da   : > { %v2016_v36 = vmax.f32 %v2015_v25, %v5736_v3 }
 0x3db   : > { %v1882_v52 = vmax.f32 %v1881_v35, %v5814_v26  ;;  %v1951_v4 = vmax.f32 %v1950_v27, %v5816_v44  ;;  %v2087_v27 = vmax.f32 %v2086_v22, %v7322_v10 }
 0x3dc   : > { %v2017_v19 = vmax.f32 %v2016_v36, %v5760_v59 }
 0x3dd   : > { %v1883_v34 = vmax.f32 %v1882_v52, %v5838_v0  ;;  %v1952_v25 = vmax.f32 %v1951_v4, %v5840_v55  ;;  %v2088_v39 = vmax.f32 %v2087_v27, %v7324_v28 }
 0x3de   : > { %v2018_v35 = vmax.f32 %v2017_v19, %v7321_v54 }
 0x3df   : > { %v5910_v8 = vpop.f32.mrf.mxu2  ;;  %v5912_v21 = vpop.f32.mrf.mxu3  ;;  %v1884_v29 = vmax.f32 %v1883_v34, %v5862_v31  ;;  %v1953_v57 = vmax.f32 %v1952_v25, %v5864_v7  ;;  %v2089_v4 = vmax.f32 %v2088_v39, %v5834_v32 }
 0x3e0   : > { %7318 = vst [vmem:[#allocation213_spill] sm:$0xff] %v5910_v8  ;;  %v5916_v46 = vpop.f32.mrf.mxu0  ;;  %v5918_v1 = vpop.f32.mrf.mxu1  ;;  %v2019_v36 = vmax.f32 %v2018_v35, %v7323_v23 }
 0x3e1   : > { %7319 = vst [vmem:[#allocation214_spill] sm:$0xff] %v5912_v21  ;;  %v1885_v5 = vmax.f32 %v1884_v29, %v5886_v2  ;;  %v1954_v49 = vmax.f32 %v1953_v57, %v5888_v53  ;;  %v2090_v35 = vmax.f32 %v2089_v4, %v5858_v15 }
 0x3e2   : > { %v2020_v52 = vmax.f32 %v2019_v36, %v5832_v42 }
 0x3e3   : > { %v1886_v19 = vmax.f32 %v1885_v5, %v5916_v46  ;;  %v1955_v22 = vmax.f32 %v1954_v49, %v5918_v1  ;;  %v2091_v49 = vmax.f32 %v2090_v35, %v5882_v30 }
 0x3e4   : > { %v2021_v25 = vmax.f32 %v2020_v52, %v5856_v63 }
 0x3e5   : > { %v2092_v52 = vmax.f32 %v2091_v49, %v5912_v21 }
 0x3e6   : > { %v2022_v5 = vmax.f32 %v2021_v25, %v5880_v48 }
 0x3e7   : > { %v5934_v10 = vpop.f32.mrf.mxu2  ;;  %v5936_v34 = vpop.f32.mrf.mxu3 }
 0x3e8   : > { %7325 = vst [vmem:[#allocation248_spill] sm:$0xff] %v5934_v10  ;;  %v5940_v27 = vpop.f32.mrf.mxu0  ;;  %v5942_v29 = vpop.f32.mrf.mxu1  ;;  %v2023_v32 = vmax.f32 %v2022_v5, %v5910_v8  ;;  %v2093_v15 = vmax.f32 %v2092_v52, %v5936_v34 }
 0x3e9   : > { %7326 = vst [vmem:[#allocation249_spill] sm:$0xff] %v5936_v34  ;;  %v1887_v57 = vmax.f32 %v1886_v19, %v5940_v27  ;;  %v1956_v36 = vmax.f32 %v1955_v22, %v5942_v29 }
 0x3ea   : > { %v2024_v4 = vmax.f32 %v2023_v32, %v5934_v10 }
 0x3eb   : > { %v1888_v39 = vrot.slane %v1887_v57, 4  ;;  %v1957_v28 = vrot.slane %v1956_v36, 4 }
 0x3ed   : > { %v1958_v3 = vmax.f32 %v1956_v36, %v1957_v28  ;;  %v1889_v59 = vmax.f32 %v1887_v57, %v1888_v39 }
 0x3ef   : > { %v1959_v54 = vrot.slane %v1958_v3, 2  ;;  %v5952_v19 = vpop.f32.mrf.mxu2  ;;  %v5954_v22 = vpop.f32.mrf.mxu3  ;;  %v1890_v23 = vrot.slane %v1889_v59, 2 }
 0x3f0   : > { %7327 = vst [vmem:[#allocation250_spill] sm:$0xff] %v5952_v19  ;;  %v2025_v25 = vmax.f32 %v2024_v4, %v5952_v19  ;;  %v2094_v35 = vmax.f32 %v2093_v15, %v5954_v22 }
 0x3f1   : > { %7328 = vst [vmem:[#allocation251_spill] sm:$0xff] %v5954_v22  ;;  %v1960_v30 = vmax.f32 %v1958_v3, %v1959_v54  ;;  %v1891_v32 = vmax.f32 %v1889_v59, %v1890_v23 }
 0x3f2   : > { %v2026_v5 = vrot.slane %v2025_v25, 4  ;;  %v2095_v42 = vrot.slane %v2094_v35, 4 }
 0x3f3   : > { %v1961_v49 = vrot.slane %v1960_v30, 1  ;;  %v1892_v63 = vrot.slane %v1891_v32, 1 }
 0x3f4   : > { %v2027_v28 = vmax.f32 %v2025_v25, %v2026_v5  ;;  %v2096_v36 = vmax.f32 %v2094_v35, %v2095_v42  ;;  %v5958_v25 = vld [vmem:[#allocation3] sm:$0xf] }
 0x3f5   : > { %v1962_v57 = vmax.f32 %v1960_v30, %v1961_v49  ;;  %v1893_v3 = vmax.f32 %v1891_v32, %v1892_v63  ;;  %7329 = vst [vmem:[#allocation252_spill] sm:$0xff] %v5958_v25  ;;  %v7334_v49 = vld [vmem:[#allocation75_spill] sm:$0xff] }
 0x3f6   : > { %v2028_v21 = vrot.slane %v2027_v28, 2  ;;  %v2097_v52 = vrot.slane %v2096_v36, 2 }
 0x3f7   : > { %v2105_v10 = vrot.slane %v1962_v57, 7  ;;  %v7336_v57 = vld [vmem:[#allocation67_spill] sm:$0xff] }
 0x3f8   : > { %v2029_v39 = vmax.f32 %v2027_v28, %v2028_v21  ;;  %v2098_v34 = vmax.f32 %v2096_v36, %v2097_v52 }
 0x3f9   : > { %v2109_v23 = vsel %vm2108_vm3, %v1893_v3, %v2105_v10  ;;  %v7332_v10 = vld [vmem:[#allocation83_spill] sm:$0xff] }
 0x3fa   : > { %v2030_v48 = vrot.slane %v2029_v39, 1  ;;  %v2099_v8 = vrot.slane %v2098_v34, 1  ;;  %v7337_v3 = vld [vmem:[#allocation63_spill] sm:$0xff] }
 0x3fc   : > { %v2031_v4 = vmax.f32 %v2029_v39, %v2030_v48  ;;  %v2100_v19 = vmax.f32 %v2098_v34, %v2099_v8  ;;  %v7331_v48 = vld [vmem:[#allocation87_spill] sm:$0xff] }
 0x3fe   : > { %v2106_v15 = vrot.slane %v2031_v4, 6  ;;  %v2107_v54 = vrot.slane %v2100_v19, 5  ;;  %v7333_v19 = vld [vmem:[#allocation79_spill] sm:$0xff] }
 0x400   : > { %v2111_v59 = vsel %vm2110_vm4, %v2106_v15, %v2107_v54 }
 0x401   : > { %v2113_v42 = vsel %vm2112_vm5, %v2109_v23, %v2111_v59  ;;  %v7338_v59 = vld [vmem:[#allocation59_spill] sm:$0xff] }
 0x402   : > { %v5961_v21 = vmax.f32 %v5958_v25, %v2113_v42 }
 0x404   : > { %7330 = vst [vmem:[#allocation253_spill] sm:$0xff] %v5961_v21  ;;  %v5969_v63 = vperm.slane %v5961_v21, 0 }
 0x405   : > { %3309 = vst.msk [vmem:[#allocation3] sm:$0xf] %vm5894_vm2, %v5961_v21 }
 0x406   : > { %v2188_v8 = vsub.f32 %v7331_v48, %v5969_v63  ;;  %v2184_v34 = vsub.f32 %v7332_v10, %v5969_v63  ;;  %v2180_v35 = vsub.f32 %v7333_v19, %v5969_v63  ;;  %v2176_v28 = vsub.f32 %v7334_v49, %v5969_v63  ;;  %v7339_v10 = vld [vmem:[#allocation55_spill] sm:$0xff] }
 0x407   : > { %v2172_v32 = vsub.f32 %v7335_v6, %v5969_v63  ;;  %v2168_v39 = vsub.f32 %v7336_v57, %v5969_v63  ;;  %v2164_v15 = vsub.f32 %v7337_v3, %v5969_v63  ;;  %v2160_v42 = vsub.f32 %v7338_v59, %v5969_v63  ;;  %v7341_v6 = vld [vmem:[#allocation47_spill] sm:$0xff] }
 0x408   : > { %v2504_v5 = vmul.f32 1.442695, %v2188_v8  ;;  %v2496_v36 = vmul.f32 1.442695, %v2184_v34  ;;  %v2488_v52 = vmul.f32 1.442695, %v2180_v35  ;;  %v2156_v34 = vsub.f32 %v7339_v10, %v5969_v63 }
 0x409   : > { %v2480_v4 = vmul.f32 1.442695, %v2176_v28  ;;  %v2472_v54 = vmul.f32 1.442695, %v2172_v32  ;;  %v2464_v48 = vmul.f32 1.442695, %v2168_v39  ;;  %v2148_v32 = vsub.f32 %v7341_v6, %v5969_v63 }
 0x40a   : > { %4028 = vpow2.f32 %v2504_v5  ;;  %v2456_v19 = vmul.f32 1.442695, %v2164_v15  ;;  %v7340_v5 = vld [vmem:[#allocation51_spill] sm:$0xff]  ;;  %v2448_v28 = vmul.f32 1.442695, %v2160_v42 }
 0x40b   : > { %4030 = vpow2.f32 %v2496_v36  ;;  %v2152_v49 = vsub.f32 %v7340_v5, %v5969_v63  ;;  %v7342_v39 = vld [vmem:[#allocation43_spill] sm:$0xff]  ;;  %v2424_v59 = vmul.f32 1.442695, %v2148_v32 }
 0x40c   : > { %4032 = vpow2.f32 %v2488_v52  ;;  %v2440_v52 = vmul.f32 1.442695, %v2156_v34 }
 0x40d   : > { %4034 = vpow2.f32 %v2480_v4  ;;  %v2144_v4 = vsub.f32 %v7342_v39, %v5969_v63  ;;  %v2432_v3 = vmul.f32 1.442695, %v2152_v49 }
 0x40e   : > { %4036 = vpow2.f32 %v2472_v54  ;;  %v7343_v54 = vld [vmem:[#allocation39_spill] sm:$0xff] }
 0x40f   : > { %4038 = vpow2.f32 %v2464_v48  ;;  %v7344_v48 = vld [vmem:[#allocation35_spill] sm:$0xff]  ;;  %v2416_v10 = vmul.f32 1.442695, %v2144_v4 }
 0x410   : > { %v4029_v23 = vpop.eup %4028  ;;  %4040 = vpow2.f32 %v2456_v19  ;;  %v6000_v19 = vperm.slane %v5961_v21, 1 }
 0x411   : > { %2896 = vmatpush.msrb.mxu0 %v4029_v23  ;;  %v4031_v8 = vpop.eup %4030  ;;  %4042 = vpow2.f32 %v2448_v28  ;;  %v2140_v23 = vsub.f32 %v7343_v54, %v5969_v63 }
 0x412   : > { %v4033_v35 = vpop.eup %4032  ;;  %4044 = vpow2.f32 %v2440_v52 }
 0x413   : > { %2897 = vmatpush.msrb.mxu0 %v4031_v8  ;;  %v4035_v36 = vpop.eup %4034  ;;  %v2136_v8 = vsub.f32 %v7344_v48, %v5969_v63  ;;  %4046 = vpow2.f32 %v2432_v3  ;;  %v2408_v49 = vmul.f32 1.442695, %v2140_v23 }
 0x414   : > { %v4037_v57 = vpop.eup %4036  ;;  %4048 = vpow2.f32 %v2424_v59 }
 0x415   : > { %2898 = vmatpush.msrb.mxu0 %v4033_v35  ;;  %v4039_v15 = vpop.eup %4038  ;;  %v7345_v35 = vld [vmem:[#allocation31_spill] sm:$0xff]  ;;  %v2400_v32 = vmul.f32 1.442695, %v2136_v8  ;;  %4050 = vpow2.f32 %v2416_v10 }
 0x416   : > { %v4041_v42 = vpop.eup %4040  ;;  %v2132_v5 = vsub.f32 %v7345_v35, %v5969_v63  ;;  %4052 = vpow2.f32 %v2408_v49 }
 0x417   : > { %2899 = vmatpush.msrb.mxu0 %v4035_v36  ;;  %v4043_v34 = vpop.eup %4042  ;;  %v7346_v36 = vld [vmem:[#allocation27_spill] sm:$0xff]  ;;  %4054 = vpow2.f32 %v2400_v32  ;;  %v6016_v32 = vpop.permute.xlu0 %536 }
 0x418   : > { %v4045_v28 = vpop.eup %4044  ;;  %v2128_v6 = vsub.f32 %v7346_v36, %v5969_v63  ;;  %v2392_v4 = vmul.f32 1.442695, %v2132_v5 }
 0x419   : > { %2900 = vmatpush.msrb.mxu0 %v4037_v57  ;;  %v4047_v52 = vpop.eup %4046  ;;  %v7347_v57 = vld [vmem:[#allocation88_spill] sm:$0xff] }
 0x41a   : > { %v2189_v39 = vsub.f32 %v7347_v57, %v6000_v19  ;;  %v4049_v3 = vpop.eup %4048  ;;  %v2384_v23 = vmul.f32 1.442695, %v2128_v6  ;;  %4056 = vpow2.f32 %v2392_v4  ;;  %v7352_v57 = vld [vmem:[#allocation68_spill] sm:$0xff] }
 0x41b   : > { %2901 = vmatpush.msrb.mxu0 %v4039_v15  ;;  %v7348_v15 = vld [vmem:[#allocation84_spill] sm:$0xff]  ;;  %v4051_v59 = vpop.eup %4050 }
 0x41c   : > { %v2185_v54 = vsub.f32 %v7348_v15, %v6000_v19  ;;  %v2506_v8 = vmul.f32 1.442695, %v2189_v39  ;;  %v4053_v10 = vpop.eup %4052  ;;  %4058 = vpow2.f32 %v2384_v23  ;;  %v2169_v39 = vsub.f32 %v7352_v57, %v6000_v19  ;;  %v7353_v15 = vld [vmem:[#allocation19_spill] sm:$0xff]  ;;  %v7354_v23 = vld [vmem:[#allocation64_spill] sm:$0xff] }
 0x41d   : > { %2902 = vmatpush.msrb.mxu0 %v4041_v42  ;;  %v7349_v42 = vld [vmem:[#allocation80_spill] sm:$0xff]  ;;  %v4055_v49 = vpop.eup %4054 }
 0x41e   : > { %v2181_v48 = vsub.f32 %v7349_v42, %v6000_v19  ;;  %v2498_v5 = vmul.f32 1.442695, %v2185_v54  ;;  %4060 = vpow2.f32 %v2506_v8  ;;  %v6022_v54 = vadd.f32 %v7353_v15, %v6016_v32  ;;  %v7355_v8 = vld [vmem:[#allocation60_spill] sm:$0xff] }
 0x41f   : > { %2903 = vmatpush.msrb.mxu0 %v4043_v34  ;;  %v7350_v34 = vld [vmem:[#allocation76_spill] sm:$0xff] }
 0x420   : > { %v2177_v35 = vsub.f32 %v7350_v34, %v6000_v19  ;;  %v2490_v6 = vmul.f32 1.442695, %v2181_v48  ;;  %4062 = vpow2.f32 %v2498_v5  ;;  %v2466_v34 = vmul.f32 1.442695, %v2169_v39  ;;  %v7356_v5 = vld [vmem:[#allocation56_spill] sm:$0xff] }
 0x421   : > { %2904 = vmatpush.msrb.mxu0 %v4045_v28  ;;  %v7351_v28 = vld [vmem:[#allocation72_spill] sm:$0xff] }
 0x422   : > { %v2173_v36 = vsub.f32 %v7351_v28, %v6000_v19  ;;  %v2482_v4 = vmul.f32 1.442695, %v2177_v35  ;;  %4064 = vpow2.f32 %v2490_v6 }
 0x423   : > { %2905 = vmatpush.msrb.mxu0 %v4047_v52  ;;  %v4057_v52 = vpop.eup %4056 }
 0x424   : > { %v2474_v42 = vmul.f32 1.442695, %v2173_v36  ;;  %4066 = vpow2.f32 %v2482_v4  ;;  %v7357_v36 = vld [vmem:[#allocation52_spill] sm:$0xff]  ;;  %v7358_v4 = vld [vmem:[#allocation21_spill] sm:$0xff] }
 0x425   : > { %2906 = vmatpush.msrb.mxu0 %v4049_v3  ;;  %v4059_v3 = vpop.eup %4058  ;;  %v2153_v6 = vsub.f32 %v7357_v36, %v6000_v19 }
 0x426   : > { %v4061_v48 = vpop.eup %4060  ;;  %4068 = vpow2.f32 %v2474_v42 }
 0x427   : > { %2907 = vmatpush.msrb.mxu0 %v4051_v59  ;;  %v2165_v59 = vsub.f32 %v7354_v23, %v6000_v19  ;;  %v4063_v35 = vpop.eup %4062  ;;  %4070 = vpow2.f32 %v2466_v34  ;;  %v7359_v23 = vld [vmem:[#allocation48_spill] sm:$0xff] }
 0x429   : > { %2908 = vmatpush.msrb.mxu0 %v4053_v10  ;;  %v2161_v10 = vsub.f32 %v7355_v8, %v6000_v19  ;;  %v2458_v28 = vmul.f32 1.442695, %v2165_v59  ;;  %v7360_v8 = vld [vmem:[#allocation44_spill] sm:$0xff] }
 0x42b   : > { %2909 = vmatpush.msrb.mxu0 %v4055_v49  ;;  %v2157_v49 = vsub.f32 %v7356_v5, %v6000_v19  ;;  %v2450_v57 = vmul.f32 1.442695, %v2161_v10  ;;  %4072 = vpow2.f32 %v2458_v28  ;;  %v2434_v10 = vmul.f32 1.442695, %v2153_v6  ;;  %v7361_v5 = vld [vmem:[#allocation40_spill] sm:$0xff] }
 0x42d   : > { %2910 = vmatpush.msrb.mxu0 %v4057_v52  ;;  %v4065_v52 = vpop.eup %4064  ;;  %v2442_v59 = vmul.f32 1.442695, %v2157_v49  ;;  %4074 = vpow2.f32 %v2450_v57  ;;  %v7362_v49 = vld [vmem:[#allocation36_spill] sm:$0xff] }
 0x42e   : > { %v4067_v39 = vpop.eup %4066  ;;  %v2137_v28 = vsub.f32 %v7362_v49, %v6000_v19  ;;  %v7363_v57 = vld [vmem:[#allocation32_spill] sm:$0xff] }
 0x42f   : > { %2911 = vmatpush.msrb.mxu0 %v4059_v3  ;;  %v6033_v3 = vpop.permute.xlu0 %541  ;;  %v4069_v42 = vpop.eup %4068  ;;  %4076 = vpow2.f32 %v2442_v59  ;;  %v7364_v59 = vld [vmem:[#allocation28_spill] sm:$0xff] }
 0x430   : > { %2912 = vmatmul.f32.vlgmr.msrb.gmra.mxu0 %v6022_v54  ;;  %v6037_v15 = vadd.f32 %v7358_v4, %v6033_v3  ;;  %v4071_v34 = vpop.eup %4070  ;;  %4078 = vpow2.f32 %v2434_v10 }
 0x431   : > { %2988 = vmatpush.msra.mxu0 %v4061_v48  ;;  %v2149_v48 = vsub.f32 %v7359_v23, %v6000_v19  ;;  %v4073_v4 = vpop.eup %4072  ;;  %v6049_v23 = vperm.slane %v5961_v21, 2 }
 0x433   : > { %2989 = vmatpush.msra.mxu0 %v4063_v35  ;;  %v2145_v35 = vsub.f32 %v7360_v8, %v6000_v19  ;;  %v2426_v36 = vmul.f32 1.442695, %v2149_v48  ;;  %v4075_v6 = vpop.eup %4074 }
 0x435   : > { %2990 = vmatpush.msra.mxu0 %v4065_v52  ;;  %v2141_v52 = vsub.f32 %v7361_v5, %v6000_v19  ;;  %4080 = vpow2.f32 %v2426_v36  ;;  %v4077_v48 = vpop.eup %4076  ;;  %v2402_v5 = vmul.f32 1.442695, %v2137_v28 }
 0x436   : > { %v4079_v49 = vpop.eup %4078 }
 0x437   : > { %2991 = vmatpush.msra.mxu0 %v4067_v39  ;;  %v2418_v39 = vmul.f32 1.442695, %v2145_v35  ;;  %v2410_v8 = vmul.f32 1.442695, %v2141_v52  ;;  %v7365_v35 = vld [vmem:[#allocation89_spill] sm:$0xff] }
 0x438   : > { %2915 = vmatmul.f32.gmra.mxu0 %v6037_v15  ;;  %v2190_v10 = vsub.f32 %v7365_v35, %v6049_v23  ;;  %v7367_v52 = vld [vmem:[#allocation85_spill] sm:$0xff] }
 0x439   : > { %2992 = vmatpush.msra.mxu0 %v4069_v42  ;;  %v2133_v42 = vsub.f32 %v7363_v57, %v6000_v19  ;;  %4082 = vpow2.f32 %v2418_v39  ;;  %v2186_v36 = vsub.f32 %v7367_v52, %v6049_v23  ;;  %v7368_v57 = vld [vmem:[#allocation147_spill] sm:$0xff]  ;;  %v7369_v39 = vld [vmem:[#allocation81_spill] sm:$0xff] }
 0x43a   : > { %4084 = vpow2.f32 %v2410_v8  ;;  %v2182_v35 = vsub.f32 %v7369_v39, %v6049_v23  ;;  %v7371_v52 = vld [vmem:[#allocation77_spill] sm:$0xff] }
 0x43b   : > { %2993 = vmatpush.msra.mxu0 %v4071_v34  ;;  %v2129_v34 = vsub.f32 %v7364_v59, %v6000_v19  ;;  %v2394_v25 = vmul.f32 1.442695, %v2133_v42  ;;  %v2248_v59 = vsub.f32 %v7368_v57, %v5969_v63  ;;  %4086 = vpow2.f32 %v2402_v5 }
 0x43c   : > { %v2500_v50 = vmul.f32 1.442695, %v2186_v36  ;;  %v2492_v39 = vmul.f32 1.442695, %v2182_v35 }
 0x43d   : > { %2994 = vmatpush.msra.mxu0 %v4073_v4  ;;  %v7366_v4 = vld [vmem:[#allocation151_spill] sm:$0xff]  ;;  %v2386_v28 = vmul.f32 1.442695, %v2129_v34  ;;  %4088 = vpow2.f32 %v2394_v25  ;;  %v2624_v57 = vmul.f32 1.442695, %v2248_v59 }
 0x43e   : > { %v2252_v30 = vsub.f32 %v7366_v4, %v5969_v63  ;;  %v7370_v4 = vld [vmem:[#allocation143_spill] sm:$0xff] }
 0x43f   : > { %2995 = vmatpush.msra.mxu0 %v4075_v6  ;;  %v4081_v6 = vpop.eup %4080  ;;  %v2244_v42 = vsub.f32 %v7370_v4, %v5969_v63  ;;  %v7372_v34 = vld [vmem:[#allocation139_spill] sm:$0xff]  ;;  %4090 = vpow2.f32 %v2386_v28 }
 0x440   : > { %v4083_v22 = vpop.eup %4082  ;;  %v2632_v8 = vmul.f32 1.442695, %v2252_v30  ;;  %v2240_v5 = vsub.f32 %v7372_v34, %v5969_v63  ;;  %v7374_v25 = vld [vmem:[#allocation135_spill] sm:$0xff] }
 0x441   : > { %2996 = vmatpush.msra.mxu0 %v4077_v48  ;;  %v2508_v48 = vmul.f32 1.442695, %v2190_v10  ;;  %v4085_v33 = vpop.eup %4084  ;;  %v7373_v10 = vld [vmem:[#allocation73_spill] sm:$0xff]  ;;  %v2236_v30 = vsub.f32 %v7374_v25, %v5969_v63  ;;  %v2616_v24 = vmul.f32 1.442695, %v2244_v42  ;;  %v7376_v59 = vld [vmem:[#allocation131_spill] sm:$0xff] }
 0x442   : > { %v4087_v4 = vpop.eup %4086  ;;  %v2232_v34 = vsub.f32 %v7376_v59, %v5969_v63 }
 0x443   : > { %2997 = vmatpush.msra.mxu0 %v4079_v49  ;;  %v2178_v49 = vsub.f32 %v7371_v52, %v6049_v23  ;;  %4092 = vpow2.f32 %v2508_v48  ;;  %v4089_v28 = vpop.eup %4088 }
 0x444   : > { %4094 = vpow2.f32 %v2632_v8  ;;  %v7378_v8 = vld [vmem:[#allocation127_spill] sm:$0xff] }
 0x445   : > { %2998 = vmatpush.msra.mxu0 %v4081_v6  ;;  %v2174_v6 = vsub.f32 %v7373_v10, %v6049_v23  ;;  %v2484_v52 = vmul.f32 1.442695, %v2178_v49  ;;  %4096 = vpow2.f32 %v2500_v50  ;;  %v2608_v10 = vmul.f32 1.442695, %v2240_v5  ;;  %v4091_v42 = vpop.eup %4090  ;;  %v7379_v49 = vld [vmem:[#allocation61_spill] sm:$0xff] }
 0x446   : > { %4098 = vpow2.f32 %v2624_v57  ;;  %v2228_v25 = vsub.f32 %v7378_v8, %v5969_v63  ;;  %v7380_v57 = vld [vmem:[#allocation123_spill] sm:$0xff] }
 0x447   : > { %2999 = vmatpush.msra.mxu0 %v4083_v22  ;;  %v7375_v22 = vld [vmem:[#allocation69_spill] sm:$0xff]  ;;  %v2476_v48 = vmul.f32 1.442695, %v2174_v6  ;;  %4100 = vpow2.f32 %v2492_v39  ;;  %v2224_v59 = vsub.f32 %v7380_v57, %v5969_v63  ;;  %v2592_v6 = vmul.f32 1.442695, %v2232_v34 }
 0x448   : > { %v2170_v36 = vsub.f32 %v7375_v22, %v6049_v23  ;;  %v2600_v22 = vmul.f32 1.442695, %v2236_v30  ;;  %4102 = vpow2.f32 %v2616_v24  ;;  %v7383_v34 = vld [vmem:[#allocation53_spill] sm:$0xff] }
 0x449   : > { %3000 = vmatpush.msra.mxu0 %v4085_v33  ;;  %v7377_v33 = vld [vmem:[#allocation65_spill] sm:$0xff]  ;;  %v4093_v50 = vpop.eup %4092  ;;  %4104 = vpow2.f32 %v2484_v52 }
 0x44a   : > { %v2166_v35 = vsub.f32 %v7377_v33, %v6049_v23  ;;  %v2468_v37 = vmul.f32 1.442695, %v2170_v36  ;;  %v4095_v5 = vpop.eup %4094  ;;  %4106 = vpow2.f32 %v2608_v10  ;;  %v7382_v36 = vld [vmem:[#allocation119_spill] sm:$0xff]  ;;  %v2154_v10 = vsub.f32 %v7383_v34, %v6049_v23  ;;  %v7387_v34 = vld [vmem:[#allocation45_spill] sm:$0xff] }
 0x44b   : > { %3001 = vmatpush.msra.mxu0 %v4087_v4  ;;  %v2162_v4 = vsub.f32 %v7379_v49, %v6049_v23  ;;  %v4097_v39 = vpop.eup %4096  ;;  %4108 = vpow2.f32 %v2476_v48  ;;  %2919 = vmatpush.msrb.mxu1 %v4095_v5  ;;  %v2220_v52 = vsub.f32 %v7382_v36, %v5969_v63  ;;  %v2576_v5 = vmul.f32 1.442695, %v2224_v59 }
 0x44c   : > { %v2460_v24 = vmul.f32 1.442695, %v2166_v35  ;;  %v4099_v33 = vpop.eup %4098  ;;  %4110 = vpow2.f32 %v2600_v22  ;;  %v7384_v35 = vld [vmem:[#allocation115_spill] sm:$0xff]  ;;  %v2436_v59 = vmul.f32 1.442695, %v2154_v10 }
 0x44d   : > { %3002 = vmatpush.msra.mxu0 %v4089_v28  ;;  %v7381_v28 = vld [vmem:[#allocation57_spill] sm:$0xff]  ;;  %v4101_v8 = vpop.eup %4100  ;;  %v2452_v49 = vmul.f32 1.442695, %v2162_v4  ;;  %4112 = vpow2.f32 %v2468_v37  ;;  %2920 = vmatpush.msrb.mxu1 %v4099_v33  ;;  %v2216_v48 = vsub.f32 %v7384_v35, %v5969_v63  ;;  %v7386_v4 = vld [vmem:[#allocation111_spill] sm:$0xff]  ;;  %v2568_v33 = vmul.f32 1.442695, %v2220_v52 }
 0x44e   : > { %v2158_v30 = vsub.f32 %v7381_v28, %v6049_v23  ;;  %v4103_v57 = vpop.eup %4102  ;;  %4114 = vpow2.f32 %v2592_v6  ;;  %v7385_v28 = vld [vmem:[#allocation49_spill] sm:$0xff]  ;;  %v2212_v37 = vsub.f32 %v7386_v4, %v5969_v63  ;;  %v2146_v35 = vsub.f32 %v7387_v34, %v6049_v23 }
 0x44f   : > { %3003 = vmatpush.msra.mxu0 %v4091_v42  ;;  %v2584_v42 = vmul.f32 1.442695, %v2228_v25  ;;  %v2150_v36 = vsub.f32 %v7385_v28, %v6049_v23  ;;  %4116 = vpow2.f32 %v2460_v24  ;;  %2921 = vmatpush.msrb.mxu1 %v4103_v57  ;;  %v2560_v57 = vmul.f32 1.442695, %v2216_v48  ;;  %v7389_v52 = vld [vmem:[#allocation41_spill] sm:$0xff] }
 0x450   : > { %3004 = vmatmul.f32.vlgmr.msra.gmra.mxu0 %v6022_v54  ;;  %v2444_v25 = vmul.f32 1.442695, %v2158_v30  ;;  %v7388_v30 = vld [vmem:[#allocation107_spill] sm:$0xff]  ;;  %v7391_v48 = vld [vmem:[#allocation37_spill] sm:$0xff]  ;;  %v2420_v34 = vmul.f32 1.442695, %v2146_v35 }
 0x451   : > { %3080 = vmatpush.msrb.mxu0 %v4093_v50  ;;  %v4105_v50 = vpop.eup %4104  ;;  %4118 = vpow2.f32 %v2584_v42  ;;  %v2208_v24 = vsub.f32 %v7388_v30, %v5969_v63  ;;  %v2142_v42 = vsub.f32 %v7389_v52, %v6049_v23  ;;  %v2428_v28 = vmul.f32 1.442695, %v2150_v36  ;;  %v7392_v36 = vld [vmem:[#allocation99_spill] sm:$0xff] }
 0x452   : > { %v4107_v22 = vpop.eup %4106  ;;  %4120 = vpow2.f32 %v2452_v49  ;;  %v7390_v49 = vld [vmem:[#allocation103_spill] sm:$0xff]  ;;  %v6114_v52 = vperm.slane %v5961_v21, 3 }
 0x453   : > { %3081 = vmatpush.msrb.mxu0 %v4097_v39  ;;  %v4109_v39 = vpop.eup %4108  ;;  %2922 = vmatpush.msrb.mxu1 %v4107_v22  ;;  %4122 = vpow2.f32 %v2576_v5  ;;  %v2552_v22 = vmul.f32 1.442695, %v2212_v37  ;;  %v2138_v5 = vsub.f32 %v7391_v48, %v6049_v23  ;;  %v7393_v37 = vld [vmem:[#allocation33_spill] sm:$0xff] }
 0x454   : > { %v4111_v6 = vpop.eup %4110  ;;  %4124 = vpow2.f32 %v2444_v25  ;;  %v2200_v25 = vsub.f32 %v7392_v36, %v5969_v63 }
 0x455   : > { %3082 = vmatpush.msrb.mxu0 %v4101_v8  ;;  %v4113_v8 = vpop.eup %4112  ;;  %2923 = vmatpush.msrb.mxu1 %v4111_v6  ;;  %4126 = vpow2.f32 %v2568_v33  ;;  %v2544_v6 = vmul.f32 1.442695, %v2208_v24  ;;  %v2134_v33 = vsub.f32 %v7393_v37, %v6049_v23  ;;  %v7395_v24 = vld [vmem:[#allocation29_spill] sm:$0xff]  ;;  %v2404_v36 = vmul.f32 1.442695, %v2138_v5  ;;  %v7397_v37 = vld [vmem:[#allocation90_spill] sm:$0xff] }
 0x456   : > { %v4115_v10 = vpop.eup %4114  ;;  %4128 = vpow2.f32 %v2436_v59  ;;  %v7394_v59 = vld [vmem:[#allocation95_spill] sm:$0xff]  ;;  %v7398_v5 = vld [vmem:[#allocation152_spill] sm:$0xff] }
 0x457   : > { %3083 = vmatpush.msrb.mxu0 %v4105_v50  ;;  %v2204_v50 = vsub.f32 %v7390_v49, %v5969_v63  ;;  %v4117_v4 = vpop.eup %4116  ;;  %2924 = vmatpush.msrb.mxu1 %v4115_v10  ;;  %4130 = vpow2.f32 %v2560_v57  ;;  %v2412_v49 = vmul.f32 1.442695, %v2142_v42  ;;  %v2130_v57 = vsub.f32 %v7395_v24, %v6049_v23  ;;  %v7396_v42 = vld [vmem:[#allocation91_spill] sm:$0xff]  ;;  %v7399_v24 = vld [vmem:[#allocation86_spill] sm:$0xff] }
 0x458   : > { %3007 = vmatmul.f32.gmra.mxu0 %v6037_v15  ;;  %v4119_v30 = vpop.eup %4118  ;;  %4132 = vpow2.f32 %v2428_v28  ;;  %v2192_v28 = vsub.f32 %v7396_v42, %v5969_v63  ;;  %v2187_v42 = vsub.f32 %v7399_v24, %v6114_v52  ;;  %v7403_v24 = vld [vmem:[#allocation78_spill] sm:$0xff] }
 0x459   : > { %3084 = vmatpush.msrb.mxu0 %v4109_v39  ;;  %v4121_v39 = vpop.eup %4120  ;;  %2925 = vmatpush.msrb.mxu1 %v4119_v30  ;;  %v2536_v10 = vmul.f32 1.442695, %v2204_v50  ;;  %4134 = vpow2.f32 %v2552_v22  ;;  %v2528_v30 = vmul.f32 1.442695, %v2200_v25  ;;  %v2396_v50 = vmul.f32 1.442695, %v2134_v33 }
 0x45a   : > { %v4123_v35 = vpop.eup %4122  ;;  %4136 = vpow2.f32 %v2420_v34  ;;  %v2253_v34 = vsub.f32 %v7398_v5, %v6000_v19  ;;  %v2388_v25 = vmul.f32 1.442695, %v2130_v57  ;;  %v7400_v33 = vld [vmem:[#allocation148_spill] sm:$0xff] }
 0x45b   : > { %3085 = vmatpush.msrb.mxu0 %v4113_v8  ;;  %v2196_v8 = vsub.f32 %v7394_v59, %v5969_v63  ;;  %v4125_v48 = vpop.eup %4124  ;;  %2926 = vmatpush.msrb.mxu1 %v4123_v35  ;;  %4138 = vpow2.f32 %v2544_v6  ;;  %v2191_v59 = vsub.f32 %v7397_v37, %v6114_v52  ;;  %v7401_v37 = vld [vmem:[#allocation82_spill] sm:$0xff]  ;;  %v7402_v57 = vld [vmem:[#allocation144_spill] sm:$0xff] }
 0x45c   : > { %v4127_v21 = vpop.eup %4126  ;;  %4140 = vpow2.f32 %v2412_v49  ;;  %v2249_v49 = vsub.f32 %v7400_v33, %v6000_v19  ;;  %v2183_v5 = vsub.f32 %v7401_v37, %v6114_v52  ;;  %v2179_v33 = vsub.f32 %v7403_v24, %v6114_v52  ;;  %v7405_v37 = vld [vmem:[#allocation74_spill] sm:$0xff] }
 0x45d   : > { %3086 = vmatpush.msrb.mxu0 %v4117_v4  ;;  %v4129_v4 = vpop.eup %4128  ;;  %2927 = vmatpush.msrb.mxu1 %v4127_v21  ;;  %v2520_v35 = vmul.f32 1.442695, %v2196_v8  ;;  %4142 = vpow2.f32 %v2536_v10  ;;  %v2512_v21 = vmul.f32 1.442695, %v2192_v28  ;;  %v2510_v8 = vmul.f32 1.442695, %v2191_v59 }
 0x45e   : > { %v4131_v22 = vpop.eup %4130  ;;  %4144 = vpow2.f32 %v2404_v36  ;;  %v2245_v36 = vsub.f32 %v7402_v57, %v6000_v19  ;;  %v2502_v28 = vmul.f32 1.442695, %v2187_v42  ;;  %v2175_v57 = vsub.f32 %v7405_v37, %v6114_v52  ;;  %v7407_v24 = vld [vmem:[#allocation70_spill] sm:$0xff] }
 0x45f   : > { %3087 = vmatpush.msrb.mxu0 %v4121_v39  ;;  %v4133_v39 = vpop.eup %4132  ;;  %2928 = vmatpush.msrb.mxu1 %v4131_v22  ;;  %4146 = vpow2.f32 %v2528_v30  ;;  %v7409_v37 = vld [vmem:[#allocation66_spill] sm:$0xff] }
 0x460   : > { %v4135_v6 = vpop.eup %4134  ;;  %4148 = vpow2.f32 %v2396_v50  ;;  %v7404_v50 = vld [vmem:[#allocation140_spill] sm:$0xff] }
 0x461   : > { %3088 = vmatpush.msrb.mxu0 %v4125_v48  ;;  %v4137_v48 = vpop.eup %4136  ;;  %2929 = vmatpush.msrb.mxu1 %v4135_v6  ;;  %4150 = vpow2.f32 %v2520_v35  ;;  %v2241_v59 = vsub.f32 %v7404_v50, %v6000_v19  ;;  %v2494_v35 = vmul.f32 1.442695, %v2183_v5  ;;  %v2171_v50 = vsub.f32 %v7407_v24, %v6114_v52  ;;  %v7408_v5 = vld [vmem:[#allocation132_spill] sm:$0xff] }
 0x462   : > { %v4139_v10 = vpop.eup %4138  ;;  %4152 = vpow2.f32 %v2388_v25  ;;  %v7406_v25 = vld [vmem:[#allocation136_spill] sm:$0xff] }
 0x463   : > { %3089 = vmatpush.msrb.mxu0 %v4129_v4  ;;  %v2634_v4 = vmul.f32 1.442695, %v2253_v34  ;;  %v4141_v22 = vpop.eup %4140  ;;  %2930 = vmatpush.msrb.mxu1 %v4139_v10  ;;  %4154 = vpow2.f32 %v2512_v21  ;;  %v2237_v42 = vsub.f32 %v7406_v25, %v6000_v19  ;;  %v2618_v10 = vmul.f32 1.442695, %v2245_v36 }
 0x464   : > { %v4143_v30 = vpop.eup %4142  ;;  %4156 = vpow2.f32 %v2510_v8  ;;  %v2486_v21 = vmul.f32 1.442695, %v2179_v33  ;;  %v2233_v8 = vsub.f32 %v7408_v5, %v6000_v19  ;;  %v2167_v25 = vsub.f32 %v7409_v37, %v6114_v52  ;;  %v7410_v33 = vld [vmem:[#allocation23_spill] sm:$0xff] }
 0x465   : > { %3090 = vmatpush.msrb.mxu0 %v4133_v39  ;;  %v2626_v39 = vmul.f32 1.442695, %v2249_v49  ;;  %v4145_v6 = vpop.eup %4144  ;;  %2931 = vmatpush.msrb.mxu1 %v4143_v30  ;;  %4158 = vpow2.f32 %v2634_v4  ;;  %v2610_v30 = vmul.f32 1.442695, %v2241_v59  ;;  %v2478_v36 = vmul.f32 1.442695, %v2175_v57 }
 0x466   : > { %v4147_v34 = vpop.eup %4146  ;;  %4160 = vpow2.f32 %v2502_v28  ;;  %v6152_v28 = vadd.f32 %v7410_v33, %v6016_v32  ;;  %v2602_v24 = vmul.f32 1.442695, %v2237_v42  ;;  %v2470_v51 = vmul.f32 1.442695, %v2171_v50 }
 0x467   : > { %3091 = vmatpush.msrb.mxu0 %v4137_v48  ;;  %v4149_v48 = vpop.eup %4148  ;;  %2932 = vmatpush.msrb.mxu1 %v4147_v34  ;;  %4162 = vpow2.f32 %v2626_v39  ;;  %v7412_v39 = vld [vmem:[#allocation62_spill] sm:$0xff]  ;;  %v2462_v33 = vmul.f32 1.442695, %v2167_v25  ;;  %v7417_v25 = vld [vmem:[#allocation116_spill] sm:$0xff] }
 0x468   : > { %v4151_v49 = vpop.eup %4150  ;;  %4164 = vpow2.f32 %v2494_v35  ;;  %v2163_v5 = vsub.f32 %v7412_v39, %v6114_v52  ;;  %v7413_v35 = vld [vmem:[#allocation124_spill] sm:$0xff] }
 0x469   : > { %3092 = vmatpush.msrb.mxu0 %v4141_v22  ;;  %v4153_v22 = vpop.eup %4152  ;;  %2933 = vmatpush.msrb.mxu1 %v4151_v49  ;;  %4166 = vpow2.f32 %v2618_v10  ;;  %v2594_v49 = vmul.f32 1.442695, %v2233_v8  ;;  %v7414_v10 = vld [vmem:[#allocation58_spill] sm:$0xff] }
 0x46a   : > { %v4155_v4 = vpop.eup %4154  ;;  %4168 = vpow2.f32 %v2486_v21  ;;  %v2159_v37 = vsub.f32 %v7414_v10, %v6114_v52  ;;  %v7415_v21 = vld [vmem:[#allocation120_spill] sm:$0xff]  ;;  %v2454_v39 = vmul.f32 1.442695, %v2163_v5  ;;  %v7418_v10 = vld [vmem:[#allocation50_spill] sm:$0xff]  ;;  %v7419_v5 = vld [vmem:[#allocation25_spill] sm:$0xff] }
 0x46b   : > { %3093 = vmatpush.msrb.mxu0 %v4145_v6  ;;  %v7411_v6 = vld [vmem:[#allocation128_spill] sm:$0xff]  ;;  %v4157_v59 = vpop.eup %4156  ;;  %2934 = vmatpush.msrb.mxu1 %v4155_v4  ;;  %4170 = vpow2.f32 %v2610_v30  ;;  %v7416_v30 = vld [vmem:[#allocation54_spill] sm:$0xff] }
 0x46c   : > { %v2229_v34 = vsub.f32 %v7411_v6, %v6000_v19  ;;  %v4159_v57 = vpop.eup %4158  ;;  %2935 = vmatmul.f32.vlgmr.msrb.gmra.mxu1 %v6152_v28  ;;  %4172 = vpow2.f32 %v2478_v36  ;;  %v2155_v6 = vsub.f32 %v7416_v30, %v6114_v52  ;;  %v2217_v36 = vsub.f32 %v7417_v25, %v6000_v19 }
 0x46d   : > { %3094 = vmatpush.msrb.mxu0 %v4149_v48  ;;  %v2225_v48 = vsub.f32 %v7413_v35, %v6000_v19  ;;  %v4161_v42 = vpop.eup %4160  ;;  %3011 = vmatpush.msra.mxu1 %v4159_v57  ;;  %4174 = vpow2.f32 %v2602_v24 }
 0x46e   : > { %v4163_v50 = vpop.eup %4162  ;;  %v2586_v4 = vmul.f32 1.442695, %v2229_v34  ;;  %4176 = vpow2.f32 %v2470_v51  ;;  %v2446_v34 = vmul.f32 1.442695, %v2159_v37  ;;  %v6174_v51 = vadd.f32 %v7419_v5, %v6033_v3 }
 0x46f   : > { %3095 = vmatpush.msrb.mxu0 %v4153_v22  ;;  %v2221_v22 = vsub.f32 %v7415_v21, %v6000_v19  ;;  %v4165_v8 = vpop.eup %4164  ;;  %3012 = vmatpush.msra.mxu1 %v4163_v50  ;;  %v2578_v57 = vmul.f32 1.442695, %v2225_v48  ;;  %4178 = vpow2.f32 %v2594_v49  ;;  %v2151_v21 = vsub.f32 %v7418_v10, %v6114_v52  ;;  %v7421_v49 = vld [vmem:[#allocation46_spill] sm:$0xff] }
 0x470   : > { %3096 = vmatmul.f32.vlgmr.msrb.gmra.mxu0 %v6022_v54  ;;  %v4167_v35 = vpop.eup %4166  ;;  %4180 = vpow2.f32 %v2462_v33  ;;  %v2147_v25 = vsub.f32 %v7421_v49, %v6114_v52  ;;  %v2438_v56 = vmul.f32 1.442695, %v2155_v6  ;;  %v7422_v33 = vld [vmem:[#allocation108_spill] sm:$0xff] }
 0x471   : > { %3172 = vmatpush.msra.mxu0 %v4157_v59  ;;  %v4169_v59 = vpop.eup %4168  ;;  %3013 = vmatpush.msra.mxu1 %v4167_v35  ;;  %v2570_v30 = vmul.f32 1.442695, %v2221_v22  ;;  %4182 = vpow2.f32 %v2586_v4  ;;  %v2562_v35 = vmul.f32 1.442695, %v2217_v36  ;;  %v7423_v4 = vld [vmem:[#allocation42_spill] sm:$0xff] }
 0x472   : > { %v4171_v24 = vpop.eup %4170  ;;  %4184 = vpow2.f32 %v2454_v39  ;;  %v2143_v10 = vsub.f32 %v7423_v4, %v6114_v52  ;;  %v2430_v5 = vmul.f32 1.442695, %v2151_v21  ;;  %v7424_v39 = vld [vmem:[#allocation104_spill] sm:$0xff]  ;;  %v2422_v49 = vmul.f32 1.442695, %v2147_v25  ;;  %v7427_v4 = vld [vmem:[#allocation34_spill] sm:$0xff] }
 0x473   : > { %3173 = vmatpush.msra.mxu0 %v4161_v42  ;;  %v7420_v42 = vld [vmem:[#allocation112_spill] sm:$0xff]  ;;  %v4173_v48 = vpop.eup %4172  ;;  %3014 = vmatpush.msra.mxu1 %v4171_v24  ;;  %4186 = vpow2.f32 %v2578_v57  ;;  %v7425_v57 = vld [vmem:[#allocation38_spill] sm:$0xff] }
 0x474   : > { %v2213_v50 = vsub.f32 %v7420_v42, %v6000_v19  ;;  %v4175_v37 = vpop.eup %4174  ;;  %2938 = vmatmul.f32.gmra.mxu1 %v6174_v51  ;;  %4188 = vpow2.f32 %v2446_v34  ;;  %v2139_v42 = vsub.f32 %v7425_v57, %v6114_v52  ;;  %v7426_v21 = vld [vmem:[#allocation100_spill] sm:$0xff]  ;;  %v7429_v57 = vld [vmem:[#allocation30_spill] sm:$0xff] }
 0x475   : > { %3174 = vmatpush.msra.mxu0 %v4165_v8  ;;  %v2209_v8 = vsub.f32 %v7422_v33, %v6000_v19  ;;  %v4177_v22 = vpop.eup %4176  ;;  %3015 = vmatpush.msra.mxu1 %v4175_v37  ;;  %4190 = vpow2.f32 %v2570_v30  ;;  %v2201_v34 = vsub.f32 %v7426_v21, %v6000_v19  ;;  %v7428_v25 = vld [vmem:[#allocation96_spill] sm:$0xff]  ;;  %v2131_v21 = vsub.f32 %v7429_v57, %v6114_v52  ;;  %v7433_v57 = vld [vmem:[#allocation149_spill] sm:$0xff] }
 0x476   : > { %v4179_v6 = vpop.eup %4178  ;;  %v2554_v24 = vmul.f32 1.442695, %v2213_v50  ;;  %4192 = vpow2.f32 %v2438_v56  ;;  %v2414_v50 = vmul.f32 1.442695, %v2143_v10  ;;  %v2197_v56 = vsub.f32 %v7428_v25, %v6000_v19  ;;  %v7430_v10 = vld [vmem:[#allocation92_spill] sm:$0xff] }
 0x477   : > { %3175 = vmatpush.msra.mxu0 %v4169_v59  ;;  %v2205_v59 = vsub.f32 %v7424_v39, %v6000_v19  ;;  %v4181_v36 = vpop.eup %4180  ;;  %3016 = vmatpush.msra.mxu1 %v4179_v6  ;;  %v2546_v37 = vmul.f32 1.442695, %v2209_v8  ;;  %4194 = vpow2.f32 %v2562_v35  ;;  %v2135_v39 = vsub.f32 %v7427_v4, %v6114_v52  ;;  %v7431_v4 = vld [vmem:[#allocation153_spill] sm:$0xff] }
 0x478   : > { %3099 = vmatmul.f32.gmra.mxu0 %v6037_v15  ;;  %v4183_v33 = vpop.eup %4182  ;;  %4196 = vpow2.f32 %v2430_v5  ;;  %v2406_v8 = vmul.f32 1.442695, %v2139_v42  ;;  %v2193_v5 = vsub.f32 %v7430_v10, %v6000_v19  ;;  %v2254_v25 = vsub.f32 %v7431_v4, %v6049_v23  ;;  %v7432_v42 = vld [vmem:[#allocation215_spill] sm:$0xff]  ;;  %v7435_v4 = vld [vmem:[#allocation145_spill] sm:$0xff] }
 0x479   : > { %3176 = vmatpush.msra.mxu0 %v4173_v48  ;;  %v4185_v48 = vpop.eup %4184  ;;  %3017 = vmatpush.msra.mxu1 %v4183_v33  ;;  %v2538_v6 = vmul.f32 1.442695, %v2205_v59  ;;  %4198 = vpow2.f32 %v2554_v24  ;;  %v2530_v33 = vmul.f32 1.442695, %v2201_v34  ;;  %v2398_v59 = vmul.f32 1.442695, %v2135_v39 }
 0x47a   : > { %v4187_v30 = vpop.eup %4186  ;;  %4200 = vpow2.f32 %v2422_v49  ;;  %v2316_v49 = vsub.f32 %v7432_v42, %v5969_v63  ;;  %v2250_v10 = vsub.f32 %v7433_v57, %v6049_v23  ;;  %v2390_v34 = vmul.f32 1.442695, %v2131_v21  ;;  %v7434_v39 = vld [vmem:[#allocation211_spill] sm:$0xff]  ;;  %v7437_v57 = vld [vmem:[#allocation141_spill] sm:$0xff] }
 0x47b   : > { %3177 = vmatpush.msra.mxu0 %v4177_v22  ;;  %v4189_v22 = vpop.eup %4188  ;;  %3018 = vmatpush.msra.mxu1 %v4187_v30  ;;  %4202 = vpow2.f32 %v2546_v37  ;;  %v2522_v30 = vmul.f32 1.442695, %v2197_v56  ;;  %v2246_v42 = vsub.f32 %v7435_v4, %v6049_v23  ;;  %v2636_v56 = vmul.f32 1.442695, %v2254_v25  ;;  %v7436_v21 = vld [vmem:[#allocation207_spill] sm:$0xff]  ;;  %v7439_v4 = vld [vmem:[#allocation137_spill] sm:$0xff] }
 0x47c   : > { %v4191_v35 = vpop.eup %4190  ;;  %4204 = vpow2.f32 %v2414_v50  ;;  %v2312_v50 = vsub.f32 %v7434_v39, %v5969_v63  ;;  %v2242_v39 = vsub.f32 %v7437_v57, %v6049_v23  ;;  %v7441_v57 = vld [vmem:[#allocation133_spill] sm:$0xff] }
 0x47d   : > { %3178 = vmatpush.msra.mxu0 %v4181_v36  ;;  %v4193_v36 = vpop.eup %4192  ;;  %3019 = vmatpush.msra.mxu1 %v4191_v35  ;;  %4206 = vpow2.f32 %v2538_v6  ;;  %v2514_v35 = vmul.f32 1.442695, %v2193_v5  ;;  %v2628_v5 = vmul.f32 1.442695, %v2250_v10 }
 0x47e   : > { %v4195_v24 = vpop.eup %4194  ;;  %4208 = vpow2.f32 %v2406_v8  ;;  %v2308_v8 = vsub.f32 %v7436_v21, %v5969_v63  ;;  %v2238_v21 = vsub.f32 %v7439_v4, %v6049_v23  ;;  %v7443_v4 = vld [vmem:[#allocation129_spill] sm:$0xff] }
 0x47f   : > { %3179 = vmatpush.msra.mxu0 %v4185_v48  ;;  %v4197_v48 = vpop.eup %4196  ;;  %3020 = vmatpush.msra.mxu1 %v4195_v24  ;;  %4210 = vpow2.f32 %v2530_v33 }
 0x480   : > { %v4199_v37 = vpop.eup %4198  ;;  %4212 = vpow2.f32 %v2398_v59  ;;  %v7438_v59 = vld [vmem:[#allocation203_spill] sm:$0xff] }
 0x481   : > { %3180 = vmatpush.msra.mxu0 %v4189_v22  ;;  %v4201_v22 = vpop.eup %4200  ;;  %3021 = vmatpush.msra.mxu1 %v4199_v37  ;;  %4214 = vpow2.f32 %v2522_v30  ;;  %v2304_v25 = vsub.f32 %v7438_v59, %v5969_v63  ;;  %v2620_v30 = vmul.f32 1.442695, %v2246_v42  ;;  %v2234_v59 = vsub.f32 %v7441_v57, %v6049_v23  ;;  %v7442_v42 = vld [vmem:[#allocation195_spill] sm:$0xff]  ;;  %v7445_v57 = vld [vmem:[#allocation125_spill] sm:$0xff] }
 0x482   : > { %v4203_v6 = vpop.eup %4202  ;;  %4216 = vpow2.f32 %v2390_v34  ;;  %v7440_v34 = vld [vmem:[#allocation199_spill] sm:$0xff] }
 0x483   : > { %3181 = vmatpush.msra.mxu0 %v4193_v36  ;;  %v2760_v36 = vmul.f32 1.442695, %v2316_v49  ;;  %v4205_v24 = vpop.eup %4204  ;;  %3022 = vmatpush.msra.mxu1 %v4203_v6  ;;  %4218 = vpow2.f32 %v2514_v35  ;;  %v2300_v10 = vsub.f32 %v7440_v34, %v5969_v63  ;;  %v2744_v6 = vmul.f32 1.442695, %v2308_v8 }
 0x484   : > { %v4207_v33 = vpop.eup %4206  ;;  %4220 = vpow2.f32 %v2636_v56  ;;  %v2612_v35 = vmul.f32 1.442695, %v2242_v39  ;;  %v2296_v56 = vsub.f32 %v7442_v42, %v5969_v63  ;;  %v2230_v34 = vsub.f32 %v7443_v4, %v6049_v23  ;;  %v7444_v39 = vld [vmem:[#allocation191_spill] sm:$0xff] }
 0x485   : > { %3182 = vmatpush.msra.mxu0 %v4197_v48  ;;  %v2752_v48 = vmul.f32 1.442695, %v2312_v50  ;;  %v4209_v37 = vpop.eup %4208  ;;  %3023 = vmatpush.msra.mxu1 %v4207_v33  ;;  %4222 = vpow2.f32 %v2760_v36  ;;  %v2736_v33 = vmul.f32 1.442695, %v2304_v25  ;;  %v2604_v8 = vmul.f32 1.442695, %v2238_v21 }
 0x486   : > { %v4211_v49 = vpop.eup %4210  ;;  %4224 = vpow2.f32 %v2628_v5  ;;  %v2292_v5 = vsub.f32 %v7444_v39, %v5969_v63  ;;  %v2226_v42 = vsub.f32 %v7445_v57, %v6049_v23  ;;  %v2596_v25 = vmul.f32 1.442695, %v2234_v59  ;;  %v7446_v21 = vld [vmem:[#allocation187_spill] sm:$0xff] }
 0x487   : > { %3183 = vmatpush.msra.mxu0 %v4201_v22  ;;  %v4213_v22 = vpop.eup %4212  ;;  %3024 = vmatpush.msra.mxu1 %v4211_v49  ;;  %4226 = vpow2.f32 %v2752_v48  ;;  %v2728_v49 = vmul.f32 1.442695, %v2300_v10  ;;  %v2588_v4 = vmul.f32 1.442695, %v2230_v34  ;;  %v7450_v34 = vld [vmem:[#allocation179_spill] sm:$0xff] }
 0x488   : > { %v4215_v50 = vpop.eup %4214  ;;  %4228 = vpow2.f32 %v2620_v30  ;;  %v2288_v30 = vsub.f32 %v7446_v21, %v5969_v63  ;;  %v2580_v57 = vmul.f32 1.442695, %v2226_v42  ;;  %v7451_v21 = vld [vmem:[#allocation113_spill] sm:$0xff]  ;;  %v7452_v42 = vld [vmem:[#allocation175_spill] sm:$0xff] }
 0x489   : > { %3184 = vmatpush.msra.mxu0 %v4205_v24  ;;  %v4217_v24 = vpop.eup %4216  ;;  %3025 = vmatpush.msra.mxu1 %v4215_v50  ;;  %4230 = vpow2.f32 %v2744_v6  ;;  %v2720_v50 = vmul.f32 1.442695, %v2296_v56  ;;  %v7447_v6 = vld [vmem:[#allocation121_spill] sm:$0xff] }
 0x48a   : > { %v4219_v36 = vpop.eup %4218  ;;  %4232 = vpow2.f32 %v2612_v35  ;;  %v7448_v35 = vld [vmem:[#allocation183_spill] sm:$0xff] }
 0x48b   : > { %3185 = vmatpush.msra.mxu0 %v4209_v37  ;;  %v4221_v37 = vpop.eup %4220  ;;  %3026 = vmatpush.msra.mxu1 %v4219_v36  ;;  %4234 = vpow2.f32 %v2736_v33  ;;  %v2712_v36 = vmul.f32 1.442695, %v2292_v5  ;;  %v7449_v33 = vld [vmem:[#allocation117_spill] sm:$0xff] }
 0x48c   : > { %v4223_v48 = vpop.eup %4222  ;;  %3027 = vmatmul.f32.vlgmr.msra.gmra.mxu1 %v6152_v28  ;;  %4236 = vpow2.f32 %v2604_v8  ;;  %v2218_v39 = vsub.f32 %v7449_v33, %v6049_v23  ;;  %v2280_v8 = vsub.f32 %v7450_v34, %v5969_v63 }
 0x48d   : > { %3186 = vmatpush.msra.mxu0 %v4213_v22  ;;  %v4225_v10 = vpop.eup %4224  ;;  %v2222_v22 = vsub.f32 %v7447_v6, %v6049_v23  ;;  %2942 = vmatpush.msrb.mxu2 %v4223_v48  ;;  %4238 = vpow2.f32 %v2728_v49  ;;  %v2704_v48 = vmul.f32 1.442695, %v2288_v30  ;;  %v2214_v6 = vsub.f32 %v7451_v21, %v6049_v23 }
 0x48e   : > { %3103 = vmatpush.msrb.mxu1 %v4221_v37  ;;  %v4227_v59 = vpop.eup %4226  ;;  %4240 = vpow2.f32 %v2596_v25  ;;  %v2276_v25 = vsub.f32 %v7452_v42, %v5969_v63  ;;  %v2564_v30 = vmul.f32 1.442695, %v2218_v39 }
 0x48f   : > { %3187 = vmatpush.msra.mxu0 %v4217_v24  ;;  %v2284_v24 = vsub.f32 %v7448_v35, %v5969_v63  ;;  %v4229_v56 = vpop.eup %4228  ;;  %2943 = vmatpush.msrb.mxu2 %v4227_v59  ;;  %4242 = vpow2.f32 %v2720_v50  ;;  %v2572_v5 = vmul.f32 1.442695, %v2222_v22  ;;  %v7453_v35 = vld [vmem:[#allocation109_spill] sm:$0xff]  ;;  %v7454_v22 = vld [vmem:[#allocation171_spill] sm:$0xff]  ;;  %v2556_v34 = vmul.f32 1.442695, %v2214_v6 }
 0x490   : > { %3188 = vmatmul.f32.vlgmr.msra.gmra.mxu0 %v6022_v54  ;;  %3104 = vmatpush.msrb.mxu1 %v4225_v10  ;;  %v4231_v54 = vpop.eup %4230  ;;  %4244 = vpow2.f32 %v2588_v4  ;;  %v2210_v33 = vsub.f32 %v7453_v35, %v6049_v23  ;;  %v2272_v4 = vsub.f32 %v7454_v22, %v5969_v63  ;;  %v2680_v21 = vmul.f32 1.442695, %v2276_v25  ;;  %v7458_v6 = vld [vmem:[#allocation163_spill] sm:$0xff] }
 0x491   : > { %v4233_v37 = vpop.eup %4232  ;;  %2944 = vmatpush.msrb.mxu2 %v4231_v54  ;;  %v2696_v59 = vmul.f32 1.442695, %v2284_v24  ;;  %4246 = vpow2.f32 %v2712_v36  ;;  %v2688_v54 = vmul.f32 1.442695, %v2280_v8  ;;  %v7455_v36 = vld [vmem:[#allocation105_spill] sm:$0xff] }
 0x492   : > { %3105 = vmatpush.msrb.mxu1 %v4229_v56  ;;  %v4235_v49 = vpop.eup %4234  ;;  %4248 = vpow2.f32 %v2580_v57  ;;  %v2206_v56 = vsub.f32 %v7455_v36, %v6049_v23  ;;  %v7456_v57 = vld [vmem:[#allocation167_spill] sm:$0xff]  ;;  %v2548_v42 = vmul.f32 1.442695, %v2210_v33  ;;  %v2672_v35 = vmul.f32 1.442695, %v2272_v4 }
 0x493   : > { %v4237_v10 = vpop.eup %4236  ;;  %2945 = vmatpush.msrb.mxu2 %v4235_v49  ;;  %4250 = vpow2.f32 %v2704_v48  ;;  %v7457_v48 = vld [vmem:[#allocation101_spill] sm:$0xff]  ;;  %v7460_v33 = vld [vmem:[#allocation159_spill] sm:$0xff] }
 0x494   : > { %3106 = vmatpush.msrb.mxu1 %v4233_v37  ;;  %v4239_v50 = vpop.eup %4238  ;;  %4252 = vpow2.f32 %v2572_v5  ;;  %v2268_v37 = vsub.f32 %v7456_v57, %v5969_v63  ;;  %v2202_v49 = vsub.f32 %v7457_v48, %v6049_v23  ;;  %v2264_v5 = vsub.f32 %v7458_v6, %v5969_v63 }
 0x495   : > { %3030 = vmatmul.f32.gmra.mxu1 %v6174_v51  ;;  %v4241_v24 = vpop.eup %4240  ;;  %2946 = vmatpush.msrb.mxu2 %v4239_v50  ;;  %4254 = vpow2.f32 %v2696_v59  ;;  %v7459_v50 = vld [vmem:[#allocation97_spill] sm:$0xff]  ;;  %v2540_v25 = vmul.f32 1.442695, %v2206_v56  ;;  %v7462_v56 = vld [vmem:[#allocation155_spill] sm:$0xff] }
 0x496   : > { %3107 = vmatpush.msrb.mxu1 %v4237_v10  ;;  %v4243_v39 = vpop.eup %4242  ;;  %4256 = vpow2.f32 %v2564_v30  ;;  %v2198_v22 = vsub.f32 %v7459_v50, %v6049_v23  ;;  %v2260_v30 = vsub.f32 %v7460_v33, %v5969_v63  ;;  %v2664_v36 = vmul.f32 1.442695, %v2268_v37  ;;  %v7464_v50 = vld [vmem:[#allocation150_spill] sm:$0xff] }
 0x497   : > { %v4245_v8 = vpop.eup %4244  ;;  %2947 = vmatpush.msrb.mxu2 %v4243_v39  ;;  %4258 = vpow2.f32 %v2688_v54  ;;  %v7461_v39 = vld [vmem:[#allocation93_spill] sm:$0xff]  ;;  %v2532_v4 = vmul.f32 1.442695, %v2202_v49  ;;  %v2656_v48 = vmul.f32 1.442695, %v2264_v5  ;;  %v2317_v49 = vsub.f32 %v7305_v43, %v6000_v19 }
 0x498   : > { %3191 = vmatmul.f32.gmra.mxu0 %v6037_v15  ;;  %3108 = vmatpush.msrb.mxu1 %v4241_v24  ;;  %v4247_v15 = vpop.eup %4246  ;;  %4260 = vpow2.f32 %v2556_v34  ;;  %v2194_v57 = vsub.f32 %v7461_v39, %v6049_v23  ;;  %v2256_v34 = vsub.f32 %v7462_v56, %v5969_v63  ;;  %v2524_v37 = vmul.f32 1.442695, %v2198_v22  ;;  %v7465_v22 = vld [vmem:[#allocation212_spill] sm:$0xff]  ;;  %v7466_v39 = vld [vmem:[#allocation146_spill] sm:$0xff] }
 0x499   : > { %v4249_v10 = vpop.eup %4248  ;;  %2948 = vmatpush.msrb.mxu2 %v4247_v15  ;;  %4262 = vpow2.f32 %v2680_v21  ;;  %v7463_v15 = vld [vmem:[#allocation154_spill] sm:$0xff]  ;;  %v2247_v43 = vsub.f32 %v7466_v39, %v6114_v52 }
 0x49a   : > { %3109 = vmatpush.msrb.mxu1 %v4245_v8  ;;  %v4251_v59 = vpop.eup %4250  ;;  %4264 = vpow2.f32 %v2548_v42  ;;  %v2255_v6 = vsub.f32 %v7463_v15, %v6114_v52  ;;  %v2648_v42 = vmul.f32 1.442695, %v2260_v30  ;;  %v2516_v5 = vmul.f32 1.442695, %v2194_v57  ;;  %v7467_v57 = vld [vmem:[#allocation208_spill] sm:$0xff]  ;;  %v7472_v39 = vld [vmem:[#allocation134_spill] sm:$0xff] }
 0x49b   : > { %v4253_v24 = vpop.eup %4252  ;;  %2949 = vmatpush.msrb.mxu2 %v4251_v59  ;;  %4266 = vpow2.f32 %v2672_v35  ;;  %v2251_v59 = vsub.f32 %v7464_v50, %v6114_v52  ;;  %v2640_v33 = vmul.f32 1.442695, %v2256_v34  ;;  %v7470_v50 = vld [vmem:[#allocation138_spill] sm:$0xff] }
 0x49c   : > { %3110 = vmatpush.msrb.mxu1 %v4249_v10  ;;  %v4255_v54 = vpop.eup %4254  ;;  %4268 = vpow2.f32 %v2540_v25  ;;  %v2313_v25 = vsub.f32 %v7465_v22, %v6000_v19  ;;  %v2638_v30 = vmul.f32 1.442695, %v2255_v6 }
 0x49d   : > { %v4257_v8 = vpop.eup %4256  ;;  %2950 = vmatpush.msrb.mxu2 %v4255_v54  ;;  %4270 = vpow2.f32 %v2664_v36  ;;  %v2762_v54 = vmul.f32 1.442695, %v2317_v49  ;;  %v2630_v34 = vmul.f32 1.442695, %v2251_v59 }
 0x49e   : > { %3111 = vmatpush.msrb.mxu1 %v4253_v24  ;;  %v4259_v21 = vpop.eup %4258  ;;  %4272 = vpow2.f32 %v2532_v4  ;;  %v2309_v4 = vsub.f32 %v7467_v57, %v6000_v19 }
 0x49f   : > { %v4261_v10 = vpop.eup %4260  ;;  %2951 = vmatpush.msrb.mxu2 %v4259_v21  ;;  %4274 = vpow2.f32 %v2656_v48  ;;  %v2754_v21 = vmul.f32 1.442695, %v2313_v25 }
 0x4a0   : > { %3112 = vmatpush.msrb.mxu1 %v4257_v8  ;;  %v4263_v35 = vpop.eup %4262  ;;  %4276 = vpow2.f32 %v2524_v37  ;;  %v7468_v8 = vld [vmem:[#allocation142_spill] sm:$0xff]  ;;  %v7469_v37 = vld [vmem:[#allocation204_spill] sm:$0xff]  ;;  %v2746_v22 = vmul.f32 1.442695, %v2309_v4 }
 0x4a1   : > { %v4265_v24 = vpop.eup %4264  ;;  %2952 = vmatpush.msrb.mxu2 %v4263_v35  ;;  %4278 = vpow2.f32 %v2648_v42  ;;  %v2243_v15 = vsub.f32 %v7468_v8, %v6114_v52  ;;  %v2305_v6 = vsub.f32 %v7469_v37, %v6000_v19  ;;  %v2239_v35 = vsub.f32 %v7470_v50, %v6114_v52  ;;  %v7474_v8 = vld [vmem:[#allocation130_spill] sm:$0xff]  ;;  %v7476_v37 = vld [vmem:[#allocation192_spill] sm:$0xff] }
 0x4a2   : > { %3113 = vmatpush.msrb.mxu1 %v4261_v10  ;;  %v4267_v36 = vpop.eup %4266  ;;  %4280 = vpow2.f32 %v2516_v5  ;;  %v2622_v42 = vmul.f32 1.442695, %v2247_v43  ;;  %v7471_v5 = vld [vmem:[#allocation200_spill] sm:$0xff] }
 0x4a3   : > { %v4269_v56 = vpop.eup %4268  ;;  %2953 = vmatpush.msrb.mxu2 %v4267_v36  ;;  %4282 = vpow2.f32 %v2640_v33  ;;  %v2301_v59 = vsub.f32 %v7471_v5, %v6000_v19  ;;  %v2235_v36 = vsub.f32 %v7472_v39, %v6114_v52  ;;  %v2614_v33 = vmul.f32 1.442695, %v2243_v15  ;;  %v7473_v43 = vld [vmem:[#allocation196_spill] sm:$0xff] }
 0x4a4   : > { %3114 = vmatpush.msrb.mxu1 %v4265_v24  ;;  %v4271_v48 = vpop.eup %4270  ;;  %4284 = vpow2.f32 %v2638_v30  ;;  %v2297_v30 = vsub.f32 %v7473_v43, %v6000_v19  ;;  %v2738_v57 = vmul.f32 1.442695, %v2305_v6  ;;  %v2606_v4 = vmul.f32 1.442695, %v2239_v35  ;;  %v7475_v15 = vld [vmem:[#allocation20_spill] sm:$0xff] }
 0x4a5   : > { %v4273_v10 = vpop.eup %4272  ;;  %2954 = vmatpush.msrb.mxu2 %v4271_v48  ;;  %4286 = vpow2.f32 %v2762_v54  ;;  %v2231_v48 = vsub.f32 %v7474_v8, %v6114_v52  ;;  %v2730_v50 = vmul.f32 1.442695, %v2301_v59  ;;  %v2598_v5 = vmul.f32 1.442695, %v2235_v36 }
 0x4a6   : > { %3115 = vmatpush.msrb.mxu1 %v4269_v56  ;;  %v4275_v49 = vpop.eup %4274  ;;  %4288 = vpow2.f32 %v2630_v34  ;;  %v6296_v34 = vadd.f32 %v7475_v15, %v6016_v32  ;;  %v2722_v39 = vmul.f32 1.442695, %v2297_v30 }
 0x4a7   : > { %v4277_v24 = vpop.eup %4276  ;;  %2955 = vmatpush.msrb.mxu2 %v4275_v49  ;;  %4290 = vpow2.f32 %v2754_v21  ;;  %v7477_v21 = vld [vmem:[#allocation126_spill] sm:$0xff]  ;;  %v2590_v43 = vmul.f32 1.442695, %v2231_v48  ;;  %v7482_v48 = vld [vmem:[#allocation180_spill] sm:$0xff] }
 0x4a8   : > { %3116 = vmatpush.msrb.mxu1 %v4273_v10  ;;  %v4279_v25 = vpop.eup %4278  ;;  %4292 = vpow2.f32 %v2622_v42  ;;  %v2293_v10 = vsub.f32 %v7476_v37, %v6000_v19  ;;  %v2227_v49 = vsub.f32 %v7477_v21, %v6114_v52  ;;  %v7478_v42 = vld [vmem:[#allocation188_spill] sm:$0xff] }
 0x4a9   : > { %v4281_v56 = vpop.eup %4280  ;;  %2956 = vmatpush.msrb.mxu2 %v4279_v25  ;;  %4294 = vpow2.f32 %v2746_v22  ;;  %v7479_v22 = vld [vmem:[#allocation122_spill] sm:$0xff] }
 0x4aa   : > { %3117 = vmatpush.msrb.mxu1 %v4277_v24  ;;  %v4283_v54 = vpop.eup %4282  ;;  %4296 = vpow2.f32 %v2614_v33  ;;  %v2289_v24 = vsub.f32 %v7478_v42, %v6000_v19  ;;  %v2223_v25 = vsub.f32 %v7479_v22, %v6114_v52  ;;  %v7480_v33 = vld [vmem:[#allocation184_spill] sm:$0xff]  ;;  %v2714_v8 = vmul.f32 1.442695, %v2293_v10 }
 0x4ab   : > { %v4285_v6 = vpop.eup %4284  ;;  %2957 = vmatpush.msrb.mxu2 %v4283_v54  ;;  %4298 = vpow2.f32 %v2738_v57  ;;  %v7481_v57 = vld [vmem:[#allocation118_spill] sm:$0xff]  ;;  %v2582_v15 = vmul.f32 1.442695, %v2227_v49 }
 0x4ac   : > { %3118 = vmatpush.msrb.mxu1 %v4281_v56  ;;  %v4287_v35 = vpop.eup %4286  ;;  %2958 = vmatmul.f32.vlgmr.msrb.gmra.mxu2 %v6296_v34  ;;  %4300 = vpow2.f32 %v2606_v4  ;;  %v2285_v56 = vsub.f32 %v7480_v33, %v6000_v19  ;;  %v2219_v54 = vsub.f32 %v7481_v57, %v6114_v52  ;;  %v2281_v4 = vsub.f32 %v7482_v48, %v6000_v19  ;;  %v7484_v49 = vld [vmem:[#allocation22_spill] sm:$0xff] }
 0x4ad   : > { %3119 = vmatmul.f32.vlgmr.msrb.gmra.mxu1 %v6152_v28  ;;  %v4289_v59 = vpop.eup %4288  ;;  %3034 = vmatpush.msra.mxu2 %v4287_v35  ;;  %4302 = vpow2.f32 %v2730_v50  ;;  %v2706_v21 = vmul.f32 1.442695, %v2289_v24  ;;  %v7483_v35 = vld [vmem:[#allocation114_spill] sm:$0xff]  ;;  %v2574_v10 = vmul.f32 1.442695, %v2223_v25 }
 0x4ae   : > { %3195 = vmatpush.msra.mxu1 %v4285_v6  ;;  %v4291_v36 = vpop.eup %4290  ;;  %4304 = vpow2.f32 %v2598_v5  ;;  %v2215_v42 = vsub.f32 %v7483_v35, %v6114_v52  ;;  %v6318_v5 = vadd.f32 %v7484_v49, %v6033_v3  ;;  %v2566_v57 = vmul.f32 1.442695, %v2219_v54 }
 0x4af   : > { %v4293_v30 = vpop.eup %4292  ;;  %3035 = vmatpush.msra.mxu2 %v4291_v36  ;;  %4306 = vpow2.f32 %v2722_v39  ;;  %v2698_v36 = vmul.f32 1.442695, %v2285_v56  ;;  %v7486_v39 = vld [vmem:[#allocation110_spill] sm:$0xff] }
 0x4b0   : > { %3196 = vmatpush.msra.mxu1 %v4289_v59  ;;  %v4295_v37 = vpop.eup %4294  ;;  %4308 = vpow2.f32 %v2590_v43  ;;  %v7485_v59 = vld [vmem:[#allocation176_spill] sm:$0xff]  ;;  %v2211_v33 = vsub.f32 %v7486_v39, %v6114_v52  ;;  %v2558_v35 = vmul.f32 1.442695, %v2215_v42 }
 0x4b1   : > { %v4297_v6 = vpop.eup %4296  ;;  %3036 = vmatpush.msra.mxu2 %v4295_v37  ;;  %v2277_v22 = vsub.f32 %v7485_v59, %v6000_v19  ;;  %4310 = vpow2.f32 %v2714_v8  ;;  %v7487_v43 = vld [vmem:[#allocation172_spill] sm:$0xff]  ;;  %v2690_v37 = vmul.f32 1.442695, %v2281_v4  ;;  %v7488_v8 = vld [vmem:[#allocation106_spill] sm:$0xff] }
 0x4b2   : > { %3197 = vmatpush.msra.mxu1 %v4293_v30  ;;  %v4299_v50 = vpop.eup %4298  ;;  %4312 = vpow2.f32 %v2582_v15  ;;  %v2273_v30 = vsub.f32 %v7487_v43, %v6000_v19  ;;  %v2207_v48 = vsub.f32 %v7488_v8, %v6114_v52  ;;  %v7489_v15 = vld [vmem:[#allocation168_spill] sm:$0xff]  ;;  %v2550_v59 = vmul.f32 1.442695, %v2211_v33  ;;  %v7492_v43 = vld [vmem:[#allocation98_spill] sm:$0xff] }
 0x4b3   : > { %v4301_v24 = vpop.eup %4300  ;;  %3037 = vmatpush.msra.mxu2 %v4299_v50  ;;  %4314 = vpow2.f32 %v2706_v21  ;;  %v2682_v50 = vmul.f32 1.442695, %v2277_v22  ;;  %v7490_v21 = vld [vmem:[#allocation102_spill] sm:$0xff]  ;;  %v7491_v42 = vld [vmem:[#allocation164_spill] sm:$0xff]  ;;  %v2199_v8 = vsub.f32 %v7492_v43, %v6114_v52  ;;  %v2314_v43 = vsub.f32 %v7310_v17, %v6049_v23 }
 0x4b4   : > { %3198 = vmatpush.msra.mxu1 %v4297_v6  ;;  %v4303_v25 = vpop.eup %4302  ;;  %2961 = vmatmul.f32.gmra.mxu2 %v6318_v5  ;;  %4316 = vpow2.f32 %v2574_v10  ;;  %v2269_v6 = vsub.f32 %v7489_v15, %v6000_v19  ;;  %v2203_v49 = vsub.f32 %v7490_v21, %v6114_v52  ;;  %v2265_v10 = vsub.f32 %v7491_v42, %v6000_v19  ;;  %v7493_v33 = vld [vmem:[#allocation160_spill] sm:$0xff]  ;;  %v7494_v15 = vld [vmem:[#allocation94_spill] sm:$0xff] }
 0x4b5   : > { %3122 = vmatmul.f32.gmra.mxu1 %v6174_v51  ;;  %v4305_v56 = vpop.eup %4304  ;;  %3038 = vmatpush.msra.mxu2 %v4303_v25  ;;  %4318 = vpow2.f32 %v2698_v36  ;;  %v2674_v25 = vmul.f32 1.442695, %v2273_v30  ;;  %v2542_v22 = vmul.f32 1.442695, %v2207_v48  ;;  %v2195_v21 = vsub.f32 %v7494_v15, %v6114_v52  ;;  %v7495_v48 = vld [vmem:[#allocation156_spill] sm:$0xff] }
 0x4b6   : > { %3199 = vmatpush.msra.mxu1 %v4301_v24  ;;  %v4307_v54 = vpop.eup %4306  ;;  %4320 = vpow2.f32 %v2566_v57  ;;  %v2261_v57 = vsub.f32 %v7493_v33, %v6000_v19  ;;  %v2534_v30 = vmul.f32 1.442695, %v2203_v49  ;;  %v2318_v42 = vsub.f32 %v5570_v40, %v6049_v23 }
 0x4b7   : > { %v4309_v4 = vpop.eup %4308  ;;  %3039 = vmatpush.msra.mxu2 %v4307_v54  ;;  %4322 = vpow2.f32 %v2690_v37  ;;  %v2666_v54 = vmul.f32 1.442695, %v2269_v6  ;;  %v2526_v6 = vmul.f32 1.442695, %v2199_v8  ;;  %v2380_v49 = vsub.f32 %v5940_v27, %v5969_v63 }
 0x4b8   : > { %3200 = vmatpush.msra.mxu1 %v4305_v56  ;;  %v4311_v39 = vpop.eup %4310  ;;  %4324 = vpow2.f32 %v2558_v35  ;;  %v2257_v35 = vsub.f32 %v7495_v48, %v6000_v19  ;;  %v2376_v40 = vsub.f32 %v5916_v46, %v5969_v63  ;;  %v2310_v27 = vsub.f32 %v7308_v38, %v6049_v23 }
 0x4b9   : > { %v4313_v24 = vpop.eup %4312  ;;  %3040 = vmatpush.msra.mxu2 %v4311_v39  ;;  %4326 = vpow2.f32 %v2682_v50  ;;  %v2658_v39 = vmul.f32 1.442695, %v2265_v10  ;;  %v2518_v10 = vmul.f32 1.442695, %v2195_v21  ;;  %v2372_v17 = vsub.f32 %v5886_v2, %v5969_v63 }
 0x4ba   : > { %3201 = vmatpush.msra.mxu1 %v4309_v4  ;;  %v4315_v36 = vpop.eup %4314  ;;  %4328 = vpow2.f32 %v2550_v59  ;;  %v2650_v59 = vmul.f32 1.442695, %v2261_v57  ;;  %v2642_v8 = vmul.f32 1.442695, %v2257_v35  ;;  %v2888_v57 = vmul.f32 1.442695, %v2380_v49 }
 0x4bb   : > { %v4317_v56 = vpop.eup %4316  ;;  %3041 = vmatpush.msra.mxu2 %v4315_v36  ;;  %4330 = vpow2.f32 %v2674_v25  ;;  %v2764_v36 = vmul.f32 1.442695, %v2318_v42  ;;  %v2306_v46 = vsub.f32 %v7306_v12, %v6049_v23  ;;  %v2368_v38 = vsub.f32 %v5862_v31, %v5969_v63  ;;  %v7497_v42 = vld [vmem:[#allocation197_spill] sm:$0xff] }
 0x4bc   : > { %3202 = vmatpush.msra.mxu1 %v4313_v24  ;;  %v4319_v37 = vpop.eup %4318  ;;  %4332 = vpow2.f32 %v2542_v22  ;;  %v2880_v21 = vmul.f32 1.442695, %v2376_v40  ;;  %v2748_v48 = vmul.f32 1.442695, %v2310_v27  ;;  %v2364_v12 = vsub.f32 %v5838_v0, %v5969_v63  ;;  %v7499_v27 = vld [vmem:[#allocation189_spill] sm:$0xff] }
 0x4bd   : > { %v4321_v4 = vpop.eup %4320  ;;  %3042 = vmatpush.msra.mxu2 %v4319_v37  ;;  %4334 = vpow2.f32 %v2666_v54  ;;  %v7496_v37 = vld [vmem:[#allocation201_spill] sm:$0xff]  ;;  %v2298_v31 = vsub.f32 %v7497_v42, %v6049_v23  ;;  %v2360_v49 = vsub.f32 %v5814_v26, %v5969_v63  ;;  %v2356_v40 = vsub.f32 %v5790_v58, %v5969_v63 }
 0x4be   : > { %3203 = vmatpush.msra.mxu1 %v4317_v56  ;;  %v4323_v50 = vpop.eup %4322  ;;  %4336 = vpow2.f32 %v2534_v30  ;;  %v2756_v56 = vmul.f32 1.442695, %v2314_v43  ;;  %v2302_v2 = vsub.f32 %v7496_v37, %v6049_v23  ;;  %v7498_v43 = vld [vmem:[#allocation193_spill] sm:$0xff]  ;;  %v2290_v26 = vsub.f32 %v7499_v27, %v6049_v23 }
 0x4bf   : > { %v4325_v24 = vpop.eup %4324  ;;  %3043 = vmatpush.msra.mxu2 %v4323_v50  ;;  %4338 = vpow2.f32 %v2658_v39  ;;  %v2872_v39 = vmul.f32 1.442695, %v2372_v17  ;;  %v2294_v0 = vsub.f32 %v7498_v43, %v6049_v23  ;;  %v2352_v17 = vsub.f32 %v5766_v13, %v5969_v63 }
 0x4c0   : > { %3204 = vmatpush.msra.mxu1 %v4321_v4  ;;  %v4327_v25 = vpop.eup %4326  ;;  %4340 = vpow2.f32 %v2526_v6  ;;  %v2740_v6 = vmul.f32 1.442695, %v2306_v46  ;;  %v2336_v43 = vsub.f32 %v5670_v61, %v5969_v63 }
 0x4c1   : > { %v4329_v22 = vpop.eup %4328  ;;  %3044 = vmatpush.msra.mxu2 %v4327_v25  ;;  %4342 = vpow2.f32 %v2650_v59  ;;  %v2864_v59 = vmul.f32 1.442695, %v2368_v38  ;;  %v2348_v38 = vsub.f32 %v5742_v11, %v5969_v63 }
 0x4c2   : > { %3205 = vmatpush.msra.mxu1 %v4325_v24  ;;  %v4331_v33 = vpop.eup %4330  ;;  %4344 = vpow2.f32 %v2518_v10  ;;  %v2732_v10 = vmul.f32 1.442695, %v2302_v2  ;;  %v2708_v2 = vmul.f32 1.442695, %v2290_v26  ;;  %v7505_v26 = vld [vmem:[#allocation165_spill] sm:$0xff] }
 0x4c3   : > { %v4333_v54 = vpop.eup %4332  ;;  %3045 = vmatpush.msra.mxu2 %v4331_v33  ;;  %4346 = vpow2.f32 %v2642_v8  ;;  %v2856_v8 = vmul.f32 1.442695, %v2364_v12 }
 0x4c4   : > { %3206 = vmatpush.msra.mxu1 %v4329_v22  ;;  %v4335_v15 = vpop.eup %4334  ;;  %4348 = vpow2.f32 %v2764_v36  ;;  %v2724_v36 = vmul.f32 1.442695, %v2298_v31  ;;  %v2340_v31 = vsub.f32 %v5694_v45, %v5969_v63 }
 0x4c5   : > { %v4337_v30 = vpop.eup %4336  ;;  %3046 = vmatpush.msra.mxu2 %v4335_v15  ;;  %4350 = vpow2.f32 %v2888_v57  ;;  %v2848_v57 = vmul.f32 1.442695, %v2360_v49  ;;  %v7503_v49 = vld [vmem:[#allocation173_spill] sm:$0xff] }
 0x4c6   : > { %3207 = vmatpush.msra.mxu1 %v4333_v54  ;;  %v4339_v35 = vpop.eup %4338  ;;  %4352 = vpow2.f32 %v2756_v56  ;;  %v7500_v54 = vld [vmem:[#allocation185_spill] sm:$0xff]  ;;  %v2716_v56 = vmul.f32 1.442695, %v2294_v0  ;;  %v2808_v27 = vmul.f32 1.442695, %v2340_v31 }
 0x4c7   : > { %v4341_v4 = vpop.eup %4340  ;;  %3047 = vmatpush.msra.mxu2 %v4339_v35  ;;  %4354 = vpow2.f32 %v2880_v21  ;;  %v2286_v46 = vsub.f32 %v7500_v54, %v6049_v23  ;;  %v2840_v21 = vmul.f32 1.442695, %v2356_v40  ;;  %v2832_v35 = vmul.f32 1.442695, %v2352_v17  ;;  %v7506_v54 = vld [vmem:[#allocation161_spill] sm:$0xff] }
 0x4c8   : > { %3208 = vmatpush.msra.mxu1 %v4337_v30  ;;  %v4343_v50 = vpop.eup %4342  ;;  %4356 = vpow2.f32 %v2748_v48  ;;  %v7501_v30 = vld [vmem:[#allocation181_spill] sm:$0xff]  ;;  %v2344_v48 = vsub.f32 %v5718_v9, %v5969_v63  ;;  %v2274_v9 = vsub.f32 %v7503_v49, %v6049_v23  ;;  %v2328_v17 = vsub.f32 %v5622_v16, %v5969_v63 }
 0x4c9   : > { %v4345_v24 = vpop.eup %4344  ;;  %3048 = vmatpush.msra.mxu2 %v4343_v50  ;;  %4358 = vpow2.f32 %v2872_v39  ;;  %v2282_v37 = vsub.f32 %v7501_v30, %v6049_v23  ;;  %v7502_v39 = vld [vmem:[#allocation177_spill] sm:$0xff] }
 0x4ca   : > { %3209 = vmatpush.msra.mxu1 %v4341_v4  ;;  %v4347_v25 = vpop.eup %4346  ;;  %4360 = vpow2.f32 %v2740_v6  ;;  %v2278_v11 = vsub.f32 %v7502_v39, %v6049_v23  ;;  %v2700_v4 = vmul.f32 1.442695, %v2286_v46  ;;  %v2824_v6 = vmul.f32 1.442695, %v2348_v38 }
 0x4cb   : > { %v4349_v22 = vpop.eup %4348  ;;  %3049 = vmatpush.msra.mxu2 %v4347_v25  ;;  %4362 = vpow2.f32 %v2864_v59  ;;  %v2692_v59 = vmul.f32 1.442695, %v2282_v37  ;;  %v2816_v0 = vmul.f32 1.442695, %v2344_v48  ;;  %v2381_v39 = vsub.f32 %v5942_v29, %v6000_v19 }
 0x4cc   : > { %3210 = vmatpush.msra.mxu1 %v4345_v24  ;;  %v4351_v33 = vpop.eup %4350  ;;  %3050 = vmatmul.f32.vlgmr.msra.gmra.mxu2 %v6296_v34  ;;  %4364 = vpow2.f32 %v2732_v10  ;;  %v7504_v10 = vld [vmem:[#allocation169_spill] sm:$0xff]  ;;  %v2684_v40 = vmul.f32 1.442695, %v2278_v11  ;;  %v2311_v29 = vsub.f32 %v7309_v47, %v6114_v52  ;;  %v2369_v47 = vsub.f32 %v5864_v7, %v6000_v19 }
 0x4cd   : > { %3211 = vmatmul.f32.vlgmr.msra.gmra.mxu1 %v6152_v28  ;;  %v4353_v58 = vpop.eup %4352  ;;  %2965 = vmatpush.msrb.mxu3 %v4351_v33  ;;  %4366 = vpow2.f32 %v2856_v8  ;;  %v2270_v25 = vsub.f32 %v7504_v10, %v6049_v23  ;;  %v2676_v33 = vmul.f32 1.442695, %v2274_v9  ;;  %v2890_v9 = vmul.f32 1.442695, %v2381_v39 }
 0x4ce   : > { %3126 = vmatpush.msrb.mxu2 %v4349_v22  ;;  %v4355_v15 = vpop.eup %4354  ;;  %4368 = vpow2.f32 %v2724_v36  ;;  %v2332_v22 = vsub.f32 %v5646_v62, %v5969_v63  ;;  %v2266_v36 = vsub.f32 %v7505_v26, %v6049_v23  ;;  %v2262_v62 = vsub.f32 %v7506_v54, %v6049_v23  ;;  %v7510_v26 = vld [vmem:[#allocation198_spill] sm:$0xff] }
 0x4cf   : > { %v4357_v13 = vpop.eup %4356  ;;  %2966 = vmatpush.msrb.mxu3 %v4355_v15  ;;  %4370 = vpow2.f32 %v2848_v57  ;;  %v2800_v57 = vmul.f32 1.442695, %v2336_v43  ;;  %v2668_v46 = vmul.f32 1.442695, %v2270_v25  ;;  %v2324_v15 = vsub.f32 %v5598_v14, %v5969_v63  ;;  %v7509_v25 = vld [vmem:[#allocation202_spill] sm:$0xff] }
 0x4d0   : > { %3127 = vmatpush.msrb.mxu2 %v4353_v58  ;;  %v4359_v28 = vpop.eup %4358  ;;  %4372 = vpow2.f32 %v2716_v56  ;;  %v2792_v38 = vmul.f32 1.442695, %v2332_v22  ;;  %v2660_v30 = vmul.f32 1.442695, %v2266_v36  ;;  %v2319_v14 = vsub.f32 %v5572_v60, %v6114_v52 }
 0x4d1   : > { %v4361_v12 = vpop.eup %4360  ;;  %2967 = vmatpush.msrb.mxu3 %v4359_v28  ;;  %4374 = vpow2.f32 %v2840_v21  ;;  %v2784_v28 = vmul.f32 1.442695, %v2328_v17  ;;  %v2776_v11 = vmul.f32 1.442695, %v2324_v15  ;;  %v2377_v60 = vsub.f32 %v5918_v1, %v6000_v19 }
 0x4d2   : > { %3128 = vmatpush.msrb.mxu2 %v4357_v13  ;;  %v4363_v42 = vpop.eup %4362  ;;  %4376 = vpow2.f32 %v2708_v2  ;;  %v7507_v13 = vld [vmem:[#allocation157_spill] sm:$0xff]  ;;  %v2320_v2 = vsub.f32 %v5574_v41, %v5969_v63  ;;  %v2315_v41 = vsub.f32 %v7311_v18, %v6114_v52  ;;  %v2373_v18 = vsub.f32 %v5888_v53, %v6000_v19 }
 0x4d3   : > { %v4365_v50 = vpop.eup %4364  ;;  %2968 = vmatpush.msrb.mxu3 %v4363_v42  ;;  %4378 = vpow2.f32 %v2832_v35  ;;  %v2258_v16 = vsub.f32 %v7507_v13, %v6049_v23  ;;  %v2652_v35 = vmul.f32 1.442695, %v2262_v62  ;;  %v2303_v53 = vsub.f32 %v7509_v25, %v6114_v52 }
 0x4d4   : > { %3129 = vmatpush.msrb.mxu2 %v4361_v12  ;;  %v4367_v24 = vpop.eup %4366  ;;  %4380 = vpow2.f32 %v2700_v4  ;;  %v2768_v31 = vmul.f32 1.442695, %v2320_v2  ;;  %v2758_v43 = vmul.f32 1.442695, %v2315_v41  ;;  %v2365_v22 = vsub.f32 %v5840_v55, %v6000_v19  ;;  %v7517_v41 = vld [vmem:[#allocation182_spill] sm:$0xff] }
 0x4d5   : > { %3053 = vmatmul.f32.gmra.mxu2 %v6318_v5  ;;  %3214 = vmatmul.f32.gmra.mxu1 %v6174_v51  ;;  %v4369_v45 = vpop.eup %4368  ;;  %4382 = vpow2.f32 %v2824_v6  ;;  %v2644_v63 = vmul.f32 1.442695, %v2258_v16  ;;  %v2299_v7 = vsub.f32 %v7510_v26, %v6114_v52  ;;  %v2866_v17 = vmul.f32 1.442695, %v2369_v47 }
 0x4d6   : > { %2969 = vmatpush.msrb.mxu3 %v4367_v24  ;;  %3130 = vmatpush.msrb.mxu2 %v4365_v50  ;;  %v4371_v8 = vpop.eup %4370  ;;  %4384 = vpow2.f32 %v2692_v59  ;;  %v2766_v50 = vmul.f32 1.442695, %v2319_v14  ;;  %v7508_v24 = vld [vmem:[#allocation206_spill] sm:$0xff]  ;;  %v2734_v54 = vmul.f32 1.442695, %v2303_v53  ;;  %v2357_v15 = vsub.f32 %v5792_v20, %v6000_v19 }
 0x4d7   : > { %v4373_v61 = vpop.eup %4372  ;;  %4386 = vpow2.f32 %v2816_v0  ;;  %v2307_v1 = vsub.f32 %v7508_v24, %v6114_v52  ;;  %v2726_v16 = vmul.f32 1.442695, %v2299_v7  ;;  %v7520_v24 = vld [vmem:[#allocation26_spill] sm:$0xff] }
 0x4d8   : > { %2970 = vmatpush.msrb.mxu3 %v4371_v8  ;;  %3131 = vmatpush.msrb.mxu2 %v4369_v45  ;;  %v4375_v51 = vpop.eup %4374  ;;  %4388 = vpow2.f32 %v2684_v40  ;;  %v2882_v45 = vmul.f32 1.442695, %v2377_v60  ;;  %v2750_v40 = vmul.f32 1.442695, %v2311_v29 }
 0x4d9   : > { %v4377_v58 = vpop.eup %4376  ;;  %4390 = vpow2.f32 %v2808_v27  ;;  %v2874_v27 = vmul.f32 1.442695, %v2373_v18  ;;  %v2742_v36 = vmul.f32 1.442695, %v2307_v1  ;;  %v6462_v1 = vadd.f32 %v7520_v24, %v6033_v3  ;;  %v7534_v24 = vld [vmem:[#allocation213_spill] sm:$0xff] }
 0x4da   : > { %2971 = vmatpush.msrb.mxu3 %v4375_v51  ;;  %3132 = vmatpush.msrb.mxu2 %v4373_v61  ;;  %v4379_v56 = vpop.eup %4378  ;;  %4392 = vpow2.f32 %v2676_v33  ;;  %v2361_v51 = vsub.f32 %v5816_v44, %v6000_v19 }
 0x4db   : > { %v4381_v21 = vpop.eup %4380  ;;  %4394 = vpow2.f32 %v2800_v57 }
 0x4dc   : > { %2972 = vmatpush.msrb.mxu3 %v4379_v56  ;;  %3133 = vmatpush.msrb.mxu2 %v4377_v58  ;;  %v4383_v37 = vpop.eup %4382  ;;  %4396 = vpow2.f32 %v2668_v46  ;;  %v7511_v58 = vld [vmem:[#allocation194_spill] sm:$0xff]  ;;  %v7512_v46 = vld [vmem:[#allocation24_spill] sm:$0xff] }
 0x4dd   : > { %v4385_v48 = vpop.eup %4384  ;;  %4398 = vpow2.f32 %v2792_v38  ;;  %v2295_v55 = vsub.f32 %v7511_v58, %v6114_v52  ;;  %v6440_v56 = vadd.f32 %v7512_v46, %v6016_v32  ;;  %v2858_v38 = vmul.f32 1.442695, %v2365_v22  ;;  %v7515_v32 = vld [vmem:[#allocation186_spill] sm:$0xff]  ;;  %v7527_v46 = vld [vmem:[#allocation223_spill] sm:$0xff] }
 0x4de   : > { %2973 = vmatpush.msrb.mxu3 %v4383_v37  ;;  %3134 = vmatpush.msrb.mxu2 %v4381_v21  ;;  %v4387_v12 = vpop.eup %4386  ;;  %4400 = vpow2.f32 %v2660_v30  ;;  %v7513_v21 = vld [vmem:[#allocation190_spill] sm:$0xff]  ;;  %v7514_v37 = vld [vmem:[#allocation241_spill] sm:$0xff] }
 0x4df   : > { %v4389_v4 = vpop.eup %4388  ;;  %4402 = vpow2.f32 %v2784_v28  ;;  %v2291_v13 = vsub.f32 %v7513_v21, %v6114_v52  ;;  %v2353_v2 = vsub.f32 %v7514_v37, %v6000_v19  ;;  %v2850_v28 = vmul.f32 1.442695, %v2361_v51  ;;  %v7526_v58 = vld [vmem:[#allocation166_spill] sm:$0xff]  ;;  %v7529_v37 = vld [vmem:[#allocation220_spill] sm:$0xff] }
 0x4e0   : > { %2974 = vmatpush.msrb.mxu3 %v4387_v12  ;;  %3135 = vmatpush.msrb.mxu2 %v4385_v48  ;;  %v4391_v42 = vpop.eup %4390  ;;  %4404 = vpow2.f32 %v2652_v35  ;;  %v2287_v48 = vsub.f32 %v7515_v32, %v6114_v52  ;;  %v2718_v14 = vmul.f32 1.442695, %v2295_v55  ;;  %v7516_v12 = vld [vmem:[#allocation238_spill] sm:$0xff]  ;;  %v2267_v55 = vsub.f32 %v7526_v58, %v6114_v52 }
 0x4e1   : > { %v4393_v6 = vpop.eup %4392  ;;  %4406 = vpow2.f32 %v2776_v11  ;;  %v2349_v39 = vsub.f32 %v7516_v12, %v6000_v19  ;;  %v2842_v11 = vmul.f32 1.442695, %v2357_v15  ;;  %v2834_v29 = vmul.f32 1.442695, %v2353_v2  ;;  %v7528_v21 = vld [vmem:[#allocation162_spill] sm:$0xff]  ;;  %v7531_v12 = vld [vmem:[#allocation217_spill] sm:$0xff] }
 0x4e2   : > { %2975 = vmatpush.msrb.mxu3 %v4391_v42  ;;  %3136 = vmatpush.msrb.mxu2 %v4389_v4  ;;  %v4395_v49 = vpop.eup %4394  ;;  %4408 = vpow2.f32 %v2644_v63  ;;  %v2283_v63 = vsub.f32 %v7517_v41, %v6114_v52  ;;  %v2710_v42 = vmul.f32 1.442695, %v2291_v13  ;;  %v2329_v15 = vsub.f32 %v7527_v46, %v6000_v19  ;;  %v7530_v32 = vld [vmem:[#allocation158_spill] sm:$0xff] }
 0x4e3   : > { %v4397_v59 = vpop.eup %4396  ;;  %4410 = vpow2.f32 %v2768_v31  ;;  %v7518_v31 = vld [vmem:[#allocation235_spill] sm:$0xff]  ;;  %v2826_v47 = vmul.f32 1.442695, %v2349_v39  ;;  %v2263_v13 = vsub.f32 %v7528_v21, %v6114_v52  ;;  %v2325_v2 = vsub.f32 %v7529_v37, %v6000_v19 }
 0x4e4   : > { %2976 = vmatpush.msrb.mxu3 %v4395_v49  ;;  %3137 = vmatpush.msrb.mxu2 %v4393_v6  ;;  %v4399_v0 = vpop.eup %4398  ;;  %4412 = vpow2.f32 %v2766_v50  ;;  %v2345_v6 = vsub.f32 %v7518_v31, %v6000_v19  ;;  %v7519_v49 = vld [vmem:[#allocation178_spill] sm:$0xff]  ;;  %v2694_v53 = vmul.f32 1.442695, %v2283_v63  ;;  %v2321_v39 = vsub.f32 %v7531_v12, %v6000_v19 }
 0x4e5   : > { %v4401_v10 = vpop.eup %4400  ;;  %4414 = vpow2.f32 %v2890_v9  ;;  %v2279_v18 = vsub.f32 %v7519_v49, %v6114_v52  ;;  %v2702_v9 = vmul.f32 1.442695, %v2287_v48  ;;  %v2259_v48 = vsub.f32 %v7530_v32, %v6114_v52 }
 0x4e6   : > { %2977 = vmatpush.msrb.mxu3 %v4399_v0  ;;  %3138 = vmatpush.msrb.mxu2 %v4397_v59  ;;  %v4403_v8 = vpop.eup %4402  ;;  %4416 = vpow2.f32 %v2758_v43  ;;  %v7521_v43 = vld [vmem:[#allocation232_spill] sm:$0xff]  ;;  %v2654_v41 = vmul.f32 1.442695, %v2263_v13  ;;  %v2778_v31 = vmul.f32 1.442695, %v2325_v2 }
 0x4e7   : > { %v4405_v61 = vpop.eup %4404  ;;  %4418 = vpow2.f32 %v2882_v45  ;;  %v2341_v0 = vsub.f32 %v7521_v43, %v6000_v19  ;;  %v2686_v7 = vmul.f32 1.442695, %v2279_v18  ;;  %v2770_v18 = vmul.f32 1.442695, %v2321_v39 }
 0x4e8   : > { %2978 = vmatpush.msrb.mxu3 %v4403_v8  ;;  %3139 = vmatpush.msrb.mxu2 %v4401_v10  ;;  %v4407_v33 = vpop.eup %4406  ;;  %4420 = vpow2.f32 %v2750_v40  ;;  %v7522_v10 = vld [vmem:[#allocation174_spill] sm:$0xff]  ;;  %v7523_v8 = vld [vmem:[#allocation229_spill] sm:$0xff]  ;;  %v2374_v43 = vsub.f32 %v7534_v24, %v6049_v23  ;;  %v7548_v24 = vld [vmem:[#allocation251_spill] sm:$0xff] }
 0x4e9   : > { %v4409_v57 = vpop.eup %4408  ;;  %4422 = vpow2.f32 %v2874_v27  ;;  %v2275_v25 = vsub.f32 %v7522_v10, %v6114_v52  ;;  %v2337_v22 = vsub.f32 %v7523_v8, %v6000_v19  ;;  %v2818_v27 = vmul.f32 1.442695, %v2345_v6  ;;  %v7535_v10 = vld [vmem:[#allocation209_spill] sm:$0xff] }
 0x4ea   : > { %2979 = vmatpush.msrb.mxu3 %v4407_v33  ;;  %3140 = vmatpush.msrb.mxu2 %v4405_v61  ;;  %v4411_v62 = vpop.eup %4410  ;;  %4424 = vpow2.f32 %v2742_v36  ;;  %v7524_v61 = vld [vmem:[#allocation170_spill] sm:$0xff] }
 0x4eb   : > { %v4413_v44 = vpop.eup %4412  ;;  %4426 = vpow2.f32 %v2866_v17  ;;  %v2271_v26 = vsub.f32 %v7524_v61, %v6114_v52  ;;  %v7525_v33 = vld [vmem:[#allocation226_spill] sm:$0xff]  ;;  %v2810_v17 = vmul.f32 1.442695, %v2341_v0 }
 0x4ec   : > { %2980 = vmatpush.msrb.mxu3 %v4411_v62  ;;  %3141 = vmatpush.msrb.mxu2 %v4409_v57  ;;  %v4415_v30 = vpop.eup %4414  ;;  %4428 = vpow2.f32 %v2734_v54  ;;  %v2333_v51 = vsub.f32 %v7525_v33, %v6000_v19  ;;  %v2678_v54 = vmul.f32 1.442695, %v2275_v25  ;;  %v7533_v19 = vld [vmem:[#allocation248_spill] sm:$0xff]  ;;  %v2370_v25 = vsub.f32 %v7535_v10, %v6049_v23 }
 0x4ed   : > { %2981 = vmatmul.f32.vlgmr.msrb.gmra.mxu3 %v6440_v56  ;;  %3142 = vmatmul.f32.vlgmr.msrb.gmra.mxu2 %v6296_v34  ;;  %v4417_v20 = vpop.eup %4416  ;;  %4430 = vpow2.f32 %v2858_v38  ;;  %v2802_v38 = vmul.f32 1.442695, %v2337_v22  ;;  %v2378_v49 = vsub.f32 %v7533_v19, %v6049_v23  ;;  %v7536_v22 = vld [vmem:[#allocation216_spill] sm:$0xff] }
 0x4ee   : > { %3057 = vmatpush.msra.mxu3 %v4415_v30  ;;  %3218 = vmatpush.msra.mxu2 %v4413_v44  ;;  %v4419_v35 = vpop.eup %4418  ;;  %4432 = vpow2.f32 %v2726_v16  ;;  %v2670_v16 = vmul.f32 1.442695, %v2271_v26  ;;  %v2868_v33 = vmul.f32 1.442695, %v2370_v25 }
 0x4ef   : > { %v4421_v4 = vpop.eup %4420  ;;  %4434 = vpow2.f32 %v2850_v28  ;;  %v2794_v28 = vmul.f32 1.442695, %v2333_v51 }
 0x4f0   : > { %3058 = vmatpush.msra.mxu3 %v4419_v35  ;;  %3219 = vmatpush.msra.mxu2 %v4417_v20  ;;  %v4423_v60 = vpop.eup %4422  ;;  %4436 = vpow2.f32 %v2718_v14  ;;  %v2662_v14 = vmul.f32 1.442695, %v2267_v55 }
 0x4f1   : > { %v4425_v50 = vpop.eup %4424  ;;  %4438 = vpow2.f32 %v2842_v11  ;;  %v2786_v11 = vmul.f32 1.442695, %v2329_v15 }
 0x4f2   : > { %3059 = vmatpush.msra.mxu3 %v4423_v60  ;;  %3220 = vmatpush.msra.mxu2 %v4421_v4  ;;  %v4427_v59 = vpop.eup %4426  ;;  %4440 = vpow2.f32 %v2710_v42  ;;  %v7532_v42 = vld [vmem:[#allocation250_spill] sm:$0xff] }
 0x4f3   : > { %v4429_v45 = vpop.eup %4428  ;;  %4442 = vpow2.f32 %v2834_v29  ;;  %v2382_v60 = vsub.f32 %v7532_v42, %v6049_v23  ;;  %v2646_v29 = vmul.f32 1.442695, %v2259_v48  ;;  %v7545_v42 = vld [vmem:[#allocation224_spill] sm:$0xff] }
 0x4f4   : > { %3060 = vmatpush.msra.mxu3 %v4427_v59  ;;  %3221 = vmatpush.msra.mxu2 %v4425_v50  ;;  %v4431_v40 = vpop.eup %4430  ;;  %4444 = vpow2.f32 %v2702_v9 }
 0x4f5   : > { %2984 = vmatmul.f32.gmra.mxu3 %v6462_v1  ;;  %3145 = vmatmul.f32.gmra.mxu2 %v6318_v5  ;;  %v4433_v3 = vpop.eup %4432  ;;  %4446 = vpow2.f32 %v2826_v47  ;;  %v2892_v0 = vmul.f32 1.442695, %v2382_v60  ;;  %v2330_v60 = vsub.f32 %v7545_v42, %v6049_v23 }
 0x4f6   : > { %3061 = vmatpush.msra.mxu3 %v4431_v40  ;;  %3222 = vmatpush.msra.mxu2 %v4429_v45  ;;  %v4435_v36 = vpop.eup %4434  ;;  %4448 = vpow2.f32 %v2694_v53  ;;  %v2884_v53 = vmul.f32 1.442695, %v2378_v49  ;;  %v7547_v49 = vld [vmem:[#allocation218_spill] sm:$0xff] }
 0x4f7   : > { %v4437_v57 = vpop.eup %4436  ;;  %4450 = vpow2.f32 %v2818_v27  ;;  %v2366_v27 = vsub.f32 %v7536_v22, %v6049_v23 }
 0x4f8   : > { %3062 = vmatpush.msra.mxu3 %v4435_v36  ;;  %3223 = vmatpush.msra.mxu2 %v4433_v3  ;;  %v4439_v62 = vpop.eup %4438  ;;  %4452 = vpow2.f32 %v2686_v7  ;;  %v2876_v3 = vmul.f32 1.442695, %v2374_v43  ;;  %v7537_v7 = vld [vmem:[#allocation246_spill] sm:$0xff]  ;;  %v2383_v43 = vsub.f32 %v7548_v24, %v6114_v52 }
 0x4f9   : > { %v4441_v44 = vpop.eup %4440  ;;  %4454 = vpow2.f32 %v2810_v17  ;;  %v2362_v36 = vsub.f32 %v7537_v7, %v6049_v23  ;;  %v2860_v55 = vmul.f32 1.442695, %v2366_v27  ;;  %v7551_v27 = vld [vmem:[#allocation210_spill] sm:$0xff]  ;;  %v7552_v7 = vld [vmem:[#allocation205_spill] sm:$0xff] }
 0x4fa   : > { %3063 = vmatpush.msra.mxu3 %v4439_v62  ;;  %3224 = vmatpush.msra.mxu2 %v4437_v57  ;;  %v4443_v30 = vpop.eup %4442  ;;  %4456 = vpow2.f32 %v2678_v54  ;;  %v7538_v57 = vld [vmem:[#allocation244_spill] sm:$0xff]  ;;  %v7539_v62 = vld [vmem:[#allocation242_spill] sm:$0xff] }
 0x4fb   : > { %v4445_v20 = vpop.eup %4444  ;;  %4458 = vpow2.f32 %v2802_v38  ;;  %v2358_v58 = vsub.f32 %v7538_v57, %v6049_v23  ;;  %v2354_v46 = vsub.f32 %v7539_v62, %v6049_v23  ;;  %v2852_v15 = vmul.f32 1.442695, %v2362_v36 }
 0x4fc   : > { %3064 = vmatpush.msra.mxu3 %v4443_v30  ;;  %3225 = vmatpush.msra.mxu2 %v4441_v44  ;;  %v4447_v35 = vpop.eup %4446  ;;  %4460 = vpow2.f32 %v2670_v16  ;;  %v7540_v44 = vld [vmem:[#allocation239_spill] sm:$0xff]  ;;  %v7541_v30 = vld [vmem:[#allocation236_spill] sm:$0xff]  ;;  %v2367_v36 = vsub.f32 %v7552_v7, %v6114_v52 }
 0x4fd   : > { %v4449_v4 = vpop.eup %4448  ;;  %4462 = vpow2.f32 %v2794_v28  ;;  %v2350_v21 = vsub.f32 %v7540_v44, %v6049_v23  ;;  %v2844_v13 = vmul.f32 1.442695, %v2358_v58  ;;  %v2346_v37 = vsub.f32 %v7541_v30, %v6049_v23 }
 0x4fe   : > { %3065 = vmatpush.msra.mxu3 %v4447_v35  ;;  %3226 = vmatpush.msra.mxu2 %v4445_v20  ;;  %v4451_v63 = vpop.eup %4450  ;;  %4464 = vpow2.f32 %v2662_v14  ;;  %v2836_v2 = vmul.f32 1.442695, %v2354_v46  ;;  %v7542_v20 = vld [vmem:[#allocation233_spill] sm:$0xff]  ;;  %v7543_v14 = vld [vmem:[#allocation230_spill] sm:$0xff]  ;;  %v2862_v46 = vmul.f32 1.442695, %v2367_v36 }
 0x4ff   : > { %v4453_v6 = vpop.eup %4452  ;;  %4466 = vpow2.f32 %v2786_v11  ;;  %v2342_v32 = vsub.f32 %v7542_v20, %v6049_v23  ;;  %v2338_v35 = vsub.f32 %v7543_v14, %v6049_v23  ;;  %v2820_v12 = vmul.f32 1.442695, %v2346_v37  ;;  %v7544_v11 = vld [vmem:[#allocation227_spill] sm:$0xff] }
 0x500   : > { %3066 = vmatpush.msra.mxu3 %v4451_v63  ;;  %3227 = vmatpush.msra.mxu2 %v4449_v4  ;;  %v4455_v50 = vpop.eup %4454  ;;  %4468 = vpow2.f32 %v2654_v41  ;;  %v2334_v4 = vsub.f32 %v7544_v11, %v6049_v23 }
 0x501   : > { %v4457_v9 = vpop.eup %4456  ;;  %4470 = vpow2.f32 %v2778_v31  ;;  %v2812_v41 = vmul.f32 1.442695, %v2342_v32  ;;  %v2804_v31 = vmul.f32 1.442695, %v2338_v35 }
 0x502   : > { %3067 = vmatpush.msra.mxu3 %v4455_v50  ;;  %3228 = vmatpush.msra.mxu2 %v4453_v6  ;;  %v4459_v59 = vpop.eup %4458  ;;  %4472 = vpow2.f32 %v2646_v29  ;;  %v7546_v29 = vld [vmem:[#allocation221_spill] sm:$0xff] }
 0x503   : > { %v4461_v47 = vpop.eup %4460  ;;  %4474 = vpow2.f32 %v2770_v18  ;;  %v2326_v50 = vsub.f32 %v7546_v29, %v6049_v23  ;;  %v2322_v18 = vsub.f32 %v7547_v49, %v6049_v23  ;;  %v7550_v23 = vld [vmem:[#allocation214_spill] sm:$0xff] }
 0x504   : > { %3068 = vmatpush.msra.mxu3 %v4459_v59  ;;  %3229 = vmatpush.msra.mxu2 %v4457_v9  ;;  %v4463_v45 = vpop.eup %4462  ;;  %4476 = vpow2.f32 %v2892_v0  ;;  %v2788_v9 = vmul.f32 1.442695, %v2330_v60 }
 0x505   : > { %v4465_v40 = vpop.eup %4464  ;;  %4478 = vpow2.f32 %v2884_v53  ;;  %v2780_v0 = vmul.f32 1.442695, %v2326_v50  ;;  %v2772_v25 = vmul.f32 1.442695, %v2322_v18 }
 0x506   : > { %3069 = vmatpush.msra.mxu3 %v4463_v45  ;;  %3230 = vmatpush.msra.mxu2 %v4461_v47  ;;  %v4467_v8 = vpop.eup %4466  ;;  %4480 = vpow2.f32 %v2876_v3  ;;  %v7549_v45 = vld [vmem:[#allocation249_spill] sm:$0xff]  ;;  %v2371_v3 = vsub.f32 %v7551_v27, %v6114_v52  ;;  %v7564_v27 = vld [vmem:[#allocation252_spill] sm:$0xff] }
 0x507   : > { %v4469_v61 = vpop.eup %4468  ;;  %4482 = vpow2.f32 %v2868_v33  ;;  %v2379_v10 = vsub.f32 %v7549_v45, %v6114_v52 }
 0x508   : > { %3070 = vmatpush.msra.mxu3 %v4467_v8  ;;  %3231 = vmatpush.msra.mxu2 %v4465_v40  ;;  %v4471_v26 = vpop.eup %4470  ;;  %4484 = vpow2.f32 %v2860_v55  ;;  %v2894_v40 = vmul.f32 1.442695, %v2383_v43  ;;  %v2375_v8 = vsub.f32 %v7550_v23, %v6114_v52  ;;  %v2870_v58 = vmul.f32 1.442695, %v2371_v3  ;;  %v7565_v3 = vld [vmem:[#allocation253_spill] sm:$0xff] }
 0x509   : > { %v4473_v51 = vpop.eup %4472  ;;  %4486 = vpow2.f32 %v2852_v15 }
 0x50a   : > { %3071 = vmatpush.msra.mxu3 %v4471_v26  ;;  %3232 = vmatpush.msra.mxu2 %v4469_v61  ;;  %v4475_v17 = vpop.eup %4474  ;;  %4488 = vpow2.f32 %v2844_v13  ;;  %v2886_v61 = vmul.f32 1.442695, %v2379_v10  ;;  %v2878_v33 = vmul.f32 1.442695, %v2375_v8  ;;  %v2913_v8 = vpop.f32.mrf.mxu0 }
 0x50b   : > { %v4477_v54 = vpop.eup %4476  ;;  %4490 = vpow2.f32 %v2836_v2 }
 0x50c   : > { %3072 = vmatpush.msra.mxu3 %v4475_v17  ;;  %3233 = vmatpush.msra.mxu2 %v4473_v51  ;;  %v4479_v38 = vpop.eup %4478  ;;  %v7553_v17 = vld [vmem:[#allocation247_spill] sm:$0xff] }
 0x50d   : > { %3073 = vmatmul.f32.vlgmr.msra.gmra.mxu3 %v6440_v56  ;;  %3234 = vmatmul.f32.vlgmr.msra.gmra.mxu2 %v6296_v34  ;;  %v4481_v16 = vpop.eup %4480  ;;  %v2828_v34 = vmul.f32 1.442695, %v2350_v21  ;;  %v2363_v57 = vsub.f32 %v7553_v17, %v6114_v52 }
 0x50e   : > { %3149 = vmatpush.msrb.mxu3 %v4477_v54  ;;  %v4483_v28 = vpop.eup %4482  ;;  %v7554_v54 = vld [vmem:[#allocation245_spill] sm:$0xff] }
 0x50f   : > { %v4485_v48 = vpop.eup %4484  ;;  %4492 = vpow2.f32 %v2828_v34  ;;  %v2359_v62 = vsub.f32 %v7554_v54, %v6114_v52  ;;  %v2854_v21 = vmul.f32 1.442695, %v2363_v57 }
 0x510   : > { %3150 = vmatpush.msrb.mxu3 %v4479_v38  ;;  %v4487_v39 = vpop.eup %4486  ;;  %4494 = vpow2.f32 %v2820_v12  ;;  %v7555_v38 = vld [vmem:[#allocation243_spill] sm:$0xff] }
 0x511   : > { %v4489_v63 = vpop.eup %4488  ;;  %4496 = vpow2.f32 %v2812_v41  ;;  %v2355_v44 = vsub.f32 %v7555_v38, %v6114_v52  ;;  %v2846_v37 = vmul.f32 1.442695, %v2359_v62 }
 0x512   : > { %3151 = vmatpush.msrb.mxu3 %v4481_v16  ;;  %v4491_v6 = vpop.eup %4490  ;;  %4498 = vpow2.f32 %v2804_v31  ;;  %v7556_v16 = vld [vmem:[#allocation240_spill] sm:$0xff]  ;;  %v2916_v36 = vpop.f32.mrf.mxu0 }
 0x513   : > { %v2351_v30 = vsub.f32 %v7556_v16, %v6114_v52  ;;  %v2838_v32 = vmul.f32 1.442695, %v2355_v44 }
 0x514   : > { %3152 = vmatpush.msrb.mxu3 %v4483_v28  ;;  %v7557_v28 = vld [vmem:[#allocation237_spill] sm:$0xff] }
 0x515   : > { %3076 = vmatmul.f32.gmra.mxu3 %v6462_v1  ;;  %3237 = vmatmul.f32.gmra.mxu2 %v6318_v5  ;;  %v2796_v5 = vmul.f32 1.442695, %v2334_v4  ;;  %v4493_v19 = vpop.eup %4492  ;;  %v2347_v20 = vsub.f32 %v7557_v28, %v6114_v52  ;;  %v2830_v35 = vmul.f32 1.442695, %v2351_v30  ;;  %v6579_v30 = vld [vmem:[%s6695_s6 + $0x8] sm:$0xff] }
 0x516   : > { %3153 = vmatpush.msrb.mxu3 %v4485_v48  ;;  %v4495_v59 = vpop.eup %4494  ;;  %v7558_v48 = vld [vmem:[#allocation234_spill] sm:$0xff] }
 0x517   : > { %4500 = vpow2.f32 %v2796_v5  ;;  %v4497_v47 = vpop.eup %4496  ;;  %v2343_v14 = vsub.f32 %v7558_v48, %v6114_v52  ;;  %v2822_v4 = vmul.f32 1.442695, %v2347_v20 }
 0x518   : > { %3154 = vmatpush.msrb.mxu3 %v4487_v39  ;;  %4502 = vpow2.f32 %v2788_v9  ;;  %v4499_v53 = vpop.eup %4498  ;;  %v7559_v39 = vld [vmem:[#allocation231_spill] sm:$0xff] }
 0x519   : > { %4504 = vpow2.f32 %v2780_v0  ;;  %v2339_v11 = vsub.f32 %v7559_v39, %v6114_v52  ;;  %v2814_v60 = vmul.f32 1.442695, %v2343_v14 }
 0x51a   : > { %3155 = vmatpush.msrb.mxu3 %v4489_v63  ;;  %4506 = vpow2.f32 %v2772_v25  ;;  %v7560_v63 = vld [vmem:[#allocation228_spill] sm:$0xff]  ;;  %v3005_v16 = vpop.f32.mrf.mxu0 }
 0x51b   : > { %4508 = vpow2.f32 %v2894_v40  ;;  %v2335_v42 = vsub.f32 %v7560_v63, %v6114_v52  ;;  %v2806_v50 = vmul.f32 1.442695, %v2339_v11 }
 0x51c   : > { %3156 = vmatpush.msrb.mxu3 %v4491_v6  ;;  %4510 = vpow2.f32 %v2886_v61  ;;  %v7561_v6 = vld [vmem:[#allocation225_spill] sm:$0xff]  ;;  %v7566_v61 = vsub.f32 %v7564_v27, %v7565_v3 }
 0x51d   : > { %v4501_v22 = vpop.eup %4500  ;;  %4512 = vpow2.f32 %v2878_v33  ;;  %v2331_v29 = vsub.f32 %v7561_v6, %v6114_v52  ;;  %v2798_v18 = vmul.f32 1.442695, %v2335_v42 }
 0x51e   : > { %3157 = vmatpush.msrb.mxu3 %v4493_v19  ;;  %v4503_v26 = vpop.eup %4502  ;;  %4514 = vpow2.f32 %v2870_v58  ;;  %v7562_v19 = vld [vmem:[#allocation222_spill] sm:$0xff] }
 0x51f   : > { %v4505_v51 = vpop.eup %4504  ;;  %4516 = vpow2.f32 %v2862_v46  ;;  %v2327_v49 = vsub.f32 %v7562_v19, %v6114_v52  ;;  %v2790_v43 = vmul.f32 1.442695, %v2331_v29 }
 0x520   : > { %3158 = vmatpush.msrb.mxu3 %v4495_v59  ;;  %v4507_v55 = vpop.eup %4506  ;;  %4518 = vpow2.f32 %v2854_v21  ;;  %v7563_v59 = vld [vmem:[#allocation219_spill] sm:$0xff] }
 0x521   : > { %v4509_v15 = vpop.eup %4508  ;;  %4520 = vpow2.f32 %v2846_v37  ;;  %v2323_v24 = vsub.f32 %v7563_v59, %v6114_v52 }
 0x522   : > { %3159 = vmatpush.msrb.mxu3 %v4497_v47  ;;  %v4511_v13 = vpop.eup %4510  ;;  %4522 = vpow2.f32 %v2838_v32  ;;  %v2782_v47 = vmul.f32 1.442695, %v2327_v49  ;;  %v3008_v28 = vpop.f32.mrf.mxu0 }
 0x523   : > { %v4513_v2 = vpop.eup %4512  ;;  %4524 = vpow2.f32 %v2830_v35  ;;  %v2774_v10 = vmul.f32 1.442695, %v2323_v24 }
 0x524   : > { %3160 = vmatpush.msrb.mxu3 %v4499_v53  ;;  %v4515_v34 = vpop.eup %4514  ;;  %4526 = vpow2.f32 %v2822_v4 }
 0x525   : > { %v4517_v12 = vpop.eup %4516  ;;  %4528 = vpow2.f32 %v2814_v60 }
 0x526   : > { %3161 = vmatpush.msrb.mxu3 %v4501_v22  ;;  %v4519_v41 = vpop.eup %4518  ;;  %4530 = vpow2.f32 %v2806_v50  ;;  %v2936_v22 = vpop.f32.mrf.mxu1 }
 0x527   : > { %v4521_v31 = vpop.eup %4520  ;;  %4532 = vpow2.f32 %v2798_v18  ;;  %v2937_v58 = vadd.f32 %v2936_v22, %v2913_v8 }
 0x528   : > { %3162 = vmatpush.msrb.mxu3 %v4503_v26  ;;  %v4523_v5 = vpop.eup %4522  ;;  %4534 = vpow2.f32 %v2790_v43  ;;  %v2117_v26 = vmul.f32 1.442695, %v7566_v61 }
 0x529   : > { %v4525_v9 = vpop.eup %4524  ;;  %4536 = vpow2.f32 %v2782_v47 }
 0x52a   : > { %3163 = vmatpush.msrb.mxu3 %v4505_v51  ;;  %v4527_v0 = vpop.eup %4526  ;;  %4538 = vpow2.f32 %v2774_v10 }
 0x52b   : > { %v4529_v45 = vpop.eup %4528  ;;  %4540 = vpow2.f32 %v2117_v26 }
 0x52c   : > { %3164 = vmatpush.msrb.mxu3 %v4507_v55  ;;  %v4531_v25 = vpop.eup %4530 }
 0x52d   : > { %3165 = vmatmul.f32.vlgmr.msrb.gmra.mxu3 %v6440_v56  ;;  %v4533_v53 = vpop.eup %4532 }
 0x52e   : > { %3241 = vmatpush.msra.mxu3 %v4509_v15  ;;  %v4535_v40 = vpop.eup %4534  ;;  %v2939_v51 = vpop.f32.mrf.mxu1 }
 0x52f   : > { %v4537_v52 = vpop.eup %4536  ;;  %v2959_v7 = vpop.f32.mrf.mxu2  ;;  %v2940_v55 = vadd.f32 %v2939_v51, %v2916_v36 }
 0x530   : > { %3242 = vmatpush.msra.mxu3 %v4511_v13  ;;  %v4539_v23 = vpop.eup %4538  ;;  %v2960_v54 = vadd.f32 %v2959_v7, %v2937_v58  ;;  %v6572_v13 = vld [vmem:[%s6695_s6] sm:$0xff] }
 0x531   : > { %v6563_v17 = vpop.eup %4540 }
 0x532   : > { %3243 = vmatpush.msra.mxu3 %v4513_v2  ;;  %v3275_v24 = vperm.slane %v6563_v17, 2  ;;  %v3276_v36 = vperm.slane %v6563_v17, 3 }
 0x534   : > { %3244 = vmatpush.msra.mxu3 %v4515_v34  ;;  %v3284_v58 = vmul.f32 0.0, %v3276_v36 }
 0x535   : > { %3168 = vmatmul.f32.gmra.mxu3 %v6462_v1 }
 0x536   : > { %3245 = vmatpush.msra.mxu3 %v4517_v12  ;;  %v3028_v37 = vpop.f32.mrf.mxu1  ;;  %v3274_v12 = vperm.slane %v6563_v17, 1 }
 0x537   : > { %v2962_v57 = vpop.f32.mrf.mxu2  ;;  %v3029_v48 = vadd.f32 %v3028_v37, %v3005_v16 }
 0x538   : > { %3246 = vmatpush.msra.mxu3 %v4519_v41  ;;  %v3282_v41 = vmul.f32 0.0, %v3274_v12 }
 0x53a   : > { %3247 = vmatpush.msra.mxu3 %v4521_v31  ;;  %v3097_v31 = vpop.f32.mrf.mxu0 }
 0x53c   : > { %3248 = vmatpush.msra.mxu3 %v4523_v5 }
 0x53e   : > { %3249 = vmatpush.msra.mxu3 %v4525_v9  ;;  %v3031_v32 = vpop.f32.mrf.mxu1 }
 0x53f   : > { %v3032_v14 = vadd.f32 %v3031_v32, %v3008_v28  ;;  %v6612_v28 = vpop.permute.xlu0 %3493 }
 0x540   : > { %3250 = vmatpush.msra.mxu3 %v4527_v0 }
 0x542   : > { %3251 = vmatpush.msra.mxu3 %v4529_v45  ;;  %v3100_v50 = vpop.f32.mrf.mxu0  ;;  %v3283_v45 = vmul.f32 0.0, %v3275_v24 }
 0x544   : > { %3252 = vmatpush.msra.mxu3 %v4531_v25 }
 0x546   : > { %3253 = vmatpush.msra.mxu3 %v4533_v53  ;;  %v3120_v6 = vpop.f32.mrf.mxu1 }
 0x547   : > { %v3121_v18 = vadd.f32 %v3120_v6, %v3097_v31 }
 0x548   : > { %3254 = vmatpush.msra.mxu3 %v4535_v40 }
 0x54a   : > { %3255 = vmatpush.msra.mxu3 %v4537_v52  ;;  %v3189_v40 = vpop.f32.mrf.mxu0 }
 0x54c   : > { %3256 = vmatpush.msra.mxu3 %v4539_v23 }
 0x54d   : > { %3257 = vmatmul.f32.vlgmr.msra.gmra.mxu3 %v6440_v56  ;;  %v3273_v56 = vperm.slane %v6563_v17, 0 }
 0x54e   : > { %v3123_v19 = vpop.f32.mrf.mxu1 }
 0x54f   : > { %v3281_v15 = vmul.f32 0.0, %v3273_v56  ;;  %v3051_v2 = vpop.f32.mrf.mxu2  ;;  %v3124_v9 = vadd.f32 %v3123_v19, %v3100_v50 }
 0x550   : > { %v3052_v35 = vadd.f32 %v3051_v2, %v3029_v48 }
 0x552   : > { %v3192_v8 = vpop.f32.mrf.mxu0 }
 0x555   : > { %3260 = vmatmul.f32.gmra.mxu3 %v6462_v1  ;;  %v2963_v1 = vadd.f32 %v2962_v57, %v2940_v55 }
 0x556   : > { %v3212_v52 = vpop.f32.mrf.mxu1 }
 0x557   : > { %v3213_v61 = vadd.f32 %v3212_v52, %v3189_v40 }
 0x558   : > { %v3054_v34 = vpop.f32.mrf.mxu2 }
 0x559   : > { %v3055_v39 = vadd.f32 %v3054_v34, %v3032_v14 }
 0x55e   : > { %v3215_v27 = vpop.f32.mrf.mxu1 }
 0x55f   : > { %v3216_v26 = vadd.f32 %v3215_v27, %v3192_v8 }
 0x570   : > { %v2982_v33 = vpop.f32.mrf.mxu3  ;;  %v3143_v29 = vpop.f32.mrf.mxu2 }
 0x571   : > { %v2983_v46 = vadd.f32 %v2982_v33, %v2960_v54  ;;  %v3144_v59 = vadd.f32 %v3143_v29, %v3121_v18 }
 0x573   : > { %v3289_v21 = vadd.f32 %v3281_v15, %v2983_v46 }
 0x578   : > { %v2985_v62 = vpop.f32.mrf.mxu3  ;;  %v3146_v49 = vpop.f32.mrf.mxu2 }
 0x579   : > { %v2986_v38 = vadd.f32 %v2985_v62, %v2963_v1  ;;  %v3147_v43 = vadd.f32 %v3146_v49, %v3124_v9 }
 0x57b   : > { %v6566_v44 = vadd.f32 %v3281_v15, %v2986_v38 }
 0x57d   : > { %3343 = vmatpush.msrb.mxu0 %v6566_v44  ;;  %4542 = vrcp.f32 %v6566_v44  ;;  %v3432_v38 = vand.u32 2147483648, %v6566_v44  ;;  %vm3426_vm7 = vweird.f32 %v6566_v44 }
 0x57f   : > { %3344 = vmatpush.msrb.mxu0 %v3289_v21  ;;  %v3430_v21 = vand.u32 2147483647, %v6566_v44 }
 0x580   : > { %3937 = vmatmul.msk.f32.vlgmr.msrb.gmra.mxu0 %vm419_vm0, %v6572_v13 }
 0x581   : > { %vm3431_vm9 = vcmp.eq.f32.partialorder %v3430_v21, 8.507059e+37 }
 0x583   : > { %v4543_v1 = vpop.eup %4542 }
 0x584   : > { %v3422_v62 = vmul.f32 %v4543_v1, %v6566_v44  ;;  %vm3427_vm6 = vweird.f32 %v4543_v1 }
 0x585   : > { %vm3428_vm8 = vmor %vm3426_vm7, %vm3427_vm6 }
 0x586   : > { %v3423_v17 = vsub.f32 1.0, %v3422_v62 }
 0x588   : > { %3938 = vmatmul.msk.f32.gmra.mxu0 %vm419_vm0, %v6579_v30  ;;  %v3424_v46 = vmul.f32 %v4543_v1, %v3423_v17 }
 0x58a   : > { %v3425_v15 = vadd.f32 %v4543_v1, %v3424_v46 }
 0x58c   : > { %v3429_v16 = vsel %vm3428_vm8, %v4543_v1, %v3425_v15 }
 0x590   : > { %v3074_v20 = vpop.f32.mrf.mxu3  ;;  %v3235_v23 = vpop.f32.mrf.mxu2 }
 0x591   : > { %v3075_v4 = vadd.f32 %v3074_v20, %v3052_v35  ;;  %v3236_v7 = vadd.f32 %v3235_v23, %v3213_v61  ;;  %v6621_v35 = vpop.permute.xlu0 %3498 }
 0x593   : > { %v3290_v60 = vadd.f32 %v3282_v41, %v3075_v4 }
 0x598   : > { %v3077_v11 = vpop.f32.mrf.mxu3  ;;  %v3238_v3 = vpop.f32.mrf.mxu2 }
 0x599   : > { %v3078_v63 = vadd.f32 %v3077_v11, %v3055_v39  ;;  %v3239_v33 = vadd.f32 %v3238_v3, %v3216_v26 }
 0x59b   : > { %v6584_v42 = vadd.f32 %v3282_v41, %v3078_v63 }
 0x59d   : > { %3366 = vmatpush.msrb.mxu1 %v6584_v42  ;;  %4544 = vrcp.f32 %v6584_v42  ;;  %v3446_v41 = vand.u32 2147483648, %v6584_v42  ;;  %vm3440_vm11 = vweird.f32 %v6584_v42  ;;  %v3444_v63 = vand.u32 2147483647, %v6584_v42 }
 0x59f   : > { %3367 = vmatpush.msrb.mxu1 %v3290_v60  ;;  %v3447_v31 = vor.u32 1.1754944e-38, %v3446_v41  ;;  %vm3445_vm13 = vcmp.eq.f32.partialorder %v3444_v63, 8.507059e+37 }
 0x5a0   : > { %3939 = vmatmul.msk.f32.vlgmr.msrb.gmra.mxu1 %vm419_vm0, %v6572_v13 }
 0x5a3   : > { %v4545_v44 = vpop.eup %4544 }
 0x5a4   : > { %v3436_v14 = vmul.f32 %v4545_v44, %v6584_v42  ;;  %vm3441_vm10 = vweird.f32 %v4545_v44 }
 0x5a5   : > { %vm3442_vm12 = vmor %vm3440_vm11, %vm3441_vm10 }
 0x5a6   : > { %v3437_v39 = vsub.f32 1.0, %v3436_v14 }
 0x5a8   : > { %3940 = vmatmul.msk.f32.gmra.mxu1 %vm419_vm0, %v6579_v30  ;;  %v3438_v11 = vmul.f32 %v4545_v44, %v3437_v39 }
 0x5aa   : > { %v3439_v4 = vadd.f32 %v4545_v44, %v3438_v11 }
 0x5ac   : > { %v3443_v60 = vsel %vm3442_vm12, %v4545_v44, %v3439_v4 }
 0x5ad   : > { %v3448_v6 = vsel %vm3445_vm13, %v3447_v31, %v3443_v60 }
 0x5ae   : > { %v3478_v29 = vperm.slane %v3448_v6, 0 }
 0x5b0   : > { %v3166_v5 = vpop.f32.mrf.mxu3 }
 0x5b1   : > { %v3167_v47 = vadd.f32 %v3166_v5, %v3144_v59 }
 0x5b3   : > { %v3291_v53 = vadd.f32 %v3283_v45, %v3167_v47 }
 0x5b8   : > { %v3169_v0 = vpop.f32.mrf.mxu3 }
 0x5b9   : > { %v3170_v10 = vadd.f32 %v3169_v0, %v3147_v43 }
 0x5bb   : > { %v6592_v25 = vadd.f32 %v3283_v45, %v3170_v10 }
 0x5bd   : > { %3389 = vmatpush.msrb.mxu2 %v6592_v25  ;;  %4546 = vrcp.f32 %v6592_v25  ;;  %v3460_v47 = vand.u32 2147483648, %v6592_v25  ;;  %vm3454_vm15 = vweird.f32 %v6592_v25  ;;  %v3458_v45 = vand.u32 2147483647, %v6592_v25 }
 0x5bf   : > { %3390 = vmatpush.msrb.mxu2 %v3291_v53  ;;  %v3461_v53 = vor.u32 1.1754944e-38, %v3460_v47  ;;  %vm3459_vm1 = vcmp.eq.f32.partialorder %v3458_v45, 8.507059e+37 }
 0x5c0   : > { %3941 = vmatmul.msk.f32.vlgmr.msrb.gmra.mxu2 %vm419_vm0, %v6572_v13 }
 0x5c3   : > { %v4547_v59 = vpop.eup %4546 }
 0x5c4   : > { %v3450_v42 = vmul.f32 %v4547_v59, %v6592_v25  ;;  %vm3455_vm14 = vweird.f32 %v4547_v59 }
 0x5c6   : > { %v3451_v24 = vsub.f32 1.0, %v3450_v42 }
 0x5c8   : > { %3942 = vmatmul.msk.f32.gmra.mxu2 %vm419_vm0, %v6579_v30  ;;  %v3452_v43 = vmul.f32 %v4547_v59, %v3451_v24 }
 0x5ca   : > { %v3453_v0 = vadd.f32 %v4547_v59, %v3452_v43 }
 0x5d0   : > { %v3258_v22 = vpop.f32.mrf.mxu3 }
 0x5d1   : > { %v3259_v57 = vadd.f32 %v3258_v22, %v3236_v7 }
 0x5d3   : > { %v3292_v56 = vadd.f32 %v3284_v58, %v3259_v57 }
 0x5d8   : > { %v3261_v51 = vpop.f32.mrf.mxu3 }
 0x5d9   : > { %v3262_v55 = vadd.f32 %v3261_v51, %v3239_v33 }
 0x5db   : > { %v6600_v54 = vadd.f32 %v3284_v58, %v3262_v55 }
 0x5dd   : > { %3412 = vmatpush.msrb.mxu3 %v6600_v54  ;;  %4548 = vrcp.f32 %v6600_v54  ;;  %v3474_v51 = vand.u32 2147483648, %v6600_v54  ;;  %vm3468_vm3 = vweird.f32 %v6600_v54  ;;  %v3472_v57 = vand.u32 2147483647, %v6600_v54 }
 0x5df   : > { %3413 = vmatpush.msrb.mxu3 %v3292_v56  ;;  %v3475_v55 = vor.u32 1.1754944e-38, %v3474_v51  ;;  %vm3473_vm5 = vcmp.eq.f32.partialorder %v3472_v57, 8.507059e+37 }
 0x5e0   : > { %3943 = vmatmul.msk.f32.vlgmr.msrb.gmra.mxu3 %vm419_vm0, %v6572_v13  ;;  %v3433_v13 = vor.u32 1.1754944e-38, %v3432_v38 }
 0x5e2   : > { %v3434_v37 = vsel %vm3431_vm9, %v3433_v13, %v3429_v16 }
 0x5e3   : > { %v3477_v2 = vperm.slane %v3434_v37, 0  ;;  %v4549_v27 = vpop.eup %4548 }
 0x5e4   : > { %v3464_v26 = vmul.f32 %v4549_v27, %v6600_v54  ;;  %vm3469_vm2 = vweird.f32 %v4549_v27 }
 0x5e5   : > { %vm3470_vm4 = vmor %vm3468_vm3, %vm3469_vm2 }
 0x5e6   : > { %v3465_v7 = vsub.f32 1.0, %v3464_v26 }
 0x5e8   : > { %3944 = vmatmul.msk.f32.gmra.mxu3 %vm419_vm0, %v6579_v30  ;;  %vm3456_vm0 = vmor %vm3454_vm15, %vm3455_vm14  ;;  %v3466_v36 = vmul.f32 %v4549_v27, %v3465_v7 }
 0x5e9   : > { %v3457_v10 = vsel %vm3456_vm0, %v4547_v59, %v3453_v0 }
 0x5ea   : > { %v3462_v40 = vsel %vm3459_vm1, %v3461_v53, %v3457_v10  ;;  %v3467_v33 = vadd.f32 %v4549_v27, %v3466_v36 }
 0x5eb   : > { %v3479_v52 = vperm.slane %v3462_v40, 0 }
 0x5ec   : > { %v3471_v58 = vsel %vm3470_vm4, %v4549_v27, %v3467_v33 }
 0x5ed   : > { %v3476_v56 = vsel %vm3473_vm5, %v3475_v55, %v3471_v58 }
 0x5ee   : > { %v3480_v1 = vperm.slane %v3476_v56, 0 }
 0x5fd   : > { %v3346_v30 = vpop.f32.mrf.mxu0 }
 0x5fe   : > { %v3481_v20 = vmul.f32 %v3477_v2, %v3346_v30 }
 0x600   : > { %v3501_v32 = vadd.f32 %v6612_v28, %v3481_v20 }
 0x602   : > { %3509 = vst [vmem:[%s6617_s25] sm:$0xff] %v3501_v32 }
 0x605   : > { %v3349_v34 = vpop.f32.mrf.mxu0 }
 0x606   : > { %v3485_v48 = vmul.f32 %v3477_v2, %v3349_v34 }
 0x608   : > { %v3505_v12 = vadd.f32 %v6621_v35, %v3485_v48 }
 0x60a   : > { %3513 = vst [vmem:[%s6617_s25 + $0x20] sm:$0xff] %v3505_v12 }
 0x61d   : > { %v3369_v50 = vpop.f32.mrf.mxu1 }
 0x61e   : > { %v3482_v5 = vmul.f32 %v3478_v29, %v3369_v50 }
 0x620   : > { %v3502_v19 = vadd.f32 %v6612_v28, %v3482_v5 }
 0x622   : > { %3510 = vst [vmem:[%s6617_s25 + $0x8] sm:$0xff] %v3502_v19 }
 0x625   : > { %v3372_v49 = vpop.f32.mrf.mxu1 }
 0x626   : > { %v3486_v18 = vmul.f32 %v3478_v29, %v3372_v49 }
 0x628   : > { %v3506_v9 = vadd.f32 %v6621_v35, %v3486_v18 }
 0x62a   : > { %3514 = vst [vmem:[%s6617_s25 + $0x28] sm:$0xff] %v3506_v9 }
 0x643   : > { %v3392_v23 = vpop.f32.mrf.mxu2 }
 0x644   : > { %v3483_v8 = vmul.f32 %v3479_v52, %v3392_v23 }
 0x646   : > { %v3503_v22 = vadd.f32 %v6612_v28, %v3483_v8 }
 0x648   : > { %3511 = vst [vmem:[%s6617_s25 + $0x10] sm:$0xff] %v3503_v22 }
 0x64b   : > { %v3395_v3 = vpop.f32.mrf.mxu2 }
 0x64c   : > { %v3487_v61 = vmul.f32 %v3479_v52, %v3395_v3 }
 0x64e   : > { %v3507_v25 = vadd.f32 %v6621_v35, %v3487_v61 }
 0x650   : > { %3515 = vst [vmem:[%s6617_s25 + $0x30] sm:$0xff] %v3507_v25 }
 0x663   : > { %v3415_v62 = vpop.f32.mrf.mxu3 }
 0x664   : > { %v3484_v17 = vmul.f32 %v3480_v1, %v3415_v62 }
 0x666   : > { %v3504_v46 = vadd.f32 %v6612_v28, %v3484_v17 }
 0x668   : > { %3512 = vst [vmem:[%s6617_s25 + $0x18] sm:$0xff] %v3504_v46 }
 0x66b   : > { %v3418_v54 = vpop.f32.mrf.mxu3 }
 0x66c   : > { %v3488_v15 = vmul.f32 %v3480_v1, %v3418_v54 }
 0x66e   : > { %v3508_v38 = vadd.f32 %v6621_v35, %v3488_v15 }
 0x670   : > { %3516 = vst [vmem:[%s6617_s25 + $0x38] sm:$0xff] %v3508_v38 }
 0x671   : > { %4637 = shalt.err (!%p4634_p13)
}
 0x672   : > { %s4702_s20 = smov 512   ;;  %s4703_s14 = smov 32  }
 0x673   : > { %3957 = dma.vmem_to_hbm [thread:$0]  (%p4800_p9), %s3533_s23, 1024, %s3535_s12, %s3518_s0, %s4702_s20, %s4702_s20, %s4703_s14  }
 0x674 PF: > { %s3549_s24 = sand.u32 1, %s4676_s27   ;;  %p3967_p0 = pnand %p3654_p12, %p4807_p11 }
 0x675   : > { %s3550_s25 = scalar_lea.sflag [#allocation7], %s3549_s24 }
 0x676   : > { %p3968_p1 = pneg %p3967_p0 }
 0x678   : > { %4671 = dma.done.wait (%p3968_p1), %s3550_s25, 1024  }
 0x679   : > { %4673 = vsyncadd (%p3968_p1), %s3550_s25, 4294966272  ;;  %s27_s10 = sadd.s32 1, %s4696_s10   ;;  %s7568_s13 = sld [smem:[#allocation14_spill]] }
 0x67a   : > { %p24_p2 = scmp.ge.s32.totalorder %s27_s10, 4   ;;  %s7569_s29 = sld [smem:[#allocation17_spill]] }
 0x67b   : > { %s7570_s30 = sld [smem:[#allocation15_spill]]  ;;  %s7572_s27 = smov %s4680_s28 }
 0x67c   : > { %s7571_s9 = sld [smem:[#allocation16_spill]]  ;;  %26 = sbr.rel (!%p24_p2) target bundleno = 10 (0xa), region = 118 }
 0x67f   : > { %s7573_s28 = smov %s7568_s13 }
 0x681   :  { %3556 = vsyncpa [#allocation6], 1 }
 0x682   :  { %3558 = vsyncpa [#allocation6 + $0x1], 1 }
 0x683   :  { %3559 = vsyncpa [#allocation9], 1 }
 0x684   :  { %3561 = vsyncpa [#allocation9 + $0x1], 1 }
 0x685   :  { %3562 = vsyncpa [#allocation7], 1 }
 0x686   :  { %3564 = vsyncpa [#allocation7 + $0x1], 1 }

</bundles_post_ra>
